<compile_context>
chip_gen: v7x
topology: tpu7x:2x2x1
jax: 0.10.0
libtpu: 0.0.40
codegen_flags: <defaults>
</compile_context>

<pallas_src>
import functools
import math

import numpy as np
import jax
import jax.numpy as jnp
from jax.experimental import pallas as pl
from jax.experimental.pallas import tpu as pltpu

# ----------------------------- hyper-parameters ------------------------------
N_ATOM_TYPE = 5
NUM_RADIAL = 4            # R
NUM_SPHERICAL = 1         # lmax
RADIAL_EMBED = 8          # E
RADIAL_HIDDEN = 16        # H
NUM_RADIAL_LAYER = 2
NUM_GCN_LAYER = 3
CUTOFF = 3.0
GRID_CUTOFF = 3.0
GAUSS_START, GAUSS_END = 0.5, 5.0

FEAT_DIM = NUM_RADIAL * (1 + 3)          # Rx0e + Rx1e
C0 = 0.28209479177387814                 # Y_0, e3nn 'integral' normalization
C1 = 0.4886025119029199                  # Y_1, e3nn 'integral' normalization
SQRT3 = math.sqrt(3.0)
SQRT6 = math.sqrt(6.0)

_EPS3 = np.zeros((3, 3, 3), np.float32)
_EPS3[0, 1, 2] = _EPS3[1, 2, 0] = _EPS3[2, 0, 1] = 1.0
_EPS3[0, 2, 1] = _EPS3[2, 1, 0] = _EPS3[1, 0, 2] = -1.0
EPS3 = jnp.asarray(_EPS3)
# TODO(synk): wigner-3j sign conventions (and e3nn's normalize2mom activation
# rescale) are approximated; only magnitudes / structure are reproduced.


# ============================== Pallas kernel ================================
def _grid_eval_kernel(svec_ref, featc_ref, onehot_ref, w1b_ref, w2b_ref, wres_ref,
                      out_ref, *, num_radial, embed_size, alphas, grid_cutoff):
    R, E = num_radial, embed_size
    A = svec_ref.shape[1]
    TS = svec_ref.shape[2]

    dx = svec_ref[0]                           # (A, TS)
    dy = svec_ref[1]
    dz = svec_ref[2]
    featc = featc_ref[...]                     # (A, 4R) = [C0*fs | C1*fvy | C1*fvz | C1*fvx]
    onehot = onehot_ref[...]                   # (G, A)

    r2 = dx * dx + dy * dy + dz * dz
    r = jnp.sqrt(r2)
    glen = r + 1e-8
    inv_r = pl.reciprocal(glen, approx=True)   # EUP; one unit vector reused everywhere
    ux = dx * inv_r
    uy = dy * inv_r
    uz = dz * inv_r

    # ---------------- density: GaussianOrbital(sample_vec) · feat -----------
    # TODO(synk): GaussianOrbital source is unavailable; assumed basis is
    # exp(-a_n r^2) * Y_lm(v_hat) laid out to match irreps_feat (Rx0e + Rx1e).

    # Gaussian radial embedding of |sample_vec|, stacked per atom: (A*E, TS).
    # soft-one-hot scale (sqrt(E)/1.12) is folded into w1b in the wrapper.
    step = grid_cutoff / (E - 1)
    k_idx = jax.lax.broadcasted_iota(jnp.int32, (A, E, TS), 1).astype(jnp.float32)
    d = glen[:, None, :] * (1.0 / step) - k_idx
    emb = jnp.exp(-d * d).reshape(A * E, TS)

    # Radial MLP of the residue layer on the MXU (block-diagonal per-atom
    # weights held in VMEM; fan-in normalizations folded in the wrapper).
    h1 = jax.nn.silu(jnp.dot(w1b_ref[...], emb, preferred_element_type=jnp.float32))
    h2 = jax.nn.silu(jnp.dot(w2b_ref[...], h1, preferred_element_type=jnp.float32))
    wgt = jnp.dot(wres_ref[...], h2, preferred_element_type=jnp.float32)  # (A+R*A, TS)

    # ---- density + residue tensor product (FullyConnectedTensorProduct
    #      (Rx0e + Rx1e) x (0e + 1e) -> 0e, no self-connection) --------------
    res = wgt[:A]                              # 0e path: feat_s folded into wres rows
    dens = jnp.zeros_like(r2)
    for n in range(R):
        fvy = featc[:, R + n:R + n + 1]
        fvz = featc[:, 2 * R + n:2 * R + n + 1]
        fvx = featc[:, 3 * R + n:3 * R + n + 1]
        ang1 = uy * fvy + uz * fvz + ux * fvx                 # C1 * <feat_v_n, u>
        dens = dens + jnp.exp(-alphas[n] * r2) * (featc[:, n:n + 1] + ang1)
        res = res + wgt[A + n * A:A + (n + 1) * A] * ang1     # 1e path weights
    # TODO(synk): torch_cluster.radius caps neighbors at max_num_neighbors=32;
    # irrelevant here (num_atoms=8) so only the distance cutoff is applied.
    within = jnp.where(r <= grid_cutoff, 1.0, 0.0)

    # scatter(·, batch, reduce='sum') for density and residue fused into one
    # onehot matmul and one wide lane-dense store.
    out_ref[...] = jnp.dot(onehot, dens + within * res,
                           preferred_element_type=jnp.float32)


def _pick_sample_tile(S):
    # largest lane tile that still leaves >=2 grid steps (v7x megacore sharding)
    for ts in (2048, 1024, 512, 256, 128):
        if S % ts == 0 and S // ts >= 2:
            return ts
    for ts in (2048, 1024, 512, 256, 128):
        if S % ts == 0:
            return ts
    raise ValueError("num_samples must be a multiple of 128")


def build_residue_weights(feat_s, res_mlp):
    """Fold constant scalings and the per-atom structure of the residue layer
    (radial MLP + tensor product, out irreps '0e') into block matrices consumed
    by the kernel's MXU matmuls."""
    w1, w2, w3 = res_mlp
    A, R = feat_s.shape
    E, H = w1.shape
    inv_sh = 1.0 / math.sqrt(H)
    pw = 1.0 / math.sqrt(2.0 * R)            # component/element normalization
    eye_a = jnp.eye(A, dtype=jnp.float32)
    # layer 1: (sqrt(E)/1.12) * (1/sqrt(E)) -> 1/1.12
    w1b = jnp.kron(eye_a, (w1 * (1.0 / 1.12)).T)              # (A*H, A*E)
    w2b = jnp.kron(eye_a, (w2 * inv_sh).T)                    # (A*H, A*H)
    # layer 3 fused with the tensor product:
    #   0e path rows a            : pw*C0/sqrt(H) * sum_u feat_s[a,u] * w3[:,u]
    #   1e path rows A + u*A + a  : (pw/sqrt(3))/sqrt(H) * w3[:,R+u]
    w3s = (pw * C0 * inv_sh) * jnp.einsum('au,ju->aj', feat_s, w3[:, :R])   # (A, H)
    w3s_blk = jnp.einsum('ab,aj->abj', eye_a, w3s).reshape(A, A * H)
    w3v = (pw / SQRT3 * inv_sh) * w3[:, R:].T                               # (R, H)
    w3v_blk = jnp.einsum('ab,uj->uabj', eye_a, w3v).reshape(R * A, A * H)
    wresb = jnp.concatenate([w3s_blk, w3v_blk], axis=0)                     # (A+R*A, A*H)
    return w1b, w2b, wresb


def grid_eval_pallas(svec, featc, onehot, w1b, w2b, wresb):
    _, A, S = svec.shape
    G = onehot.shape[0]
    TS = _pick_sample_tile(S)
    alphas = tuple(float(a) for a in np.linspace(GAUSS_START, GAUSS_END, NUM_RADIAL))
    kernel = functools.partial(
        _grid_eval_kernel, num_radial=NUM_RADIAL, embed_size=RADIAL_EMBED,
        alphas=alphas, grid_cutoff=GRID_CUTOFF)
    const = lambda t: (0, 0)
    return pl.pallas_call(
        kernel,
        out_shape=jax.ShapeDtypeStruct((G, S), jnp.float32),
        grid=(S // TS,),
        in_specs=[
            pl.BlockSpec((3, A, TS), lambda t: (0, 0, t)),
            pl.BlockSpec(featc.shape, const),
            pl.BlockSpec(onehot.shape, const),
            pl.BlockSpec(w1b.shape, const),
            pl.BlockSpec(w2b.shape, const),
            pl.BlockSpec(wresb.shape, const),
        ],
        out_specs=pl.BlockSpec((G, TS), lambda t: (0, t)),
        compiler_params=pltpu.CompilerParams(dimension_semantics=("parallel",)),
    )(svec, featc, onehot, w1b, w2b, wresb)


# ============================== JAX glue =====================================
def soft_one_hot_gaussian(x, start, end, number):
    values = jnp.linspace(start, end, number)
    step = values[1] - values[0]
    diff = (x[..., None] - values) / step
    return jnp.exp(-diff * diff) / 1.12


def radial_net(x, ws):
    # TODO(synk): e3nn FullyConnectedNet additionally applies normalize2mom to
    # SiLU; only the 1/sqrt(fan_in) variance scaling is reproduced here.
    h = x
    for w in ws[:-1]:
        h = jax.nn.silu(h @ w / math.sqrt(w.shape[0]))
    return h @ ws[-1] / math.sqrt(ws[-1].shape[0])


def norm_activation(fs, fv):
    s = jax.nn.silu(fs)
    inner = jnp.sum(fv * fv, axis=-1) / SQRT3          # 'uuu' inner product TP
    gate = jax.nn.sigmoid(jnp.sqrt(inner + 1e-8))
    return s, gate[..., None] * fv                      # elementwise TP == s*v


def gcn_layer(feat_s, feat_v, edge_mask, edge_y1, edge_embed, prm, first):
    A, R = feat_s.shape
    w = radial_net(edge_embed, prm['mlp'])               # (A, A, weight_numel)
    m = edge_mask.astype(jnp.float32)
    if first:
        wA = w[..., :R * R].reshape(A, A, R, R)          # 0e x 0e -> 0e
        wB = w[..., R * R:].reshape(A, A, R, R)          # 0e x 1e -> 1e
        pw0 = 1.0 / math.sqrt(R)
        pw1 = math.sqrt(3.0 / R)
        msg_s = pw0 * C0 * jnp.einsum('ijuw,iu->ijw', wA, feat_s)
        msg_v = (pw1 / SQRT3) * jnp.einsum('ijuw,iu,ijk->ijwk', wB, feat_s, edge_y1)
    else:
        parts = jnp.split(w, 5, axis=-1)
        w000, w011, w101, w110, w111 = [p.reshape(A, A, R, R) for p in parts]
        pw0 = 1.0 / math.sqrt(2.0 * R)
        pw1 = 1.0 / math.sqrt(1.0 * R)
        dot_vy = jnp.einsum('ium,ijm->iju', feat_v, edge_y1)
        cross_vy = jnp.einsum('mnk,ium,ijn->ijuk', EPS3, feat_v, edge_y1)
        msg_s = pw0 * (C0 * jnp.einsum('ijuw,iu->ijw', w000, feat_s)
                       + jnp.einsum('ijuw,iju->ijw', w110, dot_vy) / SQRT3)
        msg_v = pw1 * (jnp.einsum('ijuw,iu,ijk->ijwk', w011, feat_s, edge_y1) / SQRT3
                       + C0 * jnp.einsum('ijuw,iuk->ijwk', w101, feat_v) / SQRT3
                       + jnp.einsum('ijuw,ijuk->ijwk', w111, cross_vy) / SQRT6)
    out_s = jnp.einsum('ij,ijw->jw', m, msg_s)           # scatter-sum to dst
    out_v = jnp.einsum('ij,ijwk->jwk', m, msg_v)
    # self connection (o3.Linear)
    out_s = out_s + feat_s @ prm['sc_s'] / math.sqrt(R)
    if (not first) and prm['sc_v'] is not None:
        out_v = out_v + jnp.einsum('iuk,uw->iwk', feat_v, prm['sc_v']) / math.sqrt(R)
    return out_s, out_v


def infgcn_forward(atom_types, atom_coord, grid, batch, params):
    A = atom_types.shape[0]
    G, S, _ = grid.shape
    R = NUM_RADIAL

    feat_s = params['embedding'][atom_types]             # (A, R)   Rx0e
    feat_v = jnp.zeros((A, R, 3), jnp.float32)           # (A, R, 3) Rx1e

    # molecular radius graph (dense, masked)
    diff = atom_coord[:, None, :] - atom_coord[None, :, :]   # coord[src] - coord[dst]
    dist = jnp.sqrt(jnp.sum(diff * diff, axis=-1))
    mask = ((batch[:, None] == batch[None, :])
            & (~jnp.eye(A, dtype=bool)) & (dist < CUTOFF))
    edge_len = dist + 1e-8
    unit = diff / edge_len[..., None]
    edge_y1 = C1 * jnp.stack([unit[..., 1], unit[..., 2], unit[..., 0]], axis=-1)
    edge_embed = (soft_one_hot_gaussian(edge_len, 0.0, CUTOFF, RADIAL_EMBED)
                  * math.sqrt(RADIAL_EMBED))

    for i in range(NUM_GCN_LAYER):
        feat_s, feat_v = gcn_layer(feat_s, feat_v, mask, edge_y1, edge_embed,
                                   params['gcn'][i], first=(i == 0))
        if i != NUM_GCN_LAYER - 1:
            feat_s, feat_v = norm_activation(feat_s, feat_v)

    # angular feature table consumed by the kernel:
    # columns [C0*feat_s | C1*fv_y | C1*fv_z | C1*fv_x], each block width R.
    featc = jnp.concatenate(
        [C0 * feat_s,
         C1 * feat_v[:, :, 0], C1 * feat_v[:, :, 1], C1 * feat_v[:, :, 2]],
        axis=-1)                                          # (A, 4R)

    # per-atom sample vectors, exactly as in the reference forward
    sample_vec = grid[batch] - atom_coord[:, None, :]     # (A, S, 3)
    svec = jnp.transpose(sample_vec, (2, 0, 1))           # (3, A, S)
    onehot = (batch[None, :] == jnp.arange(G)[:, None]).astype(jnp.float32)

    w1b, w2b, wresb = build_residue_weights(feat_s, params['residue_mlp'])

    # pbc=False -> cell from `infos` is unused in the reference forward.
    return grid_eval_pallas(svec, featc, onehot, w1b, w2b, wresb)


# ============================ parameter init =================================
def init_params(key):
    ks = jax.random.split(key, 20)
    R = NUM_RADIAL
    wn = [2 * R * R, 5 * R * R, 5 * R * R]
    p = {'embedding': jax.random.normal(ks[0], (N_ATOM_TYPE, R), jnp.float32),
         'gcn': []}
    idx = 1
    for i in range(NUM_GCN_LAYER):
        mlp = [jax.random.normal(ks[idx + 0], (RADIAL_EMBED, RADIAL_HIDDEN), jnp.float32),
               jax.random.normal(ks[idx + 1], (RADIAL_HIDDEN, RADIAL_HIDDEN), jnp.float32),
               jax.random.normal(ks[idx + 2], (RADIAL_HIDDEN, wn[i]), jnp.float32)]
        sc_s = jax.random.normal(ks[idx + 3], (R, R), jnp.float32)
        sc_v = None if i == 0 else jax.random.normal(ks[idx + 4], (R, R), jnp.float32)
        p['gcn'].append({'mlp': mlp, 'sc_s': sc_s, 'sc_v': sc_v})
        idx += 5
    p['residue_mlp'] = [
        jax.random.normal(ks[idx + 0], (RADIAL_EMBED, RADIAL_HIDDEN), jnp.float32),
        jax.random.normal(ks[idx + 1], (RADIAL_HIDDEN, RADIAL_HIDDEN), jnp.float32),
        jax.random.normal(ks[idx + 2], (RADIAL_HIDDEN, 2 * R), jnp.float32)]
    return p


# ================================== main =====================================
if __name__ == "__main__":
    key = jax.random.PRNGKey(0)
    kp, k1, k2, k3 = jax.random.split(key, 4)
    params = init_params(kp)

    A, G, S = 8, 2, 1024
    atom_types = jax.random.randint(k1, (A,), 0, N_ATOM_TYPE)
    atom_coord = jax.random.uniform(k2, (A, 3), jnp.float32, 0.0, 2.0)
    batch = jnp.array([0, 0, 0, 0, 1, 1, 1, 1], jnp.int32)
    grid = jax.random.uniform(k3, (G, S, 3), jnp.float32, 0.0, 2.0)

    density = infgcn_forward(atom_types, atom_coord, grid, batch, params)
    density = jax.block_until_ready(density)
    assert density.shape == (G, S)
    assert bool(jnp.all(jnp.isfinite(density)))
    print("KERNEL_OK")
</pallas_src>

<mosaic_0001>
module attributes {stable_mosaic.version = 11 : i64} {
  func.func @_grid_eval_kernel(%arg0: i32, %arg1: memref<3x8x512xf32, #tpu.memory_space<vmem>>, %arg2: memref<8x16xf32, #tpu.memory_space<vmem>>, %arg3: memref<2x8xf32, #tpu.memory_space<vmem>>, %arg4: memref<128x64xf32, #tpu.memory_space<vmem>>, %arg5: memref<128x128xf32, #tpu.memory_space<vmem>>, %arg6: memref<40x128xf32, #tpu.memory_space<vmem>>, %arg7: memref<2x512xf32, #tpu.memory_space<vmem>>) attributes {dimension_semantics = [#tpu.dimension_semantics<parallel>], iteration_bounds = array<i64: 2>, scalar_prefetch = 0 : i64, scratch_operands = 0 : i64, tpu.core_type = #tpu.core_type<tc>, window_params = [{transform_indices = @transform_0, window_bounds = array<i64: 3, 8, 512>}, {pipeline_mode = #tpu.pipeline_mode<synchronous>, transform_indices = @transform_1, window_bounds = array<i64: 8, 16>}, {pipeline_mode = #tpu.pipeline_mode<synchronous>, transform_indices = @transform_2, window_bounds = array<i64: 2, 8>}, {pipeline_mode = #tpu.pipeline_mode<synchronous>, transform_indices = @transform_3, window_bounds = array<i64: 128, 64>}, {pipeline_mode = #tpu.pipeline_mode<synchronous>, transform_indices = @transform_4, window_bounds = array<i64: 128, 128>}, {pipeline_mode = #tpu.pipeline_mode<synchronous>, transform_indices = @transform_5, window_bounds = array<i64: 40, 128>}, {transform_indices = @transform_6, window_bounds = array<i64: 2, 512>}]} {
    %c0 = arith.constant 0 : index
    %c0_0 = arith.constant 0 : index
    %c0_1 = arith.constant 0 : index
    %0 = vector.load %arg1[%c0, %c0_0, %c0_1] : memref<3x8x512xf32, #tpu.memory_space<vmem>>, vector<1x8x512xf32>
    %1 = vector.shape_cast %0 : vector<1x8x512xf32> to vector<8x512xf32>
    %c1 = arith.constant 1 : index
    %c0_2 = arith.constant 0 : index
    %c0_3 = arith.constant 0 : index
    %2 = vector.load %arg1[%c1, %c0_2, %c0_3] : memref<3x8x512xf32, #tpu.memory_space<vmem>>, vector<1x8x512xf32>
    %3 = vector.shape_cast %2 : vector<1x8x512xf32> to vector<8x512xf32>
    %c2 = arith.constant 2 : index
    %c0_4 = arith.constant 0 : index
    %c0_5 = arith.constant 0 : index
    %4 = vector.load %arg1[%c2, %c0_4, %c0_5] : memref<3x8x512xf32, #tpu.memory_space<vmem>>, vector<1x8x512xf32>
    %5 = vector.shape_cast %4 : vector<1x8x512xf32> to vector<8x512xf32>
    %c0_6 = arith.constant 0 : index
    %c0_7 = arith.constant 0 : index
    %6 = vector.load %arg2[%c0_6, %c0_7] : memref<8x16xf32, #tpu.memory_space<vmem>>, vector<8x16xf32>
    %c0_8 = arith.constant 0 : index
    %c0_9 = arith.constant 0 : index
    %7 = vector.load %arg3[%c0_8, %c0_9] : memref<2x8xf32, #tpu.memory_space<vmem>>, vector<2x8xf32>
    %8 = arith.mulf %1, %1 : vector<8x512xf32>
    %9 = arith.mulf %3, %3 : vector<8x512xf32>
    %10 = arith.addf %8, %9 : vector<8x512xf32>
    %11 = arith.mulf %5, %5 : vector<8x512xf32>
    %12 = arith.addf %10, %11 : vector<8x512xf32>
    %13 = math.sqrt %12 : vector<8x512xf32>
    %cst = arith.constant 9.99999993E-9 : f32
    %14 = vector.broadcast %cst : f32 to vector<8x512xf32>
    %15 = arith.addf %13, %14 : vector<8x512xf32>
    %16 = tpu.reciprocal %15 {approx = true} : vector<8x512xf32> -> vector<8x512xf32>
    %17 = arith.mulf %1, %16 : vector<8x512xf32>
    %18 = arith.mulf %3, %16 : vector<8x512xf32>
    %19 = arith.mulf %5, %16 : vector<8x512xf32>
    %20 = tpu.iota {dimensions = array<i32: 1>} : vector<8x8x512xi32>
    %21 = arith.sitofp %20 : vector<8x8x512xi32> to vector<8x8x512xf32>
    %22 = vector.shape_cast %15 : vector<8x512xf32> to vector<8x1x512xf32>
    %cst_10 = arith.constant 2.33333325 : f32
    %23 = vector.broadcast %cst_10 : f32 to vector<8x1x512xf32>
    %24 = arith.mulf %22, %23 : vector<8x1x512xf32>
    %25 = vector.broadcast %24 : vector<8x1x512xf32> to vector<8x8x512xf32>
    %26 = arith.subf %25, %21 : vector<8x8x512xf32>
    %cst_11 = arith.constant 0.000000e+00 : f32
    %27 = vector.broadcast %cst_11 : f32 to vector<8x8x512xf32>
    %28 = arith.subf %27, %26 : vector<8x8x512xf32>
    %29 = arith.mulf %28, %26 : vector<8x8x512xf32>
    %30 = math.exp %29 : vector<8x8x512xf32>
    %31 = vector.shape_cast %30 : vector<8x8x512xf32> to vector<64x512xf32>
    %c0_12 = arith.constant 0 : index
    %c0_13 = arith.constant 0 : index
    %32 = vector.load %arg4[%c0_12, %c0_13] : memref<128x64xf32, #tpu.memory_space<vmem>>, vector<128x64xf32>
    %cst_14 = arith.constant dense<0.000000e+00> : vector<128x512xf32>
    %33 = tpu.matmul %32, %31, %cst_14 {dimension_numbers = #tpu.dot_dimension_numbers<[1], [0], [0], [1], [0, 0, 1, 1], [], []>} : vector<128x64xf32>, vector<64x512xf32>, vector<128x512xf32> -> vector<128x512xf32>
    %34 = arith.negf %33 : vector<128x512xf32>
    %35 = math.exp %34 : vector<128x512xf32>
    %cst_15 = arith.constant 1.000000e+00 : f32
    %36 = vector.broadcast %cst_15 : f32 to vector<128x512xf32>
    %37 = arith.addf %36, %35 : vector<128x512xf32>
    %38 = arith.divf %36, %37 : vector<128x512xf32>
    %39 = arith.mulf %33, %38 : vector<128x512xf32>
    %c0_16 = arith.constant 0 : index
    %c0_17 = arith.constant 0 : index
    %40 = vector.load %arg5[%c0_16, %c0_17] : memref<128x128xf32, #tpu.memory_space<vmem>>, vector<128x128xf32>
    %cst_18 = arith.constant dense<0.000000e+00> : vector<128x512xf32>
    %41 = tpu.matmul %40, %39, %cst_18 {dimension_numbers = #tpu.dot_dimension_numbers<[1], [0], [0], [1], [0, 0, 1, 1], [], []>} : vector<128x128xf32>, vector<128x512xf32>, vector<128x512xf32> -> vector<128x512xf32>
    %42 = arith.negf %41 : vector<128x512xf32>
    %43 = math.exp %42 : vector<128x512xf32>
    %cst_19 = arith.constant 1.000000e+00 : f32
    %44 = vector.broadcast %cst_19 : f32 to vector<128x512xf32>
    %45 = arith.addf %44, %43 : vector<128x512xf32>
    %46 = arith.divf %44, %45 : vector<128x512xf32>
    %47 = arith.mulf %41, %46 : vector<128x512xf32>
    %c0_20 = arith.constant 0 : index
    %c0_21 = arith.constant 0 : index
    %48 = vector.load %arg6[%c0_20, %c0_21] : memref<40x128xf32, #tpu.memory_space<vmem>>, vector<40x128xf32>
    %cst_22 = arith.constant dense<0.000000e+00> : vector<40x512xf32>
    %49 = tpu.matmul %48, %47, %cst_22 {dimension_numbers = #tpu.dot_dimension_numbers<[1], [0], [0], [1], [0, 0, 1, 1], [], []>} : vector<40x128xf32>, vector<128x512xf32>, vector<40x512xf32> -> vector<40x512xf32>
    %50 = vector.extract_strided_slice %49 {offsets = [0, 0], sizes = [8, 512], strides = [1, 1]} : vector<40x512xf32> to vector<8x512xf32>
    %cst_23 = arith.constant 0.000000e+00 : f32
    %51 = vector.broadcast %cst_23 : f32 to vector<8x512xf32>
    %52 = vector.extract_strided_slice %6 {offsets = [0, 4], sizes = [8, 1], strides = [1, 1]} : vector<8x16xf32> to vector<8x1xf32>
    %53 = vector.extract_strided_slice %6 {offsets = [0, 8], sizes = [8, 1], strides = [1, 1]} : vector<8x16xf32> to vector<8x1xf32>
    %54 = vector.extract_strided_slice %6 {offsets = [0, 12], sizes = [8, 1], strides = [1, 1]} : vector<8x16xf32> to vector<8x1xf32>
    %55 = vector.broadcast %52 : vector<8x1xf32> to vector<8x512xf32>
    %56 = arith.mulf %18, %55 : vector<8x512xf32>
    %57 = vector.broadcast %53 : vector<8x1xf32> to vector<8x512xf32>
    %58 = arith.mulf %19, %57 : vector<8x512xf32>
    %59 = arith.addf %56, %58 : vector<8x512xf32>
    %60 = vector.broadcast %54 : vector<8x1xf32> to vector<8x512xf32>
    %61 = arith.mulf %17, %60 : vector<8x512xf32>
    %62 = arith.addf %59, %61 : vector<8x512xf32>
    %cst_24 = arith.constant -5.000000e-01 : f32
    %63 = vector.broadcast %cst_24 : f32 to vector<8x512xf32>
    %64 = arith.mulf %63, %12 : vector<8x512xf32>
    %65 = math.exp %64 : vector<8x512xf32>
    %66 = vector.extract_strided_slice %6 {offsets = [0, 0], sizes = [8, 1], strides = [1, 1]} : vector<8x16xf32> to vector<8x1xf32>
    %67 = vector.broadcast %66 : vector<8x1xf32> to vector<8x512xf32>
    %68 = arith.addf %67, %62 : vector<8x512xf32>
    %69 = arith.mulf %65, %68 : vector<8x512xf32>
    %70 = arith.addf %51, %69 : vector<8x512xf32>
    %71 = vector.extract_strided_slice %49 {offsets = [8, 0], sizes = [8, 512], strides = [1, 1]} : vector<40x512xf32> to vector<8x512xf32>
    %72 = arith.mulf %71, %62 : vector<8x512xf32>
    %73 = arith.addf %50, %72 : vector<8x512xf32>
    %74 = vector.extract_strided_slice %6 {offsets = [0, 5], sizes = [8, 1], strides = [1, 1]} : vector<8x16xf32> to vector<8x1xf32>
    %75 = vector.extract_strided_slice %6 {offsets = [0, 9], sizes = [8, 1], strides = [1, 1]} : vector<8x16xf32> to vector<8x1xf32>
    %76 = vector.extract_strided_slice %6 {offsets = [0, 13], sizes = [8, 1], strides = [1, 1]} : vector<8x16xf32> to vector<8x1xf32>
    %77 = vector.broadcast %74 : vector<8x1xf32> to vector<8x512xf32>
    %78 = arith.mulf %18, %77 : vector<8x512xf32>
    %79 = vector.broadcast %75 : vector<8x1xf32> to vector<8x512xf32>
    %80 = arith.mulf %19, %79 : vector<8x512xf32>
    %81 = arith.addf %78, %80 : vector<8x512xf32>
    %82 = vector.broadcast %76 : vector<8x1xf32> to vector<8x512xf32>
    %83 = arith.mulf %17, %82 : vector<8x512xf32>
    %84 = arith.addf %81, %83 : vector<8x512xf32>
    %cst_25 = arith.constant -2.000000e+00 : f32
    %85 = vector.broadcast %cst_25 : f32 to vector<8x512xf32>
    %86 = arith.mulf %85, %12 : vector<8x512xf32>
    %87 = math.exp %86 : vector<8x512xf32>
    %88 = vector.extract_strided_slice %6 {offsets = [0, 1], sizes = [8, 1], strides = [1, 1]} : vector<8x16xf32> to vector<8x1xf32>
    %89 = vector.broadcast %88 : vector<8x1xf32> to vector<8x512xf32>
    %90 = arith.addf %89, %84 : vector<8x512xf32>
    %91 = arith.mulf %87, %90 : vector<8x512xf32>
    %92 = arith.addf %70, %91 : vector<8x512xf32>
    %93 = vector.extract_strided_slice %49 {offsets = [16, 0], sizes = [8, 512], strides = [1, 1]} : vector<40x512xf32> to vector<8x512xf32>
    %94 = arith.mulf %93, %84 : vector<8x512xf32>
    %95 = arith.addf %73, %94 : vector<8x512xf32>
    %96 = vector.extract_strided_slice %6 {offsets = [0, 6], sizes = [8, 1], strides = [1, 1]} : vector<8x16xf32> to vector<8x1xf32>
    %97 = vector.extract_strided_slice %6 {offsets = [0, 10], sizes = [8, 1], strides = [1, 1]} : vector<8x16xf32> to vector<8x1xf32>
    %98 = vector.extract_strided_slice %6 {offsets = [0, 14], sizes = [8, 1], strides = [1, 1]} : vector<8x16xf32> to vector<8x1xf32>
    %99 = vector.broadcast %96 : vector<8x1xf32> to vector<8x512xf32>
    %100 = arith.mulf %18, %99 : vector<8x512xf32>
    %101 = vector.broadcast %97 : vector<8x1xf32> to vector<8x512xf32>
    %102 = arith.mulf %19, %101 : vector<8x512xf32>
    %103 = arith.addf %100, %102 : vector<8x512xf32>
    %104 = vector.broadcast %98 : vector<8x1xf32> to vector<8x512xf32>
    %105 = arith.mulf %17, %104 : vector<8x512xf32>
    %106 = arith.addf %103, %105 : vector<8x512xf32>
    %cst_26 = arith.constant -3.500000e+00 : f32
    %107 = vector.broadcast %cst_26 : f32 to vector<8x512xf32>
    %108 = arith.mulf %107, %12 : vector<8x512xf32>
    %109 = math.exp %108 : vector<8x512xf32>
    %110 = vector.extract_strided_slice %6 {offsets = [0, 2], sizes = [8, 1], strides = [1, 1]} : vector<8x16xf32> to vector<8x1xf32>
    %111 = vector.broadcast %110 : vector<8x1xf32> to vector<8x512xf32>
    %112 = arith.addf %111, %106 : vector<8x512xf32>
    %113 = arith.mulf %109, %112 : vector<8x512xf32>
    %114 = arith.addf %92, %113 : vector<8x512xf32>
    %115 = vector.extract_strided_slice %49 {offsets = [24, 0], sizes = [8, 512], strides = [1, 1]} : vector<40x512xf32> to vector<8x512xf32>
    %116 = arith.mulf %115, %106 : vector<8x512xf32>
    %117 = arith.addf %95, %116 : vector<8x512xf32>
    %118 = vector.extract_strided_slice %6 {offsets = [0, 7], sizes = [8, 1], strides = [1, 1]} : vector<8x16xf32> to vector<8x1xf32>
    %119 = vector.extract_strided_slice %6 {offsets = [0, 11], sizes = [8, 1], strides = [1, 1]} : vector<8x16xf32> to vector<8x1xf32>
    %120 = vector.extract_strided_slice %6 {offsets = [0, 15], sizes = [8, 1], strides = [1, 1]} : vector<8x16xf32> to vector<8x1xf32>
    %121 = vector.broadcast %118 : vector<8x1xf32> to vector<8x512xf32>
    %122 = arith.mulf %18, %121 : vector<8x512xf32>
    %123 = vector.broadcast %119 : vector<8x1xf32> to vector<8x512xf32>
    %124 = arith.mulf %19, %123 : vector<8x512xf32>
    %125 = arith.addf %122, %124 : vector<8x512xf32>
    %126 = vector.broadcast %120 : vector<8x1xf32> to vector<8x512xf32>
    %127 = arith.mulf %17, %126 : vector<8x512xf32>
    %128 = arith.addf %125, %127 : vector<8x512xf32>
    %cst_27 = arith.constant -5.000000e+00 : f32
    %129 = vector.broadcast %cst_27 : f32 to vector<8x512xf32>
    %130 = arith.mulf %129, %12 : vector<8x512xf32>
    %131 = math.exp %130 : vector<8x512xf32>
    %132 = vector.extract_strided_slice %6 {offsets = [0, 3], sizes = [8, 1], strides = [1, 1]} : vector<8x16xf32> to vector<8x1xf32>
    %133 = vector.broadcast %132 : vector<8x1xf32> to vector<8x512xf32>
    %134 = arith.addf %133, %128 : vector<8x512xf32>
    %135 = arith.mulf %131, %134 : vector<8x512xf32>
    %136 = arith.addf %114, %135 : vector<8x512xf32>
    %137 = vector.extract_strided_slice %49 {offsets = [32, 0], sizes = [8, 512], strides = [1, 1]} : vector<40x512xf32> to vector<8x512xf32>
    %138 = arith.mulf %137, %128 : vector<8x512xf32>
    %139 = arith.addf %117, %138 : vector<8x512xf32>
    %cst_28 = arith.constant 3.000000e+00 : f32
    %140 = vector.broadcast %cst_28 : f32 to vector<8x512xf32>
    %141 = arith.cmpf ole, %13, %140 : vector<8x512xf32>
    %cst_29 = arith.constant 1.000000e+00 : f32
    %cst_30 = arith.constant 0.000000e+00 : f32
    %142 = vector.broadcast %cst_29 : f32 to vector<8x512xf32>
    %143 = vector.broadcast %cst_30 : f32 to vector<8x512xf32>
    %144 = arith.select %141, %142, %143 : vector<8x512xi1>, vector<8x512xf32>
    %145 = arith.mulf %144, %139 : vector<8x512xf32>
    %146 = arith.addf %136, %145 : vector<8x512xf32>
    %cst_31 = arith.constant dense<0.000000e+00> : vector<2x512xf32>
    %147 = tpu.matmul %7, %146, %cst_31 {dimension_numbers = #tpu.dot_dimension_numbers<[1], [0], [0], [1], [0, 0, 1, 1], [], []>} : vector<2x8xf32>, vector<8x512xf32>, vector<2x512xf32> -> vector<2x512xf32>
    %c0_32 = arith.constant 0 : index
    %c0_33 = arith.constant 0 : index
    %148 = vector.load %arg7[%c0_32, %c0_33] : memref<2x512xf32, #tpu.memory_space<vmem>>, vector<2x512xf32>
    tpu.vector_store %arg7[%c0_32, %c0_33], %147 {strides = array<i32>} : memref<2x512xf32, #tpu.memory_space<vmem>>, vector<2x512xf32>,
    return
  }
  func.func @transform_0(%arg0: i32) -> (i32, i32, i32) {
    %c0_i32 = arith.constant 0 : i32
    %c0_i32_0 = arith.constant 0 : i32
    %c0_i32_1 = arith.constant 0 : i32
    return %c0_i32, %c0_i32_0, %arg0 : i32, i32, i32
  }
  func.func @transform_1(%arg0: i32) -> (i32, i32) {
    %c0_i32 = arith.constant 0 : i32
    %c0_i32_0 = arith.constant 0 : i32
    %c0_i32_1 = arith.constant 0 : i32
    return %c0_i32, %c0_i32_0 : i32, i32
  }
  func.func @transform_2(%arg0: i32) -> (i32, i32) {
    %c0_i32 = arith.constant 0 : i32
    %c0_i32_0 = arith.constant 0 : i32
    %c0_i32_1 = arith.constant 0 : i32
    return %c0_i32, %c0_i32_0 : i32, i32
  }
  func.func @transform_3(%arg0: i32) -> (i32, i32) {
    %c0_i32 = arith.constant 0 : i32
    %c0_i32_0 = arith.constant 0 : i32
    %c0_i32_1 = arith.constant 0 : i32
    return %c0_i32, %c0_i32_0 : i32, i32
  }
  func.func @transform_4(%arg0: i32) -> (i32, i32) {
    %c0_i32 = arith.constant 0 : i32
    %c0_i32_0 = arith.constant 0 : i32
    %c0_i32_1 = arith.constant 0 : i32
    return %c0_i32, %c0_i32_0 : i32, i32
  }
  func.func @transform_5(%arg0: i32) -> (i32, i32) {
    %c0_i32 = arith.constant 0 : i32
    %c0_i32_0 = arith.constant 0 : i32
    %c0_i32_1 = arith.constant 0 : i32
    return %c0_i32, %c0_i32_0 : i32, i32
  }
  func.func @transform_6(%arg0: i32) -> (i32, i32) {
    %c0_i32 = arith.constant 0 : i32
    %c0_i32_0 = arith.constant 0 : i32
    return %c0_i32, %arg0 : i32, i32
  }
}

</mosaic_0001>

<bundles_post_ra>
// kernel: tpu_custom_call.1
= control target key start
LH: loop header
LB: loop body
LE: loop exit
PB: predicated region body
PF: predicated region fallthrough
CT: control target
= control target key end

     0   :  { %11 = vsyncpa [#allocation4], 0  ;;  %s5957_s0 = inlined_call_operand.vmem [shape: f32[3,8,1024], index: 0, kind: input, shape index: {}]   ;;  %s5958_s1 = inlined_call_operand.hbm [shape: f32[8,16], index: 1, kind: input, shape index: {}]   ;;  %s5959_s2 = inlined_call_operand.vmem [shape: f32[2,8], index: 2, kind: input, shape index: {}]   ;;  %s5960_s3 = inlined_call_operand.vmem [shape: f32[128,64], index: 3, kind: input, shape index: {}]   ;;  %s5961_s4 = inlined_call_operand.hbm [shape: f32[128,128], index: 4, kind: input, shape index: {}]   ;;  %s5962_s5 = inlined_call_operand.hbm [shape: f32[40,128], index: 5, kind: input, shape index: {}]   ;;  %s5963_s6 = inlined_call_operand.hbm [shape: f32[2,1024], index: 6, kind: output, shape index: {}]  }
   0x1   :  { %12 = vsyncpa [#allocation7], 0 }
   0x2   :  { %13 = vsyncpa [#allocation5], 0 }
   0x3   :  { %15 = vsyncpa [#allocation5 + $0x1], 0  ;;  %s4536_s21 = smov 0   ;;  %s4538_s22 = smov 0  }
   0x4   :  { %s4540_s23 = smov 0   ;;  %s4542_s24 = smov 0  }
   0x5 LB: > { %s4557_s25 = sadd.s32 4294967295, %s4474_s24   ;;  %s3224_s26 = sadd.s32 4294967294, %s4474_s24   ;;  %s4474_s24 = sphi %s4542_s24, %s6065_s24   ;;  %s4470_s23 = sphi %s4540_s23, %s6069_s23   ;;  %s4466_s22 = sphi %s4538_s22, %s6068_s22   ;;  %s4462_s21 = sphi %s4536_s21, %s6067_s21  }
   0x6   : > { %s4561_s27 = sadd.s32 1, %s4474_s24   ;;  %s28_s28 = sadd.s32 1, %s4470_s23 }
   0x7   : > { %5999 = sst [smem:[#allocation13_spill]] %s4561_s27  ;;  %s25_s29 = ssub.s32 %s4474_s24, %s4561_s27 }
   0x8   : > { %p35_p0 = scmp.ne.s32.totalorder %s4470_s23, %s4466_s22  ;;  %p26_p1 = scmp.eq.s32.totalorder %s25_s29, 0 }
   0x9   : > { %p36_p2 = scmp.eq.s32.totalorder %s4474_s24, 0  ;;  %p170_p3 = scmp.eq.s32.totalorder %s4557_s25, 1 }
   0xa   : > { %p175_p4 = scmp.ne.s32.totalorder %s4466_s22, %s4462_s21  ;;  %p176_p7 = scmp.eq.s32.totalorder %s3224_s26, 1 }
   0xb   : > { %s4573_s30 = scalar_select %p26_p1, %s4470_s23, %s28_s28  }
   0xc   : > { %p4575_p5 = por %p36_p2, %p35_p0  ;;  %p4579_p6 = por %p170_p3, %p35_p0 }
   0xd   : > { %6000 = sst [smem:[#allocation14_spill]] %s4573_s30  ;;  %p3225_p8 = scmp.ge.s32.totalorder %s4474_s24, 1 }
   0xe   : > { %s6001_s7 = scalar_select %p4575_p5, 1, 0 }
   0xf   : > { %s6002_s8 = scalar_select %p4579_p6, 1, 0 }
  0x10   : > { %p183_p9 = scmp.lt.s32.totalorder %s4474_s24, 3  ;;  %p4585_p10 = por %p176_p7, %p175_p4 }
  0x11   : > { %p5964_p11 = scmp.eq.s32.totalorder %s4557_s25, 0  ;;  %s4476_s11 = smov [#allocation6]  }
  0x12   : > { %s6003_s9 = scalar_select %p4585_p10, 1, 0 }
  0x13   : > { %p4590_p12 = pnand %p3225_p8, %p183_p9  ;;  %s212_s12 = sshll.u32 %s4476_s11, 4  ;;  %s4596_s12 = int_to_ptr.vmem [resolvable:$true] %s212_s12 }
  0x14   : > { %6004 = sst [smem:[#allocation15_spill]] %s6003_s9  ;;  %s4477_s14 = smov [#allocation3]  }
  0x15   : > { %s6005_s10 = scalar_select %p4590_p12, 1, 0 }
  0x16   : > { %p3590_p13 = pneg %p4590_p12  ;;  %s196_s15 = sshll.u32 %s4477_s14, 4  ;;  %s4604_s15 = int_to_ptr.vmem [resolvable:$true] %s196_s15 }
  0x17   : > { %s4478_s16 = smov [#allocation8]   ;;  %s4320_s20 = scalar_lea.hbm %s5961_s4, 2048 }
  0x18   : > { %p4600_p0 = pnand %p5964_p11, %p3590_p13  ;;  %s4606_s17 = sshll.u32 %s4478_s16, 4  ;;  %s226_s17 = int_to_ptr.vmem [resolvable:$true] %s4606_s17 }
  0x19   : > { %p4321_p1 = scmp.ne.s32.totalorder %s5961_s4, %s4320_s20  ;;  %p4327_p7 = scmp.lt.u32.totalorder %s4320_s20, %s5961_s4 }
  0x1a   : > { %p4616_p2 = pneg %p4600_p0 }
  0x1c   : > { %p4323_p3 = pnand %p4616_p2, %p4321_p1 }
  0x1e   : > { %p4324_p4 = pneg %p4323_p3 }
  0x20   : > { %p4329_p8 = pnand %p4327_p7, %p4324_p4 }
  0x22   : > { %4332 = shalt.err (!%p4329_p8)
}
  0x23   : > { %s4333_s16 = scalar_lea.vmem %s4596_s12, 2048  ;;  %p4341_p10 = scmp.lt.s32.totalorder %s4596_s12, %s4596_s12 }
  0x24   : > { %p4334_p9 = scmp.ne.s32.totalorder %s4596_s12, %s4333_s16  ;;  %p4342_p6 = scmp.lt.s32.totalorder %s4333_s16, %s4333_s16 }
  0x26   : > { %p4336_p13 = pnand %p4334_p9, %p4616_p2  ;;  %p4343_p1 = por %p4342_p6, %p4341_p10 }
  0x28   : > { %p4337_p11 = pneg %p4336_p13 }
  0x2a   : > { %p4344_p3 = pnand %p4343_p1, %p4337_p11 }
  0x2c   : > { %4347 = shalt.err (!%p4344_p3)
}
  0x2d   : > { %s4479_s18 = smov 128   ;;  %s4480_s19 = smov 8  }
  0x2e   : > { %3596 = dma.hbm_to_vmem [thread:$0]  (!%p4600_p0), %s5961_s4, 2048, %s4596_s12, [#allocation7], %s4479_s18, %s4479_s18, %s4480_s19  }
  0x2f   : > { %s4348_s14 = scalar_lea.hbm %s5958_s1, 128 }
  0x30   : > { %p4349_p6 = scmp.ne.s32.totalorder %s5958_s1, %s4348_s14  ;;  %p4355_p4 = scmp.lt.u32.totalorder %s4348_s14, %s5958_s1 }
  0x32   : > { %p4351_p10 = pnand %p4349_p6, %p4616_p2 }
  0x34   : > { %p4352_p11 = pneg %p4351_p10 }
  0x36   : > { %p4357_p7 = pnand %p4355_p4, %p4352_p11 }
  0x38   : > { %4360 = shalt.err (!%p4357_p7)
}
  0x39   : > { %s4361_s12 = scalar_lea.vmem %s4604_s15, 128  ;;  %p4369_p1 = scmp.lt.s32.totalorder %s4604_s15, %s4604_s15 }
  0x3a   : > { %p4362_p8 = scmp.ne.s32.totalorder %s4604_s15, %s4361_s12  ;;  %p4370_p3 = scmp.lt.s32.totalorder %s4361_s12, %s4361_s12 }
  0x3c   : > { %p4364_p9 = pnand %p4362_p8, %p4616_p2  ;;  %p4371_p6 = por %p4370_p3, %p4369_p1 }
  0x3e   : > { %p4365_p13 = pneg %p4364_p9 }
  0x40   : > { %p4372_p10 = pnand %p4371_p6, %p4365_p13 }
  0x42   : > { %4375 = shalt.err (!%p4372_p10)
}
  0x43   : > { %3593 = dma.hbm_to_vmem [thread:$0]  (!%p4600_p0), %s5958_s1, 128, %s4604_s15, [#allocation4]  }
  0x44   : > { %s4376_s26 = scalar_lea.hbm %s5962_s5, 640 }
  0x45   : > { %p4377_p11 = scmp.ne.s32.totalorder %s5962_s5, %s4376_s26  ;;  %p4383_p8 = scmp.lt.u32.totalorder %s4376_s26, %s5962_s5 }
  0x47   : > { %p4379_p4 = pnand %p4377_p11, %p4616_p2 }
  0x49   : > { %p4380_p7 = pneg %p4379_p4 }
  0x4b   : > { %p4385_p9 = pnand %p4383_p8, %p4380_p7 }
  0x4d   : > { %4388 = shalt.err (!%p4385_p9)
}
  0x4e   : > { %s4389_s12 = scalar_lea.vmem %s226_s17, 640  ;;  %p4397_p6 = scmp.lt.s32.totalorder %s226_s17, %s226_s17 }
  0x4f   : > { %p4390_p13 = scmp.ne.s32.totalorder %s226_s17, %s4389_s12  ;;  %p4398_p10 = scmp.lt.s32.totalorder %s4389_s12, %s4389_s12 }
  0x51   : > { %p4392_p1 = pnand %p4390_p13, %p4616_p2  ;;  %p4399_p12 = por %p4398_p10, %p4397_p6 }
  0x53   : > { %p4393_p3 = pneg %p4392_p1 }
  0x55   : > { %p4400_p5 = pnand %p4399_p12, %p4393_p3 }
  0x57   : > { %4403 = shalt.err (!%p4400_p5)
}
  0x58   : > { %3599 = dma.hbm_to_vmem [thread:$0]  (!%p4600_p0), %s5962_s5, 640, %s226_s17, [#allocation7], %s4479_s18, %s4479_s18, %s4480_s19  }
  0x59   : > { %p3229_p11 = scmp.ge.s32.totalorder %s4474_s24, 2 }
  0x5a   : > { %p6008_p2 = scmp.ne.s32.totalorder (!%p3229_p11), %s6001_s7, 0 }
  0x5b   : > { %235 = sbr.rel (%p3229_p11) target bundleno = 109 (0x6d), region = 36 }
  0x62   : > { %238 = sbr.rel (!%p6008_p2) target bundleno = 109 (0x6d), region = 40  ;;  %s240_s29 = sand.u32 (%p6008_p2), 1, %s4470_s23  }
  0x63   : > { %s3412_s30 = sshll.u32 (%p6008_p2), %s4474_s24, 5  ;;  %s3574_s13 = smul.u32 (%p6008_p2), 96, %s240_s29 }
  0x64   : > { %s245_s26 = scalar_lea.vmem (%p6008_p2), %s5957_s0, %s3412_s30 }
  0x65   : > { %v258_v0 = vld [vmem:[%s245_s26] sm:$0xff] (%p6008_p2)  ;;  %v260_v1 = vld [vmem:[%s245_s26 + $0x8] sm:$0xff] (%p6008_p2)  ;;  %v262_v2 = vld [vmem:[%s245_s26 + $0x10] sm:$0xff] (%p6008_p2)  ;;  %s242_s17 = scalar_lea.vmem (%p6008_p2), [#allocation2], %s3574_s13 }
  0x66   : > { %v264_v3 = vld [vmem:[%s245_s26 + $0x18] sm:$0xff] (%p6008_p2)  ;;  %v266_v4 = vld [vmem:[%s245_s26 + $0x40] sm:$0xff] (%p6008_p2)  ;;  %v268_v5 = vld [vmem:[%s245_s26 + $0x48] sm:$0xff] (%p6008_p2)  ;;  %259 = vst [vmem:[%s242_s17] sm:$0xff] (%p6008_p2), %v258_v0 }
  0x67   : > { %261 = vst [vmem:[%s242_s17 + $0x8] sm:$0xff] (%p6008_p2), %v260_v1  ;;  %263 = vst [vmem:[%s242_s17 + $0x10] sm:$0xff] (%p6008_p2), %v262_v2  ;;  %v270_v6 = vld [vmem:[%s245_s26 + $0x50] sm:$0xff] (%p6008_p2)  ;;  %v272_v7 = vld [vmem:[%s245_s26 + $0x58] sm:$0xff] (%p6008_p2) }
  0x68   : > { %265 = vst [vmem:[%s242_s17 + $0x18] sm:$0xff] (%p6008_p2), %v264_v3  ;;  %267 = vst [vmem:[%s242_s17 + $0x20] sm:$0xff] (%p6008_p2), %v266_v4  ;;  %v274_v8 = vld [vmem:[%s245_s26 + $0x80] sm:$0xff] (%p6008_p2)  ;;  %v276_v9 = vld [vmem:[%s245_s26 + $0x88] sm:$0xff] (%p6008_p2) }
  0x69   : > { %269 = vst [vmem:[%s242_s17 + $0x28] sm:$0xff] %v268_v5  ;;  %271 = vst [vmem:[%s242_s17 + $0x30] sm:$0xff] %v270_v6  ;;  %v278_v10 = vld [vmem:[%s245_s26 + $0x90] sm:$0xff]  ;;  %v280_v11 = vld [vmem:[%s245_s26 + $0x98] sm:$0xff] }
  0x6a   : > { %273 = vst [vmem:[%s242_s17 + $0x38] sm:$0xff] %v272_v7  ;;  %275 = vst [vmem:[%s242_s17 + $0x40] sm:$0xff] %v274_v8 }
  0x6b   : > { %277 = vst [vmem:[%s242_s17 + $0x48] sm:$0xff] %v276_v9  ;;  %279 = vst [vmem:[%s242_s17 + $0x50] sm:$0xff] %v278_v10 }
  0x6c   : > { %281 = vst [vmem:[%s242_s17 + $0x58] sm:$0xff] %v280_v11 }
  0x6d PF: > { %p6009_p5 = scmp.ne.s32.totalorder %s6005_s10, 0 }
  0x6f   : > { %290 = sbr.rel (%p6009_p5) target bundleno = 1424 (0x590), region = 63 }
  0x76   : > { %s4698_s7 = sand.u32 1, %s4466_s22   ;;  %p6010_p12 = scmp.eq.s32.totalorder %s4557_s25, 0 }
  0x77   : > { %s3575_s18 = smul.u32 96, %s4698_s7 }
  0x79   : > { %s4701_s19 = scalar_lea.vmem [#allocation2], %s3575_s18 }
  0x7a   : > { %4449 = dma.done.wait (%p6010_p12), [#allocation4], 128   ;;  %p6011_p0 = pmov %p6010_p12 }
  0x7c   : > { %4451 = vsyncadd (%p6011_p0), [#allocation4], 4294967168  ;;  %p6012_p4 = pmov %p6011_p0 }
  0x7d   : > { %p6013_p7 = pmov %p6011_p0 }
  0x7e   : > { %4453 = dma.done.wait (%p6012_p4), [#allocation7], 2688  }
  0x7f   : > { %4455 = vsyncadd (%p6013_p7), [#allocation7], 4294964608  ;;  %v5970_v12 = vmov 0.0   ;;  %v336_v13 = vld [vmem:[%s4701_s19] sm:$0xff]  ;;  %v337_v14 = vld [vmem:[%s4701_s19 + $0x8] sm:$0xff]  ;;  %v420_v45 = vlaneseq  ;;  %vm855_vm8 = vcmask 523264  }
  0x80   : > { %968 = vmatprep.mubr.f32.mxu0 %v5970_v12  ;;  %1129 = vmatprep.mubr.f32.mxu1 %v5970_v12  ;;  %v338_v15 = vld [vmem:[%s4701_s19 + $0x10] sm:$0xff]  ;;  %v339_v16 = vld [vmem:[%s4701_s19 + $0x18] sm:$0xff]  ;;  %v3237_v17 = vld [vmem:[%s4701_s19 + $0x20] sm:$0xff]  ;;  %v352_v19 = vmul.f32 %v336_v13, %v336_v13  ;;  %v353_v20 = vmul.f32 %v337_v14, %v337_v14  ;;  %v4482_v46 = vmov 1966171168   ;;  %vm2944_vm13 = vcmask 64512  }
  0x81   : > { %v3238_v18 = vld [vmem:[%s4701_s19 + $0x28] sm:$0xff]  ;;  %v354_v21 = vmul.f32 %v338_v15, %v338_v15  ;;  %v3239_v22 = vld [vmem:[%s4701_s19 + $0x30] sm:$0xff]  ;;  %v3240_v23 = vld [vmem:[%s4701_s19 + $0x38] sm:$0xff]  ;;  %v355_v25 = vmul.f32 %v339_v16, %v339_v16  ;;  %v356_v26 = vmul.f32 %v3237_v17, %v3237_v17  ;;  %v432_v47 = vunpack.c.l.s4 %v4482_v46  ;;  %s3236_s28 = sshll.u32 %s4698_s7, 3  ;;  %s3413_s11 = sshll.u32 %s4557_s25, 7 }
  0x82   : > { %v3241_v24 = vld [vmem:[%s4701_s19 + $0x40] sm:$0xff]  ;;  %v357_v27 = vmul.f32 %v3238_v18, %v3238_v18  ;;  %v3242_v28 = vld [vmem:[%s4701_s19 + $0x48] sm:$0xff]  ;;  %v3243_v29 = vld [vmem:[%s4701_s19 + $0x50] sm:$0xff]  ;;  %v358_v31 = vmul.f32 %v3239_v22, %v3239_v22  ;;  %v359_v32 = vmul.f32 %v3240_v23, %v3240_v23  ;;  %v4737_v48 = vshrl.u32 %v420_v45, 7  ;;  %s333_s14 = scalar_lea.vmem [#allocation9], %s3236_s28  ;;  %s5913_s27 = scalar_lea.hbm %s5963_s6, %s3413_s11 }
  0x83   : > { %v3244_v30 = vld [vmem:[%s4701_s19 + $0x58] sm:$0xff]  ;;  %v364_v33 = vmul.f32 %v3241_v24, %v3241_v24  ;;  %v360_v34 = vadd.f32 %v356_v26, %v352_v19  ;;  %v365_v36 = vmul.f32 %v3242_v28, %v3242_v28  ;;  %v366_v37 = vmul.f32 %v3243_v29, %v3243_v29  ;;  %s3128_s16 = sshll.u32 %s333_s14, 4  ;;  %s3114_s29 = scalar_lea.sflag [#allocation5], %s4698_s7  ;;  %s5915_s16 = int_to_ptr.vmem [resolvable:$true] %s3128_s16 }
  0x84   : > { %v361_v35 = vadd.f32 %v357_v27, %v353_v20  ;;  %v362_v38 = vadd.f32 %v358_v31, %v354_v21  ;;  %v363_v39 = vadd.f32 %v359_v32, %v355_v25  ;;  %v367_v40 = vmul.f32 %v3244_v30, %v3244_v30  ;;  %6018 = vst [vmem:[#allocation20_spill] sm:$0xff] %v4737_v48  ;;  %s4404_s30 = scalar_lea.vmem %s5915_s16, 128  ;;  %p6062_p9 = scmp.ne.s32.totalorder %s6002_s8, 0 }
  0x85   : > { %v4725_v41 = vadd.f32 %v364_v33, %v360_v34  ;;  %v433_v51 = vunpack.c.0.s8 %v432_v47  ;;  %v4793_v24 = vsub.s32 1, %v4737_v48  ;;  %v4796_v25 = vsub.s32 3, %v4737_v48  ;;  %p4405_p8 = scmp.ne.s32.totalorder %s5915_s16, %s4404_s30  ;;  %s4500_s25 = smov [#allocation9]  }
  0x86   : > { %v4727_v42 = vadd.f32 %v365_v36, %v361_v35  ;;  %v4729_v43 = vadd.f32 %v366_v37, %v362_v38  ;;  %v4731_v44 = vadd.f32 %v367_v40, %v363_v39  ;;  %v4803_v30 = vcvt.s32.f32 %v4737_v48  ;;  %s4408_s13 = sshll.u32 %s4500_s25, 4  ;;  %s4409_s13 = int_to_ptr.vmem [resolvable:$false] %s4408_s13 }
  0x87   : > { %6014 = vst [vmem:[#allocation16_spill] sm:$0xff] %v4725_v41  ;;  %3684 = vrsqrt.f32 %v4725_v41  ;;  %vm374_vm0 = vcmp.eq.f32.partialorder %v4725_v41, inf  ;;  %vm376_vm1 = vcmp.eq.f32.partialorder %v4725_v41, 0.0  ;;  %v377_v50 = vand.u32 2147483648, %v4725_v41  ;;  %p4406_p13 = pnand %p4405_p8, %p6062_p9  ;;  %s4410_s9 = scalar_lea.vmem %s4409_s13, 256 }
  0x88   : > { %6015 = vst [vmem:[#allocation17_spill] sm:$0xff] %v4727_v42  ;;  %6016 = vst [vmem:[#allocation18_spill] sm:$0xff] %v4729_v43  ;;  %3686 = vrsqrt.f32 %v4727_v42  ;;  %vm381_vm2 = vcmp.eq.f32.partialorder %v4727_v42, inf  ;;  %vm383_vm3 = vcmp.eq.f32.partialorder %v4727_v42, 0.0  ;;  %v384_v54 = vand.u32 2147483648, %v4727_v42  ;;  %p4411_p3 = scmp.lt.s32.totalorder %s5915_s16, %s4409_s13  ;;  %p4412_p6 = scmp.lt.s32.totalorder %s4410_s9, %s4404_s30 }
  0x89   : > { %6017 = vst [vmem:[#allocation19_spill] sm:$0xff] %v4731_v44  ;;  %3688 = vrsqrt.f32 %v4729_v43  ;;  %vm388_vm4 = vcmp.eq.f32.partialorder %v4729_v43, inf  ;;  %vm390_vm5 = vcmp.eq.f32.partialorder %v4729_v43, 0.0  ;;  %v391_v57 = vand.u32 2147483648, %v4729_v43  ;;  %p4407_p1 = pneg %p4406_p13 }
  0x8a   : > { %3690 = vrsqrt.f32 %v4731_v44  ;;  %vm395_vm6 = vcmp.eq.f32.partialorder %v4731_v44, inf  ;;  %v398_v61 = vand.u32 2147483648, %v4731_v44  ;;  %vm397_vm7 = vcmp.eq.f32.partialorder %v4731_v44, 0.0  ;;  %p4413_p10 = por %p4412_p6, %p4411_p3 }
  0x8b   : > { %v436_v7 = vsub.s32 %v433_v51, %v4737_v48  ;;  %v4806_v31 = vsub.s32 0, %v4737_v48  ;;  %v4809_v32 = vsub.s32 2, %v4737_v48 }
  0x8c   : > { %p4414_p2 = pnand %p4413_p10, %p4407_p1 }
  0x91   : > { %v3685_v49 = vpop.eup %3684 }
  0x92   : > { %v3687_v52 = vpop.eup %3686  ;;  %v373_v53 = vmul.f32 %v3685_v49, %v4725_v41 }
  0x93   : > { %v3689_v55 = vpop.eup %3688  ;;  %v380_v56 = vmul.f32 %v3687_v52, %v4727_v42 }
  0x94   : > { %v3691_v58 = vpop.eup %3690  ;;  %v375_v59 = vsel %vm374_vm0, %v4725_v41, %v373_v53  ;;  %v387_v60 = vmul.f32 %v3689_v55, %v4729_v43 }
  0x95   : > { %v4756_v62 = vsel %vm376_vm1, %v377_v50, %v375_v59  ;;  %v382_v63 = vsel %vm381_vm2, %v4727_v42, %v380_v56  ;;  %v394_v0 = vmul.f32 %v3691_v58, %v4731_v44 }
  0x96   : > { %6019 = vst [vmem:[#allocation21_spill] sm:$0xff] %v4756_v62  ;;  %v4763_v1 = vsel %vm383_vm3, %v384_v54, %v382_v63  ;;  %v389_v2 = vsel %vm388_vm4, %v4729_v43, %v387_v60  ;;  %v4767_v3 = vadd.f32 1e-08, %v4756_v62 }
  0x97   : > { %6020 = vst [vmem:[#allocation22_spill] sm:$0xff] %v4763_v1  ;;  %v4769_v4 = vsel %vm390_vm5, %v391_v57, %v389_v2  ;;  %v396_v5 = vsel %vm395_vm6, %v4731_v44, %v394_v0  ;;  %v4773_v6 = vadd.f32 1e-08, %v4763_v1 }
  0x98   : > { %6021 = vst [vmem:[#allocation23_spill] sm:$0xff] %v4767_v3  ;;  %6022 = vst [vmem:[#allocation24_spill] sm:$0xff] %v4769_v4  ;;  %v4776_v8 = vsel %vm397_vm7, %v398_v61, %v396_v5  ;;  %v4779_v9 = vadd.f32 1e-08, %v4769_v4 }
  0x99   : > { %6023 = vst [vmem:[#allocation25_spill] sm:$0xff] %v4773_v6  ;;  %6024 = vst [vmem:[#allocation26_spill] sm:$0xff] %v4776_v8  ;;  %v4782_v10 = vadd.f32 1e-08, %v4776_v8  ;;  %v427_v11 = vcombine.low %v4767_v3, %v4773_v6  ;;  %v428_v13 = vcombine.high %v4767_v3, %v4773_v6 }
  0x9a   : > { %6025 = vst [vmem:[#allocation27_spill] sm:$0xff] %v4779_v9 }
  0x9b   : > { %6026 = vst [vmem:[#allocation28_spill] sm:$0xff] %v4782_v10  ;;  %v429_v14 = vcombine.low %v4779_v9, %v4782_v10  ;;  %v437_v15 = vrot.slane %v427_v11, %v436_v7  ;;  %v430_v16 = vcombine.high %v4779_v9, %v4782_v10  ;;  %v444_v17 = vrot.slane %v428_v13, %v436_v7 }
  0x9d   : > { %v451_v18 = vrot.slane %v429_v14, %v436_v7  ;;  %v458_v19 = vrot.slane %v430_v16, %v436_v7 }
  0x9f   : > { %v459_v20 = vcombine.low %v437_v15, %v451_v18  ;;  %v460_v21 = vcombine.high %v437_v15, %v451_v18  ;;  %v461_v22 = vcombine.low %v444_v17, %v458_v19  ;;  %v462_v23 = vcombine.high %v444_v17, %v458_v19 }
  0xa1   : > { %v469_v26 = vrot.slane %v459_v20, %v436_v7  ;;  %v483_v27 = vrot.slane %v460_v21, %v436_v7  ;;  %v4798_v28 = vrot.slane %v461_v22, %v436_v7  ;;  %v4800_v29 = vrot.slane %v462_v23, %v436_v7 }
  0xa3   : > { %v491_v33 = vcombine.high %v469_v26, %v469_v26  ;;  %v493_v34 = vcombine.high %v483_v27, %v483_v27  ;;  %v503_v35 = vmul.f32 2.3333333, %v469_v26  ;;  %v504_v36 = vmul.f32 2.3333333, %v483_v27 }
  0xa4   : > { %v4812_v37 = vmul.f32 2.3333333, %v4798_v28  ;;  %v4815_v38 = vmul.f32 2.3333333, %v4800_v29  ;;  %v492_v39 = vcombine.high %v4798_v28, %v4798_v28  ;;  %v494_v40 = vcombine.high %v4800_v29, %v4800_v29 }
  0xa5   : > { %v526_v45 = vrot.slane %v503_v35, %v4793_v24  ;;  %v542_v46 = vrot.slane %v504_v36, %v4793_v24  ;;  %v534_v47 = vrot.slane %v503_v35, %v4796_v25  ;;  %v550_v49 = vrot.slane %v504_v36, %v4796_v25 }
  0xa6   : > { %v522_v50 = vrot.slane %v503_v35, %v4806_v31  ;;  %v538_v51 = vrot.slane %v504_v36, %v4806_v31  ;;  %v530_v52 = vrot.slane %v503_v35, %v4809_v32  ;;  %v546_v53 = vrot.slane %v504_v36, %v4809_v32 }
  0xa7   : > { %v680_v54 = vsub.f32 %v526_v45, %v4803_v30  ;;  %v684_v55 = vsub.f32 %v542_v46, %v4803_v30  ;;  %v682_v56 = vsub.f32 %v534_v47, %v4803_v30  ;;  %v686_v57 = vsub.f32 %v550_v49, %v4803_v30 }
  0xa8   : > { %v679_v58 = vsub.f32 %v522_v50, %v4803_v30  ;;  %v683_v59 = vsub.f32 %v538_v51, %v4803_v30  ;;  %v681_v60 = vsub.f32 %v530_v52, %v4803_v30  ;;  %v685_v61 = vsub.f32 %v546_v53, %v4803_v30 }
  0xa9   : > { %v712_v63 = vsub.f32 0.0, %v680_v54  ;;  %v716_v0 = vsub.f32 0.0, %v684_v55  ;;  %v714_v2 = vsub.f32 0.0, %v682_v56  ;;  %v718_v5 = vsub.f32 0.0, %v686_v57 }
  0xaa   : > { %v711_v7 = vsub.f32 0.0, %v679_v58  ;;  %v715_v11 = vsub.f32 0.0, %v683_v59  ;;  %v713_v13 = vsub.f32 0.0, %v681_v60  ;;  %v717_v14 = vsub.f32 0.0, %v685_v61 }
  0xab   : > { %v744_v15 = vmul.f32 %v712_v63, %v680_v54  ;;  %v748_v16 = vmul.f32 %v716_v0, %v684_v55  ;;  %v746_v17 = vmul.f32 %v714_v2, %v682_v56  ;;  %v750_v18 = vmul.f32 %v718_v5, %v686_v57 }
  0xac   : > { %v743_v19 = vmul.f32 %v711_v7, %v679_v58  ;;  %v747_v20 = vmul.f32 %v715_v11, %v683_v59  ;;  %v745_v21 = vmul.f32 %v713_v13, %v681_v60  ;;  %v749_v22 = vmul.f32 %v717_v14, %v685_v61 }
  0xad   : > { %v777_v23 = vmul.f32 1.442695, %v744_v15  ;;  %v785_v26 = vmul.f32 1.442695, %v748_v16  ;;  %v781_v27 = vmul.f32 1.442695, %v746_v17  ;;  %v590_v35 = vrot.slane %v4812_v37, %v4793_v24 }
  0xae   : > { %v789_v36 = vmul.f32 1.442695, %v750_v18  ;;  %v775_v45 = vmul.f32 1.442695, %v743_v19  ;;  %v783_v46 = vmul.f32 1.442695, %v747_v20  ;;  %v606_v47 = vrot.slane %v4815_v38, %v4793_v24 }
  0xaf   : > { %3692 = vpow2.f32 %v777_v23  ;;  %v779_v49 = vmul.f32 1.442695, %v745_v21  ;;  %v787_v50 = vmul.f32 1.442695, %v749_v22  ;;  %v505_v51 = vmul.f32 2.3333333, %v491_v33 }
  0xb0   : > { %3694 = vpow2.f32 %v785_v26  ;;  %v506_v52 = vmul.f32 2.3333333, %v493_v34  ;;  %v696_v53 = vsub.f32 %v590_v35, %v4803_v30  ;;  %v700_v54 = vsub.f32 %v606_v47, %v4803_v30 }
  0xb1   : > { %3696 = vpow2.f32 %v781_v27  ;;  %v558_v55 = vrot.slane %v505_v51, %v4793_v24  ;;  %v566_v56 = vrot.slane %v505_v51, %v4796_v25  ;;  %v554_v57 = vrot.slane %v505_v51, %v4806_v31 }
  0xb2   : > { %3698 = vpow2.f32 %v789_v36  ;;  %v574_v58 = vrot.slane %v506_v52, %v4793_v24  ;;  %v582_v59 = vrot.slane %v506_v52, %v4796_v25  ;;  %v570_v33 = vrot.slane %v506_v52, %v4806_v31 }
  0xb3   : > { %3700 = vpow2.f32 %v775_v45  ;;  %v688_v34 = vsub.f32 %v558_v55, %v4803_v30  ;;  %v690_v60 = vsub.f32 %v566_v56, %v4803_v30  ;;  %v687_v61 = vsub.f32 %v554_v57, %v4803_v30 }
  0xb4   : > { %3702 = vpow2.f32 %v783_v46  ;;  %v692_v63 = vsub.f32 %v574_v58, %v4803_v30  ;;  %v694_v0 = vsub.f32 %v582_v59, %v4803_v30  ;;  %v691_v2 = vsub.f32 %v570_v33, %v4803_v30 }
  0xb5   : > { %3704 = vpow2.f32 %v779_v49  ;;  %v720_v5 = vsub.f32 0.0, %v688_v34  ;;  %v722_v7 = vsub.f32 0.0, %v690_v60  ;;  %v719_v11 = vsub.f32 0.0, %v687_v61 }
  0xb6   : > { %3706 = vpow2.f32 %v787_v50  ;;  %v724_v13 = vsub.f32 0.0, %v692_v63  ;;  %v726_v14 = vsub.f32 0.0, %v694_v0  ;;  %v723_v15 = vsub.f32 0.0, %v691_v2 }
  0xb7   : > { %v752_v16 = vmul.f32 %v720_v5, %v688_v34  ;;  %v754_v17 = vmul.f32 %v722_v7, %v690_v60  ;;  %v751_v18 = vmul.f32 %v719_v11, %v687_v61  ;;  %v562_v19 = vrot.slane %v505_v51, %v4809_v32 }
  0xb8   : > { %v756_v20 = vmul.f32 %v724_v13, %v692_v63  ;;  %v758_v21 = vmul.f32 %v726_v14, %v694_v0  ;;  %v755_v22 = vmul.f32 %v723_v15, %v691_v2  ;;  %v578_v23 = vrot.slane %v506_v52, %v4809_v32 }
  0xb9   : > { %v3693_v26 = vpop.eup %3692  ;;  %v793_v27 = vmul.f32 1.442695, %v752_v16  ;;  %v797_v35 = vmul.f32 1.442695, %v754_v17  ;;  %v791_v36 = vmul.f32 1.442695, %v751_v18  ;;  %v689_v45 = vsub.f32 %v562_v19, %v4803_v30 }
  0xba   : > { %v3695_v46 = vpop.eup %3694  ;;  %v801_v47 = vmul.f32 1.442695, %v756_v20  ;;  %v805_v49 = vmul.f32 1.442695, %v758_v21  ;;  %v799_v50 = vmul.f32 1.442695, %v755_v22  ;;  %v693_v55 = vsub.f32 %v578_v23, %v4803_v30 }
  0xbb   : > { %v3697_v56 = vpop.eup %3696  ;;  %v3414_v57 = vpack.c.bf16 %v3695_v46, %v3693_v26  ;;  %3708 = vpow2.f32 %v793_v27  ;;  %v721_v51 = vsub.f32 0.0, %v689_v45  ;;  %v728_v58 = vsub.f32 0.0, %v696_v53 }
  0xbc   : > { %v3699_v59 = vpop.eup %3698  ;;  %3710 = vpow2.f32 %v801_v47  ;;  %v725_v52 = vsub.f32 0.0, %v693_v55  ;;  %v732_v33 = vsub.f32 0.0, %v700_v54  ;;  %v598_v34 = vrot.slane %v4812_v37, %v4796_v25 }
  0xbd   : > { %v3701_v60 = vpop.eup %3700  ;;  %3415 = vmatprep.subr.bf16.mxu0 %v3414_v57  ;;  %v3430_v61 = vpack.c.bf16 %v3699_v59, %v3697_v56  ;;  %3712 = vpow2.f32 %v797_v35  ;;  %v753_v63 = vmul.f32 %v721_v51, %v689_v45  ;;  %v760_v0 = vmul.f32 %v728_v58, %v696_v53 }
  0xbe   : > { %v3703_v2 = vpop.eup %3702  ;;  %3714 = vpow2.f32 %v805_v49  ;;  %v757_v5 = vmul.f32 %v725_v52, %v693_v55  ;;  %v764_v7 = vmul.f32 %v732_v33, %v700_v54  ;;  %v614_v11 = vrot.slane %v4815_v38, %v4796_v25 }
  0xbf   : > { %v3705_v13 = vpop.eup %3704  ;;  %3431 = vmatprep.subr.bf16.mxu1 %v3430_v61  ;;  %v3416_v14 = vpack.c.bf16 %v3703_v2, %v3701_v60  ;;  %3716 = vpow2.f32 %v791_v36  ;;  %v795_v15 = vmul.f32 1.442695, %v753_v63  ;;  %v809_v16 = vmul.f32 1.442695, %v760_v0 }
  0xc0   : > { %v3707_v17 = vpop.eup %3706  ;;  %3718 = vpow2.f32 %v799_v50  ;;  %v803_v18 = vmul.f32 1.442695, %v757_v5  ;;  %v817_v19 = vmul.f32 1.442695, %v764_v7  ;;  %v698_v20 = vsub.f32 %v598_v34, %v4803_v30 }
  0xc1   : > { %3417 = vmatpush1.bf16.msra.mxu0 %v3416_v14  ;;  %v3432_v53 = vpack.c.bf16 %v3707_v17, %v3705_v13  ;;  %3720 = vpow2.f32 %v795_v15  ;;  %v702_v54 = vsub.f32 %v614_v11, %v4803_v30  ;;  %v586_v21 = vrot.slane %v4812_v37, %v4806_v31 }
  0xc2   : > { %3722 = vpow2.f32 %v803_v18  ;;  %v730_v22 = vsub.f32 0.0, %v698_v20  ;;  %v602_v23 = vrot.slane %v4815_v38, %v4806_v31  ;;  %v594_v26 = vrot.slane %v4812_v37, %v4809_v32 }
  0xc3   : > { %3433 = vmatpush1.bf16.msra.mxu1 %v3432_v53  ;;  %3724 = vpow2.f32 %v809_v16  ;;  %v734_v27 = vsub.f32 0.0, %v702_v54  ;;  %v695_v35 = vsub.f32 %v586_v21, %v4803_v30  ;;  %v610_v36 = vrot.slane %v4815_v38, %v4809_v32 }
  0xc4   : > { %3726 = vpow2.f32 %v817_v19  ;;  %v762_v45 = vmul.f32 %v730_v22, %v698_v20  ;;  %v699_v46 = vsub.f32 %v602_v23, %v4803_v30  ;;  %v697_v47 = vsub.f32 %v594_v26, %v4803_v30 }
  0xc5   : > { %v3709_v49 = vpop.eup %3708  ;;  %v766_v50 = vmul.f32 %v734_v27, %v702_v54  ;;  %v727_v55 = vsub.f32 0.0, %v695_v35  ;;  %v701_v56 = vsub.f32 %v610_v36, %v4803_v30  ;;  %v4880_v37 = vmul.f32 2.3333333, %v492_v39 }
  0xc6   : > { %v3711_v57 = vpop.eup %3710  ;;  %v813_v51 = vmul.f32 1.442695, %v762_v45  ;;  %v731_v58 = vsub.f32 0.0, %v699_v46  ;;  %v729_v38 = vsub.f32 0.0, %v697_v47  ;;  %v4885_v59 = vmul.f32 2.3333333, %v494_v40 }
  0xc7   : > { %v3713_v52 = vpop.eup %3712  ;;  %v3418_v33 = vpack.c.bf16 %v3711_v57, %v3709_v49  ;;  %v821_v34 = vmul.f32 1.442695, %v766_v50  ;;  %v759_v60 = vmul.f32 %v727_v55, %v695_v35  ;;  %v733_v61 = vsub.f32 0.0, %v701_v56 }
  0xc8   : > { %v3715_v63 = vpop.eup %3714  ;;  %3728 = vpow2.f32 %v813_v51  ;;  %v763_v0 = vmul.f32 %v731_v58, %v699_v46  ;;  %v761_v28 = vmul.f32 %v729_v38, %v697_v47  ;;  %v622_v39 = vrot.slane %v4880_v37, %v4793_v24 }
  0xc9   : > { %v3717_v2 = vpop.eup %3716  ;;  %3419 = vmatprep.subr.bf16.mxu0 %v3418_v33  ;;  %v3434_v5 = vpack.c.bf16 %v3715_v63, %v3713_v52  ;;  %3730 = vpow2.f32 %v821_v34  ;;  %v807_v7 = vmul.f32 1.442695, %v759_v60  ;;  %v765_v29 = vmul.f32 %v733_v61, %v701_v56 }
  0xca   : > { %v3719_v40 = vpop.eup %3718  ;;  %v815_v11 = vmul.f32 1.442695, %v763_v0  ;;  %v811_v13 = vmul.f32 1.442695, %v761_v28  ;;  %v638_v14 = vrot.slane %v4885_v59, %v4793_v24  ;;  %v704_v15 = vsub.f32 %v622_v39, %v4803_v30 }
  0xcb   : > { %v3721_v16 = vpop.eup %3720  ;;  %3435 = vmatprep.subr.bf16.mxu1 %v3434_v5  ;;  %v3420_v17 = vpack.c.bf16 %v3719_v40, %v3717_v2  ;;  %3732 = vpow2.f32 %v807_v7  ;;  %v819_v18 = vmul.f32 1.442695, %v765_v29  ;;  %v630_v19 = vrot.slane %v4880_v37, %v4796_v25 }
  0xcc   : > { %v3723_v20 = vpop.eup %3722  ;;  %3734 = vpow2.f32 %v815_v11  ;;  %v708_v53 = vsub.f32 %v638_v14, %v4803_v30  ;;  %v736_v54 = vsub.f32 0.0, %v704_v15  ;;  %v646_v21 = vrot.slane %v4885_v59, %v4796_v25 }
  0xcd   : > { %v3725_v22 = vpop.eup %3724  ;;  %3421 = vmatpush1.bf16.msra.mxu0 %v3420_v17  ;;  %v3436_v24 = vpack.c.bf16 %v3723_v20, %v3721_v16  ;;  %3736 = vpow2.f32 %v811_v13  ;;  %v706_v23 = vsub.f32 %v630_v19, %v4803_v30  ;;  %v618_v26 = vrot.slane %v4880_v37, %v4806_v31 }
  0xce   : > { %v3727_v27 = vpop.eup %3726  ;;  %3738 = vpow2.f32 %v819_v18  ;;  %v740_v35 = vsub.f32 0.0, %v708_v53  ;;  %v768_v36 = vmul.f32 %v736_v54, %v704_v15  ;;  %v710_v45 = vsub.f32 %v646_v21, %v4803_v30 }
  0xcf   : > { %3437 = vmatpush1.bf16.msra.mxu1 %v3436_v24  ;;  %v3422_v46 = vpack.c.bf16 %v3727_v27, %v3725_v22  ;;  %v738_v47 = vsub.f32 0.0, %v706_v23  ;;  %v634_v25 = vrot.slane %v4885_v59, %v4806_v31  ;;  %v703_v49 = vsub.f32 %v618_v26, %v4803_v30 }
  0xd0   : > { %v772_v50 = vmul.f32 %v740_v35, %v708_v53  ;;  %v825_v55 = vmul.f32 1.442695, %v768_v36  ;;  %v742_v56 = vsub.f32 0.0, %v710_v45  ;;  %v626_v57 = vrot.slane %v4880_v37, %v4809_v32 }
  0xd1   : > { %3423 = vmatprep.subr.bf16.mxu0 %v3422_v46  ;;  %v770_v51 = vmul.f32 %v738_v47, %v706_v23  ;;  %v707_v58 = vsub.f32 %v634_v25, %v4803_v30  ;;  %v735_v38 = vsub.f32 0.0, %v703_v49  ;;  %v642_v52 = vrot.slane %v4885_v59, %v4809_v32  ;;  %v839_v46 = vld [vmem:[%s5960_s3] sm:$0xff]  ;;  %v840_v47 = vld [vmem:[%s5960_s3 + $0x8] sm:$0xff]  ;;  %v841_v25 = vld [vmem:[%s5960_s3 + $0x10] sm:$0xff] }
  0xd2   : > { %v3729_v33 = vpop.eup %3728  ;;  %3740 = vpow2.f32 %v825_v55  ;;  %v833_v34 = vmul.f32 1.442695, %v772_v50  ;;  %v774_v31 = vmul.f32 %v742_v56, %v710_v45  ;;  %v705_v60 = vsub.f32 %v626_v57, %v4803_v30  ;;  %v843_v50 = vld [vmem:[%s5960_s3 + $0x20] sm:$0xff]  ;;  %v844_v55 = vld [vmem:[%s5960_s3 + $0x28] sm:$0xff]  ;;  %v845_v56 = vld [vmem:[%s5960_s3 + $0x30] sm:$0xff] }
  0xd3   : > { %v3731_v61 = vpop.eup %3730  ;;  %v829_v63 = vmul.f32 1.442695, %v770_v51  ;;  %v739_v0 = vsub.f32 0.0, %v707_v58  ;;  %v767_v28 = vmul.f32 %v735_v38, %v703_v49  ;;  %v709_v37 = vsub.f32 %v642_v52, %v4803_v30  ;;  %v842_v49 = vld [vmem:[%s5960_s3 + $0x18] sm:$0xff]  ;;  %v847_v51 = vld [vmem:[%s5960_s3 + $0x40] sm:$0xff]  ;;  %v849_v38 = vld [vmem:[%s5960_s3 + $0x50] sm:$0xff] }
  0xd4   : > { %v3438_v39 = vpack.c.bf16 %v3731_v61, %v3729_v33  ;;  %3742 = vpow2.f32 %v833_v34  ;;  %v837_v2 = vmul.f32 1.442695, %v774_v31  ;;  %v737_v5 = vsub.f32 0.0, %v705_v60  ;;  %v846_v57 = vld [vmem:[%s5960_s3 + $0x38] sm:$0xff]  ;;  %v851_v33 = vld [vmem:[%s5960_s3 + $0x60] sm:$0xff]  ;;  %v852_v34 = vld [vmem:[%s5960_s3 + $0x68] sm:$0xff] }
  0xd5   : > { %v3733_v7 = vpop.eup %3732  ;;  %3744 = vpow2.f32 %v829_v63  ;;  %v771_v29 = vmul.f32 %v739_v0, %v707_v58  ;;  %v823_v32 = vmul.f32 1.442695, %v767_v28  ;;  %v741_v59 = vsub.f32 0.0, %v709_v37  ;;  %v848_v58 = vld [vmem:[%s5960_s3 + $0x48] sm:$0xff]  ;;  %v850_v52 = vld [vmem:[%s5960_s3 + $0x58] sm:$0xff]  ;;  %v853_v31 = vld [vmem:[%s5960_s3 + $0x70] sm:$0xff] }
  0xd6   : > { %v3735_v40 = vpop.eup %3734  ;;  %3439 = vmatprep.subr.bf16.mxu1 %v3438_v39  ;;  %3746 = vpow2.f32 %v837_v2  ;;  %v769_v11 = vmul.f32 %v737_v5, %v705_v60  ;;  %v854_v60 = vld [vmem:[%s5960_s3 + $0x78] sm:$0xff] }
  0xd7   : > { %v3737_v13 = vpop.eup %3736  ;;  %v3424_v14 = vpack.c.bf16 %v3735_v40, %v3733_v7  ;;  %3748 = vpow2.f32 %v823_v32  ;;  %v831_v15 = vmul.f32 1.442695, %v771_v29  ;;  %v773_v16 = vmul.f32 %v741_v59, %v709_v37 }
  0xd8   : > { %v3739_v17 = vpop.eup %3738  ;;  %v827_v30 = vmul.f32 1.442695, %v769_v11 }
  0xd9   : > { %3425 = vmatpush1.bf16.msra.mxu0 %v3424_v14  ;;  %v3440_v18 = vpack.c.bf16 %v3739_v17, %v3737_v13  ;;  %3750 = vpow2.f32 %v831_v15  ;;  %v835_v19 = vmul.f32 1.442695, %v773_v16 }
  0xda   : > { %3752 = vpow2.f32 %v827_v30 }
  0xdb   : > { %3441 = vmatpush1.bf16.msra.mxu1 %v3440_v18  ;;  %3754 = vpow2.f32 %v835_v19 }
  0xdc   : > { %v3741_v20 = vpop.eup %3740 }
  0xde   : > { %v3743_v53 = vpop.eup %3742 }
  0xdf   : > { %v3745_v54 = vpop.eup %3744  ;;  %v3426_v21 = vpack.c.bf16 %v3743_v53, %v3741_v20 }
  0xe0   : > { %v3747_v22 = vpop.eup %3746 }
  0xe1   : > { %v3749_v24 = vpop.eup %3748  ;;  %3427 = vmatprep.subr.bf16.mxu0 %v3426_v21  ;;  %v3442_v23 = vpack.c.bf16 %v3747_v22, %v3745_v54 }
  0xe3   : > { %v3751_v26 = vpop.eup %3750  ;;  %3443 = vmatprep.subr.bf16.mxu1 %v3442_v23 }
  0xe4   : > { %v3753_v27 = vpop.eup %3752  ;;  %v3428_v35 = vpack.c.bf16 %v3751_v26, %v3749_v24 }
  0xe5   : > { %v3755_v36 = vpop.eup %3754 }
  0xe6   : > { %3429 = vmatpush1.bf16.msra.mxu0 %v3428_v35  ;;  %v3444_v45 = vpack.c.bf16 %v3755_v36, %v3753_v27 }
  0xe8   : > { %3445 = vmatpush1.bf16.msra.mxu1 %v3444_v45 }
  0xe9   : > { %3245 = vmatmul.mubr.msk.f32.vlgmr.msra.gmra.mrb[0].mxu0 %vm855_vm8, %v839_v46 }
  0xea   : > { %974 = vmatprep.mubr.f32.mxu0 %v5970_v12 }
  0xeb   : > { %3261 = vmatmul.mubr.msk.f32.vlgmr.msra.gmra.mrb[0].mxu1 %vm855_vm8, %v839_v46 }
  0xec   : > { %1135 = vmatprep.mubr.f32.mxu1 %v5970_v12 }
  0xed   : > { %3246 = vmatmul.mubr.msk.f32.gmra.mrb[2].mxu0 %vm855_vm8, %v840_v47 }
  0xee   : > { %980 = vmatprep.mubr.f32.mxu0 %v5970_v12 }
  0xef   : > { %3262 = vmatmul.mubr.msk.f32.gmra.mrb[2].mxu1 %vm855_vm8, %v840_v47 }
  0xf0   : > { %1141 = vmatprep.mubr.f32.mxu1 %v5970_v12 }
  0xf1   : > { %3247 = vmatmul.mubr.msk.f32.gmra.mrb[4].mxu0 %vm855_vm8, %v841_v25 }
  0xf2   : > { %986 = vmatprep.mubr.f32.mxu0 %v5970_v12 }
  0xf3   : > { %3263 = vmatmul.mubr.msk.f32.gmra.mrb[4].mxu1 %vm855_vm8, %v841_v25 }
  0xf4   : > { %1147 = vmatprep.mubr.f32.mxu1 %v5970_v12 }
  0xf5   : > { %3248 = vmatmul.mubr.msk.f32.gmra.mrb[6].mxu0 %vm855_vm8, %v842_v49 }
  0xf6   : > { %992 = vmatprep.mubr.f32.mxu0 %v5970_v12 }
  0xf7   : > { %3264 = vmatmul.mubr.msk.f32.gmra.mrb[6].mxu1 %vm855_vm8, %v842_v49 }
  0xf8   : > { %1153 = vmatprep.mubr.f32.mxu1 %v5970_v12 }
  0xf9   : > { %3249 = vmatmul.mubr.msk.f32.gmra.mrb[8].mxu0 %vm855_vm8, %v843_v50 }
  0xfa   : > { %998 = vmatprep.mubr.f32.mxu0 %v5970_v12 }
  0xfb   : > { %3265 = vmatmul.mubr.msk.f32.gmra.mrb[8].mxu1 %vm855_vm8, %v843_v50 }
  0xfc   : > { %1159 = vmatprep.mubr.f32.mxu1 %v5970_v12 }
  0xfd   : > { %3250 = vmatmul.mubr.msk.f32.gmra.mrb[10].mxu0 %vm855_vm8, %v844_v55 }
  0xfe   : > { %1004 = vmatprep.mubr.f32.mxu0 %v5970_v12 }
  0xff   : > { %3266 = vmatmul.mubr.msk.f32.gmra.mrb[10].mxu1 %vm855_vm8, %v844_v55 }
 0x100   : > { %1165 = vmatprep.mubr.f32.mxu1 %v5970_v12 }
 0x101   : > { %3251 = vmatmul.mubr.msk.f32.gmra.mrb[12].mxu0 %vm855_vm8, %v845_v56 }
 0x102   : > { %1010 = vmatprep.mubr.f32.mxu0 %v5970_v12 }
 0x103   : > { %3267 = vmatmul.mubr.msk.f32.gmra.mrb[12].mxu1 %vm855_vm8, %v845_v56 }
 0x104   : > { %1171 = vmatprep.mubr.f32.mxu1 %v5970_v12 }
 0x105   : > { %3252 = vmatmul.mubr.msk.f32.gmra.mrb[14].mxu0 %vm855_vm8, %v846_v57 }
 0x106   : > { %1016 = vmatprep.mubr.f32.mxu0 %v5970_v12 }
 0x107   : > { %3268 = vmatmul.mubr.msk.f32.gmra.mrb[14].mxu1 %vm855_vm8, %v846_v57 }
 0x108   : > { %1177 = vmatprep.mubr.f32.mxu1 %v5970_v12 }
 0x109   : > { %3253 = vmatmul.mubr.msk.f32.gmra.mrb[16].mxu0 %vm855_vm8, %v847_v51 }
 0x10a   : > { %1022 = vmatprep.mubr.f32.mxu0 %v5970_v12 }
 0x10b   : > { %3269 = vmatmul.mubr.msk.f32.gmra.mrb[16].mxu1 %vm855_vm8, %v847_v51 }
 0x10c   : > { %1183 = vmatprep.mubr.f32.mxu1 %v5970_v12 }
 0x10d   : > { %3254 = vmatmul.mubr.msk.f32.gmra.mrb[18].mxu0 %vm855_vm8, %v848_v58 }
 0x10e   : > { %1028 = vmatprep.mubr.f32.mxu0 %v5970_v12 }
 0x10f   : > { %3270 = vmatmul.mubr.msk.f32.gmra.mrb[18].mxu1 %vm855_vm8, %v848_v58 }
 0x110   : > { %1189 = vmatprep.mubr.f32.mxu1 %v5970_v12 }
 0x111   : > { %3255 = vmatmul.mubr.msk.f32.gmra.mrb[20].mxu0 %vm855_vm8, %v849_v38 }
 0x112   : > { %1034 = vmatprep.mubr.f32.mxu0 %v5970_v12 }
 0x113   : > { %3271 = vmatmul.mubr.msk.f32.gmra.mrb[20].mxu1 %vm855_vm8, %v849_v38 }
 0x114   : > { %1195 = vmatprep.mubr.f32.mxu1 %v5970_v12 }
 0x115   : > { %3256 = vmatmul.mubr.msk.f32.gmra.mrb[22].mxu0 %vm855_vm8, %v850_v52 }
 0x116   : > { %1040 = vmatprep.mubr.f32.mxu0 %v5970_v12 }
 0x117   : > { %3272 = vmatmul.mubr.msk.f32.gmra.mrb[22].mxu1 %vm855_vm8, %v850_v52 }
 0x118   : > { %1201 = vmatprep.mubr.f32.mxu1 %v5970_v12 }
 0x119   : > { %3257 = vmatmul.mubr.msk.f32.gmra.mrb[24].mxu0 %vm855_vm8, %v851_v33 }
 0x11a   : > { %1046 = vmatprep.mubr.f32.mxu0 %v5970_v12 }
 0x11b   : > { %3273 = vmatmul.mubr.msk.f32.gmra.mrb[24].mxu1 %vm855_vm8, %v851_v33 }
 0x11c   : > { %1207 = vmatprep.mubr.f32.mxu1 %v5970_v12 }
 0x11d   : > { %3258 = vmatmul.mubr.msk.f32.gmra.mrb[26].mxu0 %vm855_vm8, %v852_v34 }
 0x11e   : > { %1052 = vmatprep.mubr.f32.mxu0 %v5970_v12 }
 0x11f   : > { %3274 = vmatmul.mubr.msk.f32.gmra.mrb[26].mxu1 %vm855_vm8, %v852_v34 }
 0x120   : > { %1213 = vmatprep.mubr.f32.mxu1 %v5970_v12 }
 0x121   : > { %3259 = vmatmul.mubr.msk.f32.gmra.mrb[28].mxu0 %vm855_vm8, %v853_v31 }
 0x122   : > { %1058 = vmatprep.mubr.f32.mxu0 %v5970_v12 }
 0x123   : > { %3275 = vmatmul.mubr.msk.f32.gmra.mrb[28].mxu1 %vm855_vm8, %v853_v31 }
 0x124   : > { %1219 = vmatprep.mubr.f32.mxu1 %v5970_v12 }
 0x125   : > { %3260 = vmatmul.mubr.msk.f32.gmra.mrb[30].mxu0 %vm855_vm8, %v854_v60 }
 0x126   : > { %1754 = vmatprep.mubr.f32.mxu0 %v5970_v12 }
 0x127   : > { %3276 = vmatmul.mubr.msk.f32.gmra.mrb[30].mxu1 %vm855_vm8, %v854_v60 }
 0x128   : > { %1915 = vmatprep.mubr.f32.mxu1 %v5970_v12 }
 0x1bc   : > { %v5023_v61 = vpop.f32.mrb[0].mxu0 }
 0x1bd   : > { %v3277_v63 = vmul.f32 -1.442695, %v5023_v61  ;;  %v5026_v0 = vpop.f32.mrb[1].mxu0 }
 0x1be   : > { %v5028_v28 = vpop.f32.mrb[0].mxu1  ;;  %v3278_v37 = vmul.f32 -1.442695, %v5026_v0 }
 0x1bf   : > { %3756 = vpow2.f32 %v3277_v63  ;;  %v3279_v39 = vmul.f32 -1.442695, %v5028_v28  ;;  %v5032_v2 = vpop.f32.mrb[1].mxu1 }
 0x1c0   : > { %3758 = vpow2.f32 %v3278_v37  ;;  %v3280_v5 = vmul.f32 -1.442695, %v5032_v2  ;;  %v5035_v7 = vpop.f32.mrb[2].mxu0 }
 0x1c1   : > { %3760 = vpow2.f32 %v3279_v39  ;;  %v3281_v29 = vmul.f32 -1.442695, %v5035_v7  ;;  %v5038_v32 = vpop.f32.mrb[3].mxu0 }
 0x1c2   : > { %3762 = vpow2.f32 %v3280_v5  ;;  %v5040_v59 = vpop.f32.mrb[2].mxu1  ;;  %v3282_v40 = vmul.f32 -1.442695, %v5038_v32 }
 0x1c3   : > { %3764 = vpow2.f32 %v3281_v29  ;;  %v3283_v11 = vmul.f32 -1.442695, %v5040_v59  ;;  %v5044_v13 = vpop.f32.mrb[3].mxu1 }
 0x1c4   : > { %3766 = vpow2.f32 %v3282_v40  ;;  %v3284_v14 = vmul.f32 -1.442695, %v5044_v13  ;;  %v5047_v15 = vpop.f32.mrb[4].mxu0 }
 0x1c5   : > { %3768 = vpow2.f32 %v3283_v11  ;;  %v3285_v16 = vmul.f32 -1.442695, %v5047_v15  ;;  %v5050_v17 = vpop.f32.mrb[5].mxu0 }
 0x1c6   : > { %3770 = vpow2.f32 %v3284_v14  ;;  %v5052_v30 = vpop.f32.mrb[4].mxu1  ;;  %v3286_v18 = vmul.f32 -1.442695, %v5050_v17 }
 0x1c7   : > { %3772 = vpow2.f32 %v3285_v16  ;;  %v3287_v19 = vmul.f32 -1.442695, %v5052_v30  ;;  %v5056_v20 = vpop.f32.mrb[5].mxu1 }
 0x1c8   : > { %3774 = vpow2.f32 %v3286_v18  ;;  %v3288_v53 = vmul.f32 -1.442695, %v5056_v20  ;;  %v5059_v54 = vpop.f32.mrb[6].mxu0 }
 0x1c9   : > { %v3757_v21 = vpop.eup %3756  ;;  %3776 = vpow2.f32 %v3287_v19  ;;  %v3289_v22 = vmul.f32 -1.442695, %v5059_v54  ;;  %v5062_v24 = vpop.f32.mrb[7].mxu0 }
 0x1ca   : > { %v3759_v23 = vpop.eup %3758  ;;  %v1418_v26 = vadd.f32 1.0, %v3757_v21  ;;  %3778 = vpow2.f32 %v3288_v53  ;;  %v5064_v27 = vpop.f32.mrb[6].mxu1 }
 0x1cb   : > { %v3761_v35 = vpop.eup %3760  ;;  %v1419_v36 = vadd.f32 1.0, %v3759_v23  ;;  %3780 = vpow2.f32 %v3289_v22  ;;  %v5066_v45 = vpop.f32.mrb[7].mxu1  ;;  %v3291_v22 = vmul.f32 -1.442695, %v5064_v27 }
 0x1cc   : > { %v3763_v46 = vpop.eup %3762  ;;  %3782 = vrcp.f32 %v1418_v26  ;;  %v1420_v47 = vadd.f32 1.0, %v3761_v35  ;;  %v5068_v25 = vpop.f32.mrb[8].mxu0 }
 0x1cd   : > { %v3765_v49 = vpop.eup %3764  ;;  %3784 = vrcp.f32 %v1419_v36  ;;  %v1421_v50 = vadd.f32 1.0, %v3763_v46  ;;  %v5070_v55 = vpop.f32.mrb[9].mxu0  ;;  %v3290_v36 = vmul.f32 -1.442695, %v5062_v24 }
 0x1ce   : > { %v3767_v56 = vpop.eup %3766  ;;  %3786 = vrcp.f32 %v1420_v47  ;;  %v1422_v57 = vadd.f32 1.0, %v3765_v49  ;;  %v5072_v51 = vpop.f32.mrb[8].mxu1  ;;  %v3292_v49 = vmul.f32 -1.442695, %v5066_v45 }
 0x1cf   : > { %v3769_v58 = vpop.eup %3768  ;;  %3788 = vrcp.f32 %v1421_v50  ;;  %v1423_v38 = vadd.f32 1.0, %v3767_v56  ;;  %v5074_v52 = vpop.f32.mrb[9].mxu1 }
 0x1d0   : > { %v3771_v33 = vpop.eup %3770  ;;  %3790 = vrcp.f32 %v1422_v57  ;;  %v1424_v34 = vadd.f32 1.0, %v3769_v58  ;;  %v5076_v31 = vpop.f32.mrb[10].mxu0  ;;  %v3293_v57 = vmul.f32 -1.442695, %v5068_v25 }
 0x1d1   : > { %v3773_v60 = vpop.eup %3772  ;;  %3792 = vrcp.f32 %v1423_v38  ;;  %v1425_v63 = vadd.f32 1.0, %v3771_v33  ;;  %v5078_v37 = vpop.f32.mrb[11].mxu0  ;;  %v3295_v33 = vmul.f32 -1.442695, %v5072_v51 }
 0x1d2   : > { %v3775_v39 = vpop.eup %3774  ;;  %3794 = vrcp.f32 %v1424_v34  ;;  %v1426_v5 = vadd.f32 1.0, %v3773_v60  ;;  %v5080_v29 = vpop.f32.mrb[10].mxu1  ;;  %v3294_v34 = vmul.f32 -1.442695, %v5070_v55 }
 0x1d3   : > { %v3777_v40 = vpop.eup %3776  ;;  %3796 = vrcp.f32 %v1425_v63  ;;  %v1427_v11 = vadd.f32 1.0, %v3775_v39  ;;  %v5082_v14 = vpop.f32.mrb[11].mxu1  ;;  %v3296_v39 = vmul.f32 -1.442695, %v5074_v52  ;;  %v3299_v12 = vmul.f32 -1.442695, %v5080_v29 }
 0x1d4   : > { %v3779_v16 = vpop.eup %3778  ;;  %3798 = vrcp.f32 %v1426_v5  ;;  %v1428_v18 = vadd.f32 1.0, %v3777_v40  ;;  %v5084_v19 = vpop.f32.mrb[12].mxu0  ;;  %v3297_v5 = vmul.f32 -1.442695, %v5076_v31 }
 0x1d5   : > { %v3781_v53 = vpop.eup %3780  ;;  %3800 = vrcp.f32 %v1427_v11  ;;  %v1429_v21 = vadd.f32 1.0, %v3779_v16  ;;  %v5087_v23 = vpop.f32.mrb[13].mxu0 }
 0x1d6   : > { %v3783_v26 = vpop.eup %3782  ;;  %3802 = vrcp.f32 %v1428_v18  ;;  %v1430_v35 = vadd.f32 1.0, %v3781_v53  ;;  %v5090_v46 = vpop.f32.mrb[12].mxu1  ;;  %v3298_v53 = vmul.f32 -1.442695, %v5078_v37 }
 0x1d7   : > { %v3785_v47 = vpop.eup %3784  ;;  %3804 = vrcp.f32 %v1429_v21  ;;  %v5093_v50 = vpop.f32.mrb[13].mxu1  ;;  %v1610_v16 = vmul.f32 %v3783_v26, %v5023_v61 }
 0x1d8   : > { %v3787_v56 = vpop.eup %3786  ;;  %3806 = vrcp.f32 %v1430_v35  ;;  %v5096_v58 = vpop.f32.mrb[14].mxu0  ;;  %v1611_v35 = vmul.f32 %v3785_v47, %v5026_v0 }
 0x1d9   : > { %v3789_v38 = vpop.eup %3788  ;;  %3808 = vpow2.f32 %v3291_v22  ;;  %v5100_v60 = vpop.f32.mrb[15].mxu0  ;;  %v1612_v61 = vmul.f32 %v3787_v56, %v5028_v28  ;;  %v3300_v28 = vmul.f32 -1.442695, %v5082_v14 }
 0x1da   : > { %v3791_v63 = vpop.eup %3790  ;;  %3810 = vpow2.f32 %v3290_v36  ;;  %v5104_v40 = vpop.f32.mrb[14].mxu1  ;;  %v1613_v1 = vmul.f32 %v3789_v38, %v5032_v2  ;;  %v3301_v2 = vmul.f32 -1.442695, %v5084_v19 }
 0x1db   : > { %v3793_v11 = vpop.eup %3792  ;;  %v1614_v18 = vmul.f32 %v3791_v63, %v5035_v7  ;;  %3812 = vpow2.f32 %v3292_v49  ;;  %v5109_v21 = vpop.f32.mrb[15].mxu1  ;;  %v3307_v6 = vmul.f32 -1.442695, %v5104_v40 }
 0x1dc   : > { %v3795_v22 = vpop.eup %3794  ;;  %v1615_v36 = vmul.f32 %v3793_v11, %v5038_v32  ;;  %3814 = vpow2.f32 %v3293_v57  ;;  %v5114_v48 = vpop.f32.mrb[16].mxu0 }
 0x1dd   : > { %v3797_v8 = vpop.eup %3796  ;;  %v3448_v26 = vpack.c.bf16 %v1614_v18, %v1610_v16  ;;  %v1616_v7 = vmul.f32 %v3795_v22, %v5040_v59  ;;  %3816 = vpow2.f32 %v3295_v33  ;;  %v5118_v49 = vpop.f32.mrb[17].mxu0 }
 0x1de   : > { %v3799_v63 = vpop.eup %3798  ;;  %v3446_v0 = vpack.c.bf16 %v1615_v36, %v1611_v35  ;;  %v1617_v32 = vmul.f32 %v3797_v8, %v5044_v13  ;;  %3818 = vpow2.f32 %v3294_v34  ;;  %v5122_v47 = vpop.f32.mrb[16].mxu1  ;;  %v3303_v13 = vmul.f32 -1.442695, %v5090_v46 }
 0x1df   : > { %v5124_v57 = vpop.eup %3800  ;;  %v3480_v11 = vpack.c.bf16 %v1616_v7, %v1612_v61  ;;  %3820 = vpow2.f32 %v3296_v39  ;;  %v5127_v56 = vpop.f32.mrb[17].mxu1 }
 0x1e0   : > { %v5129_v59 = vpop.eup %3802  ;;  %v3478_v33 = vpack.c.bf16 %v1617_v32, %v1613_v1  ;;  %3822 = vpow2.f32 %v3297_v5  ;;  %v5132_v38 = vpop.f32.mrb[18].mxu0  ;;  %3447 = vmatprep.subr.bf16.mxu0 %v3446_v0  ;;  %v5142_v5 = vmul.f32 %v3799_v63, %v5047_v15 }
 0x1e1   : > { %v5134_v8 = vpop.eup %3804  ;;  %3824 = vpow2.f32 %v3299_v12  ;;  %v5137_v34 = vpop.f32.mrb[19].mxu0  ;;  %3449 = vmatpush1.bf16.msra.mxu0 %v3448_v26 }
 0x1e2   : > { %v3807_v39 = vpop.eup %3806  ;;  %3826 = vpow2.f32 %v3298_v53  ;;  %v5139_v16 = vpop.f32.mrb[18].mxu1  ;;  %3479 = vmatprep.subr.bf16.mxu1 %v3478_v33 }
 0x1e3   : > { %v3809_v1 = vpop.eup %3808  ;;  %v5145_v18 = vmul.f32 %v3807_v39, %v5059_v54  ;;  %3828 = vpow2.f32 %v3300_v28  ;;  %v5147_v22 = vpop.f32.mrb[19].mxu1  ;;  %3481 = vmatpush1.bf16.msra.mxu1 %v3480_v11 }
 0x1e4   : > { %v3811_v12 = vpop.eup %3810  ;;  %v1432_v35 = vadd.f32 1.0, %v3809_v1  ;;  %3830 = vpow2.f32 %v3301_v2  ;;  %v5149_v36 = vpop.f32.mrb[20].mxu0 }
 0x1e5   : > { %v3813_v53 = vpop.eup %3812  ;;  %v1431_v26 = vadd.f32 1.0, %v3811_v12  ;;  %3832 = vpow2.f32 %v3303_v13  ;;  %v5153_v15 = vpop.f32.mrb[21].mxu0 }
 0x1e6   : > { %v3815_v7 = vpop.eup %3814  ;;  %3834 = vrcp.f32 %v1432_v35  ;;  %v1433_v54 = vadd.f32 1.0, %v3813_v53  ;;  %v5155_v63 = vpop.f32.mrb[20].mxu1 }
 0x1e7   : > { %v3817_v0 = vpop.eup %3816  ;;  %3836 = vrcp.f32 %v1431_v26  ;;  %v1434_v32 = vadd.f32 1.0, %v3815_v7  ;;  %v5157_v11 = vpop.f32.mrb[21].mxu1 }
 0x1e8   : > { %v3819_v28 = vpop.eup %3818  ;;  %3838 = vrcp.f32 %v1433_v54  ;;  %v1436_v33 = vadd.f32 1.0, %v3817_v0  ;;  %v5159_v2 = vpop.f32.mrb[22].mxu0 }
 0x1e9   : > { %v3821_v39 = vpop.eup %3820  ;;  %3840 = vrcp.f32 %v1434_v32  ;;  %v1435_v13 = vadd.f32 1.0, %v3819_v28  ;;  %v5161_v1 = vpop.f32.mrb[23].mxu0 }
 0x1ea   : > { %v3823_v12 = vpop.eup %3822  ;;  %3842 = vrcp.f32 %v1436_v33  ;;  %v1437_v35 = vadd.f32 1.0, %v3821_v39  ;;  %v5163_v53 = vpop.f32.mrb[22].mxu1 }
 0x1eb   : > { %v3825_v61 = vpop.eup %3824  ;;  %3844 = vrcp.f32 %v1435_v13  ;;  %v1438_v26 = vadd.f32 1.0, %v3823_v12  ;;  %v5165_v7 = vpop.f32.mrb[23].mxu1  ;;  %v3302_v12 = vmul.f32 -1.442695, %v5087_v23 }
 0x1ec   : > { %v3827_v4 = vpop.eup %3826  ;;  %3846 = vrcp.f32 %v1437_v35  ;;  %v1440_v54 = vadd.f32 1.0, %v3825_v61  ;;  %v5167_v0 = vpop.f32.mrb[24].mxu0 }
 0x1ed   : > { %v3829_v62 = vpop.eup %3828  ;;  %3848 = vrcp.f32 %v1438_v26  ;;  %v1439_v32 = vadd.f32 1.0, %v3827_v4  ;;  %v5169_v28 = vpop.f32.mrb[25].mxu0  ;;  %v3304_v26 = vmul.f32 -1.442695, %v5093_v50  ;;  %v3305_v4 = vmul.f32 -1.442695, %v5096_v58 }
 0x1ee   : > { %v3831_v44 = vpop.eup %3830  ;;  %3850 = vrcp.f32 %v1440_v54  ;;  %v1441_v33 = vadd.f32 1.0, %v3829_v62  ;;  %v5171_v39 = vpop.f32.mrb[24].mxu1  ;;  %v1620_v62 = vmul.f32 %v5129_v59, %v5052_v30  ;;  %v1621_v30 = vmul.f32 %v5134_v8, %v5056_v20 }
 0x1ef   : > { %v3833_v42 = vpop.eup %3832  ;;  %3852 = vrcp.f32 %v1439_v32  ;;  %v1442_v13 = vadd.f32 1.0, %v3831_v44  ;;  %v5174_v43 = vpop.f32.mrb[25].mxu1  ;;  %v3306_v44 = vmul.f32 -1.442695, %v5100_v60 }
 0x1f0   : > { %v3835_v61 = vpop.eup %3834  ;;  %3854 = vrcp.f32 %v1441_v33  ;;  %v1444_v35 = vadd.f32 1.0, %v3833_v42  ;;  %v5178_v41 = vpop.f32.mrb[26].mxu0  ;;  %v1619_v42 = vmul.f32 %v5124_v57, %v5050_v17  ;;  %v3308_v17 = vmul.f32 -1.442695, %v5109_v21 }
 0x1f1   : > { %6027 = vst [vmem:[#allocation29_spill] sm:$0xff] %v5178_v41  ;;  %v3837_v54 = vpop.eup %3836  ;;  %v1624_v32 = vmul.f32 %v3835_v61, %v5064_v27  ;;  %3856 = vrcp.f32 %v1442_v13  ;;  %v5184_v10 = vpop.f32.mrb[27].mxu0 }
 0x1f2   : > { %6028 = vst [vmem:[#allocation30_spill] sm:$0xff] %v5184_v10  ;;  %v3839_v9 = vpop.eup %3838  ;;  %v1623_v33 = vmul.f32 %v3837_v54, %v5062_v24  ;;  %3858 = vrcp.f32 %v1444_v35  ;;  %v5190_v3 = vpop.f32.mrb[26].mxu1  ;;  %v3309_v54 = vmul.f32 -1.442695, %v5114_v48 }
 0x1f3   : > { %6029 = vst [vmem:[#allocation31_spill] sm:$0xff] %v5190_v3  ;;  %v3841_v41 = vpop.eup %3840  ;;  %v3484_v27 = vpack.c.bf16 %v1624_v32, %v1620_v62  ;;  %v1625_v59 = vmul.f32 %v3839_v9, %v5066_v45  ;;  %3860 = vpow2.f32 %v3302_v12  ;;  %v5195_v13 = vpop.f32.mrb[27].mxu1  ;;  %v3311_v9 = vmul.f32 -1.442695, %v5122_v47 }
 0x1f4   : > { %v3843_v61 = vpop.eup %3842  ;;  %v3450_v10 = vpack.c.bf16 %v1623_v33, %v1619_v42  ;;  %3862 = vpow2.f32 %v3304_v26  ;;  %v5198_v24 = vpop.f32.mrb[28].mxu0  ;;  %v3310_v45 = vmul.f32 -1.442695, %v5118_v49  ;;  %v3312_v26 = vmul.f32 -1.442695, %v5127_v56 }
 0x1f5   : > { %v3845_v57 = vpop.eup %3844  ;;  %v3482_v35 = vpack.c.bf16 %v1625_v59, %v1621_v30  ;;  %3864 = vpow2.f32 %v3305_v4  ;;  %v5201_v3 = vpop.f32.mrb[29].mxu0  ;;  %v3313_v62 = vmul.f32 -1.442695, %v5132_v38  ;;  %v6030_v4 = vpack.c.bf16 %v5145_v18, %v5142_v5 }
 0x1f6   : > { %v3847_v20 = vpop.eup %3846  ;;  %3866 = vpow2.f32 %v3307_v6  ;;  %3451 = vmatprep.subr.bf16.mxu0 %v3450_v10  ;;  %v5205_v8 = vpop.f32.mrb[28].mxu1  ;;  %v1626_v42 = vmul.f32 %v3841_v41, %v5068_v25  ;;  %v3314_v33 = vmul.f32 -1.442695, %v5137_v34  ;;  %v1628_v59 = vmul.f32 %v3843_v61, %v5072_v51 }
 0x1f7   : > { %v3849_v12 = vpop.eup %3848  ;;  %3868 = vpow2.f32 %v3306_v44  ;;  %3483 = vmatprep.subr.bf16.mxu1 %v3482_v35  ;;  %3453 = vmatpush1.bf16.msra.mxu0 %v6030_v4  ;;  %v5212_v32 = vpop.f32.mrb[29].mxu1  ;;  %v3315_v5 = vmul.f32 -1.442695, %v5139_v16  ;;  %v1627_v41 = vmul.f32 %v3845_v57, %v5070_v55  ;;  %v1629_v51 = vmul.f32 %v3847_v20, %v5074_v52 }
 0x1f8   : > { %v3851_v6 = vpop.eup %3850  ;;  %v1630_v10 = vmul.f32 %v3849_v12, %v5076_v31  ;;  %3870 = vpow2.f32 %v3308_v17  ;;  %3485 = vmatpush1.bf16.msra.mxu1 %v3484_v27  ;;  %v5217_v44 = vpop.f32.mrb[30].mxu0 }
 0x1f9   : > { %v3853_v30 = vpop.eup %3852  ;;  %v1632_v35 = vmul.f32 %v3851_v6, %v5080_v29  ;;  %3872 = vpow2.f32 %v3309_v54  ;;  %v5222_v18 = vpop.f32.mrb[31].mxu0 }
 0x1fa   : > { %v3855_v4 = vpop.eup %3854  ;;  %v3456_v25 = vpack.c.bf16 %v1630_v10, %v1626_v42  ;;  %v1631_v31 = vmul.f32 %v3853_v30, %v5078_v37  ;;  %3874 = vpow2.f32 %v3311_v9  ;;  %v5226_v27 = vpop.f32.mrb[30].mxu1 }
 0x1fb   : > { %v5228_v17 = vpop.eup %3856  ;;  %v3488_v61 = vpack.c.bf16 %v1632_v35, %v1628_v59  ;;  %v1633_v29 = vmul.f32 %v3855_v4, %v5082_v14  ;;  %3876 = vpow2.f32 %v3310_v45  ;;  %v5232_v54 = vpop.f32.mrb[31].mxu1 }
 0x1fc   : > { %v5234_v12 = vpop.eup %3858  ;;  %v3454_v6 = vpack.c.bf16 %v1631_v31, %v1627_v41  ;;  %3878 = vpow2.f32 %v3312_v26 }
 0x1fd   : > { %v3861_v55 = vpop.eup %3860  ;;  %v3486_v57 = vpack.c.bf16 %v1633_v29, %v1629_v51  ;;  %3880 = vpow2.f32 %v3313_v62 }
 0x1fe   : > { %v3863_v37 = vpop.eup %3862  ;;  %v1443_v9 = vadd.f32 1.0, %v3861_v55  ;;  %3882 = vpow2.f32 %v3315_v5  ;;  %3455 = vmatprep.subr.bf16.mxu0 %v3454_v6 }
 0x1ff   : > { %v3865_v42 = vpop.eup %3864  ;;  %v1445_v10 = vadd.f32 1.0, %v3863_v37  ;;  %3884 = vpow2.f32 %v3314_v33  ;;  %3487 = vmatprep.subr.bf16.mxu1 %v3486_v57  ;;  %3457 = vmatpush1.bf16.msra.mxu0 %v3456_v25  ;;  %v3316_v57 = vmul.f32 -1.442695, %v5147_v22 }
 0x200   : > { %v3867_v52 = vpop.eup %3866  ;;  %3886 = vrcp.f32 %v1443_v9  ;;  %v1446_v14 = vadd.f32 1.0, %v3865_v42  ;;  %3489 = vmatpush1.bf16.msra.mxu1 %v3488_v61  ;;  %v3317_v42 = vmul.f32 -1.442695, %v5149_v36 }
 0x201   : > { %v3869_v20 = vpop.eup %3868  ;;  %3888 = vrcp.f32 %v1445_v10  ;;  %v1448_v45 = vadd.f32 1.0, %v3867_v52  ;;  %v3319_v52 = vmul.f32 -1.442695, %v5155_v63 }
 0x202   : > { %v3871_v26 = vpop.eup %3870  ;;  %3890 = vrcp.f32 %v1446_v14  ;;  %v1447_v30 = vadd.f32 1.0, %v3869_v20  ;;  %v3318_v20 = vmul.f32 -1.442695, %v5153_v15 }
 0x203   : > { %v3873_v62 = vpop.eup %3872  ;;  %3892 = vrcp.f32 %v1448_v45  ;;  %v1449_v59 = vadd.f32 1.0, %v3871_v26  ;;  %v3320_v45 = vmul.f32 -1.442695, %v5157_v11  ;;  %v3321_v26 = vmul.f32 -1.442695, %v5159_v2 }
 0x204   : > { %v3875_v35 = vpop.eup %3874  ;;  %3894 = vrcp.f32 %v1447_v30  ;;  %v1450_v5 = vadd.f32 1.0, %v3873_v62  ;;  %v1634_v62 = vmul.f32 %v5228_v17, %v5084_v19 }
 0x205   : > { %v3877_v4 = vpop.eup %3876  ;;  %3896 = vrcp.f32 %v1449_v59  ;;  %v1452_v33 = vadd.f32 1.0, %v3875_v35  ;;  %v3322_v35 = vmul.f32 -1.442695, %v5161_v1 }
 0x206   : > { %v3879_v41 = vpop.eup %3878  ;;  %3898 = vrcp.f32 %v1450_v5  ;;  %v1451_v25 = vadd.f32 1.0, %v3877_v4  ;;  %v1636_v4 = vmul.f32 %v5234_v12, %v5090_v46 }
 0x207   : > { %v3881_v31 = vpop.eup %3880  ;;  %3900 = vrcp.f32 %v1452_v33  ;;  %v1453_v51 = vadd.f32 1.0, %v3879_v41  ;;  %v3323_v41 = vmul.f32 -1.442695, %v5163_v53 }
 0x208   : > { %v3883_v61 = vpop.eup %3882  ;;  %3902 = vrcp.f32 %v1451_v25  ;;  %v1454_v29 = vadd.f32 1.0, %v3881_v31 }
 0x209   : > { %v3885_v6 = vpop.eup %3884  ;;  %3904 = vrcp.f32 %v1453_v51  ;;  %v1456_v55 = vadd.f32 1.0, %v3883_v61 }
 0x20a   : > { %v3887_v37 = vpop.eup %3886  ;;  %3906 = vrcp.f32 %v1454_v29  ;;  %v1455_v9 = vadd.f32 1.0, %v3885_v6 }
 0x20b   : > { %v3889_v10 = vpop.eup %3888  ;;  %3908 = vrcp.f32 %v1456_v55  ;;  %v1635_v31 = vmul.f32 %v3887_v37, %v5087_v23  ;;  %v3325_v23 = vmul.f32 -1.442695, %v5167_v0 }
 0x20c   : > { %v3891_v14 = vpop.eup %3890  ;;  %3910 = vrcp.f32 %v1455_v9  ;;  %v1637_v17 = vmul.f32 %v3889_v10, %v5093_v50  ;;  %v3328_v10 = vmul.f32 -1.442695, %v5174_v43 }
 0x20d   : > { %v3893_v30 = vpop.eup %3892  ;;  %v1638_v59 = vmul.f32 %v3891_v14, %v5096_v58  ;;  %3912 = vpow2.f32 %v3316_v57 }
 0x20e   : > { %v3895_v5 = vpop.eup %3894  ;;  %v1640_v33 = vmul.f32 %v3893_v30, %v5104_v40  ;;  %3914 = vpow2.f32 %v3317_v42  ;;  %v3324_v40 = vmul.f32 -1.442695, %v5165_v7 }
 0x20f   : > { %v3897_v25 = vpop.eup %3896  ;;  %v3460_v51 = vpack.c.bf16 %v1638_v59, %v1634_v62  ;;  %v1639_v19 = vmul.f32 %v3895_v5, %v5100_v60  ;;  %3916 = vpow2.f32 %v3319_v52  ;;  %v3327_v60 = vmul.f32 -1.442695, %v5171_v39 }
 0x210   : > { %v3899_v58 = vpop.eup %3898  ;;  %v3492_v61 = vpack.c.bf16 %v1640_v33, %v1636_v4  ;;  %v1641_v29 = vmul.f32 %v3897_v25, %v5109_v21  ;;  %3918 = vpow2.f32 %v3318_v20  ;;  %v3326_v21 = vmul.f32 -1.442695, %v5169_v28 }
 0x211   : > { %v3901_v46 = vpop.eup %3900  ;;  %v3458_v12 = vpack.c.bf16 %v1639_v19, %v1635_v31  ;;  %3920 = vpow2.f32 %v3320_v45  ;;  %v1642_v9 = vmul.f32 %v3899_v58, %v5114_v48 }
 0x212   : > { %v3903_v6 = vpop.eup %3902  ;;  %v3490_v55 = vpack.c.bf16 %v1641_v29, %v1637_v17  ;;  %3922 = vpow2.f32 %v3321_v26  ;;  %v5264_v14 = vmul.f32 %v3901_v46, %v5122_v47 }
 0x213   : > { %v5256_v57 = vpop.eup %3904  ;;  %3924 = vpow2.f32 %v3323_v41  ;;  %3459 = vmatprep.subr.bf16.mxu0 %v3458_v12  ;;  %v1643_v26 = vmul.f32 %v3903_v6, %v5118_v49 }
 0x214   : > { %v3907_v50 = vpop.eup %3906  ;;  %3926 = vpow2.f32 %v3322_v35  ;;  %3491 = vmatprep.subr.bf16.mxu1 %v3490_v55  ;;  %3461 = vmatpush1.bf16.msra.mxu0 %v3460_v51 }
 0x215   : > { %v3909_v37 = vpop.eup %3908  ;;  %v1646_v42 = vmul.f32 %v3907_v50, %v5132_v38  ;;  %3928 = vpow2.f32 %v3324_v40  ;;  %3493 = vmatpush1.bf16.msra.mxu1 %v3492_v61 }
 0x216   : > { %v3911_v52 = vpop.eup %3910  ;;  %v5267_v20 = vmul.f32 %v3909_v37, %v5139_v16  ;;  %3930 = vpow2.f32 %v3325_v23  ;;  %v6032_v37 = vld [vmem:[#allocation31_spill] sm:$0xff] }
 0x217   : > { %v3913_v45 = vpop.eup %3912  ;;  %v3464_v30 = vpack.c.bf16 %v1646_v42, %v1642_v9  ;;  %v1647_v48 = vmul.f32 %v3911_v52, %v5137_v34  ;;  %3932 = vpow2.f32 %v3327_v60  ;;  %v6031_v60 = vld [vmem:[#allocation29_spill] sm:$0xff]  ;;  %v3331_v9 = vmul.f32 -1.442695, %v6032_v37 }
 0x218   : > { %v3915_v38 = vpop.eup %3914  ;;  %v3496_v62 = vpack.c.bf16 %v5267_v20, %v5264_v14  ;;  %v1457_v59 = vadd.f32 1.0, %v3913_v45  ;;  %3934 = vpow2.f32 %v3326_v21  ;;  %v3329_v50 = vmul.f32 -1.442695, %v6031_v60  ;;  %v6033_v45 = vld [vmem:[#allocation30_spill] sm:$0xff] }
 0x219   : > { %v3917_v35 = vpop.eup %3916  ;;  %v3462_v47 = vpack.c.bf16 %v1647_v48, %v1643_v26  ;;  %v1458_v5 = vadd.f32 1.0, %v3915_v38  ;;  %3936 = vpow2.f32 %v3328_v10  ;;  %v1645_v10 = vmul.f32 %v5256_v57, %v5127_v56 }
 0x21a   : > { %v3919_v16 = vpop.eup %3918  ;;  %3938 = vrcp.f32 %v1457_v59  ;;  %v1460_v4 = vadd.f32 1.0, %v3917_v35  ;;  %v3330_v26 = vmul.f32 -1.442695, %v6033_v45  ;;  %v3332_v48 = vmul.f32 -1.442695, %v5195_v13 }
 0x21b   : > { %v3921_v33 = vpop.eup %3920  ;;  %3940 = vrcp.f32 %v1458_v5  ;;  %v1459_v49 = vadd.f32 1.0, %v3919_v16  ;;  %3463 = vmatprep.subr.bf16.mxu0 %v3462_v47  ;;  %v3333_v35 = vmul.f32 -1.442695, %v5198_v24  ;;  %v3335_v5 = vmul.f32 -1.442695, %v5205_v8 }
 0x21c   : > { %v3923_v41 = vpop.eup %3922  ;;  %3942 = vrcp.f32 %v1460_v4  ;;  %v1461_v34 = vadd.f32 1.0, %v3921_v33  ;;  %3465 = vmatpush1.bf16.msra.mxu0 %v3464_v30  ;;  %v3334_v56 = vmul.f32 -1.442695, %v5201_v3  ;;  %v3337_v57 = vmul.f32 -1.442695, %v5217_v44 }
 0x21d   : > { %v3925_v25 = vpop.eup %3924  ;;  %3944 = vrcp.f32 %v1459_v49  ;;  %v1462_v31 = vadd.f32 1.0, %v3923_v41  ;;  %v3338_v41 = vmul.f32 -1.442695, %v5222_v18 }
 0x21e   : > { %v3927_v51 = vpop.eup %3926  ;;  %3946 = vrcp.f32 %v1461_v34  ;;  %v1464_v19 = vadd.f32 1.0, %v3925_v25 }
 0x21f   : > { %v3929_v58 = vpop.eup %3928  ;;  %3948 = vrcp.f32 %v1462_v31  ;;  %v1463_v17 = vadd.f32 1.0, %v3927_v51  ;;  %v3339_v51 = vmul.f32 -1.442695, %v5226_v27 }
 0x220   : > { %v3931_v61 = vpop.eup %3930  ;;  %3950 = vrcp.f32 %v1464_v19  ;;  %v1465_v29 = vadd.f32 1.0, %v3929_v58 }
 0x221   : > { %v3933_v46 = vpop.eup %3932  ;;  %3952 = vrcp.f32 %v1463_v17  ;;  %v1466_v12 = vadd.f32 1.0, %v3931_v61 }
 0x222   : > { %v3935_v40 = vpop.eup %3934  ;;  %3954 = vrcp.f32 %v1465_v29  ;;  %v1468_v6 = vadd.f32 1.0, %v3933_v46 }
 0x223   : > { %v3937_v55 = vpop.eup %3936  ;;  %v1467_v23 = vadd.f32 1.0, %v3935_v40  ;;  %3956 = vrcp.f32 %v1466_v12 }
 0x224   : > { %v3939_v21 = vpop.eup %3938  ;;  %3958 = vrcp.f32 %v1468_v6  ;;  %v1469_v46 = vadd.f32 1.0, %v3937_v55 }
 0x225   : > { %v3941_v42 = vpop.eup %3940  ;;  %v1649_v52 = vmul.f32 %v3939_v21, %v5147_v22  ;;  %3960 = vrcp.f32 %v1467_v23  ;;  %v3336_v22 = vmul.f32 -1.442695, %v5212_v32 }
 0x226   : > { %v3943_v30 = vpop.eup %3942  ;;  %3962 = vpow2.f32 %v3329_v50  ;;  %v1650_v33 = vmul.f32 %v3941_v42, %v5149_v36 }
 0x227   : > { %v3945_v38 = vpop.eup %3944  ;;  %v3494_v59 = vpack.c.bf16 %v1649_v52, %v1645_v10  ;;  %3964 = vpow2.f32 %v3331_v9  ;;  %v1652_v25 = vmul.f32 %v3943_v30, %v5155_v63 }
 0x228   : > { %v3947_v47 = vpop.eup %3946  ;;  %3966 = vpow2.f32 %v3330_v26  ;;  %v1651_v36 = vmul.f32 %v3945_v38, %v5153_v15 }
 0x229   : > { %v3949_v16 = vpop.eup %3948  ;;  %3495 = vmatprep.subr.bf16.mxu1 %v3494_v59  ;;  %3968 = vpow2.f32 %v3332_v48  ;;  %v1653_v17 = vmul.f32 %v3947_v47, %v5157_v11 }
 0x22a   : > { %v3951_v4 = vpop.eup %3950  ;;  %v1654_v49 = vmul.f32 %v3949_v16, %v5159_v2  ;;  %3497 = vmatpush1.bf16.msra.mxu1 %v3496_v62  ;;  %3970 = vpow2.f32 %v3333_v35 }
 0x22b   : > { %v3953_v34 = vpop.eup %3952  ;;  %v1656_v31 = vmul.f32 %v3951_v4, %v5163_v53  ;;  %3972 = vpow2.f32 %v3335_v5  ;;  %v3340_v53 = vmul.f32 -1.442695, %v5232_v54 }
 0x22c   : > { %v3955_v19 = vpop.eup %3954  ;;  %v3468_v58 = vpack.c.bf16 %v1654_v49, %v1650_v33  ;;  %v1655_v2 = vmul.f32 %v3953_v34, %v5161_v1  ;;  %3974 = vpow2.f32 %v3334_v56 }
 0x22d   : > { %v3500_v61 = vpack.c.bf16 %v1656_v31, %v1652_v25  ;;  %v1657_v14 = vmul.f32 %v3955_v19, %v5165_v7  ;;  %v3957_v20 = vpop.eup %3956  ;;  %3976 = vpow2.f32 %v3336_v22 }
 0x22e   : > { %v3466_v63 = vpack.c.bf16 %v1655_v2, %v1651_v36  ;;  %v3959_v62 = vpop.eup %3958  ;;  %3978 = vpow2.f32 %v3337_v57  ;;  %v1658_v33 = vmul.f32 %v3957_v20, %v5167_v0 }
 0x22f   : > { %v3498_v29 = vpack.c.bf16 %v1657_v14, %v1653_v17  ;;  %v3961_v15 = vpop.eup %3960  ;;  %3980 = vpow2.f32 %v3339_v51  ;;  %v1660_v34 = vmul.f32 %v3959_v62, %v5171_v39 }
 0x230   : > { %3467 = vmatprep.subr.bf16.mxu0 %v3466_v63  ;;  %v3963_v1 = vpop.eup %3962  ;;  %3982 = vpow2.f32 %v3338_v41  ;;  %v1659_v51 = vmul.f32 %v3961_v15, %v5169_v28 }
 0x231   : > { %3499 = vmatprep.subr.bf16.mxu1 %v3498_v29  ;;  %3469 = vmatpush1.bf16.msra.mxu0 %v3468_v58  ;;  %v3965_v11 = vpop.eup %3964  ;;  %v1470_v12 = vadd.f32 1.0, %v3963_v1  ;;  %3984 = vpow2.f32 %v3340_v53 }
 0x232   : > { %3501 = vmatpush1.bf16.msra.mxu1 %v3500_v61  ;;  %v3967_v7 = vpop.eup %3966  ;;  %3986 = vrcp.f32 %v1469_v46  ;;  %v1472_v40 = vadd.f32 1.0, %v3965_v11 }
 0x233   : > { %v3969_v6 = vpop.eup %3968  ;;  %3988 = vrcp.f32 %v1470_v12  ;;  %v1471_v23 = vadd.f32 1.0, %v3967_v7 }
 0x234   : > { %v3971_v50 = vpop.eup %3970  ;;  %3990 = vrcp.f32 %v1472_v40  ;;  %v1473_v55 = vadd.f32 1.0, %v3969_v6  ;;  %v1680_v40 = vld [vmem:[#allocation6 + $0x30] sm:$0xff]  ;;  %v1681_v6 = vld [vmem:[#allocation6 + $0x38] sm:$0xff] }
 0x235   : > { %v3973_v21 = vpop.eup %3972  ;;  %3992 = vrcp.f32 %v1471_v23  ;;  %v1474_v9 = vadd.f32 1.0, %v3971_v50  ;;  %v1682_v23 = vld [vmem:[#allocation6 + $0x40] sm:$0xff]  ;;  %v1683_v50 = vld [vmem:[#allocation6 + $0x48] sm:$0xff] }
 0x236   : > { %v3975_v42 = vpop.eup %3974  ;;  %3994 = vrcp.f32 %v1473_v55  ;;  %v1476_v10 = vadd.f32 1.0, %v3973_v21  ;;  %v1684_v55 = vld [vmem:[#allocation6 + $0x50] sm:$0xff]  ;;  %v1685_v21 = vld [vmem:[#allocation6 + $0x58] sm:$0xff] }
 0x237   : > { %v3977_v52 = vpop.eup %3976  ;;  %3996 = vrcp.f32 %v1474_v9  ;;  %v1475_v26 = vadd.f32 1.0, %v3975_v42  ;;  %v1686_v9 = vld [vmem:[#allocation6 + $0x60] sm:$0xff]  ;;  %v1687_v42 = vld [vmem:[#allocation6 + $0x68] sm:$0xff] }
 0x238   : > { %v3979_v30 = vpop.eup %3978  ;;  %3998 = vrcp.f32 %v1476_v10  ;;  %v1477_v48 = vadd.f32 1.0, %v3977_v52  ;;  %v1688_v10 = vld [vmem:[#allocation6 + $0x70] sm:$0xff]  ;;  %v1689_v52 = vld [vmem:[#allocation6 + $0x78] sm:$0xff] }
 0x239   : > { %v3981_v38 = vpop.eup %3980  ;;  %4000 = vrcp.f32 %v1475_v26  ;;  %v1478_v59 = vadd.f32 1.0, %v3979_v30 }
 0x23a   : > { %v3983_v35 = vpop.eup %3982  ;;  %4002 = vrcp.f32 %v1477_v48  ;;  %v1480_v47 = vadd.f32 1.0, %v3981_v38 }
 0x23b   : > { %v3985_v5 = vpop.eup %3984  ;;  %4004 = vrcp.f32 %v1478_v59  ;;  %v1479_v16 = vadd.f32 1.0, %v3983_v35 }
 0x23c   : > { %v3987_v56 = vpop.eup %3986  ;;  %4006 = vrcp.f32 %v1480_v47  ;;  %v1481_v22 = vadd.f32 1.0, %v3985_v5 }
 0x23d   : > { %v3989_v57 = vpop.eup %3988  ;;  %4008 = vrcp.f32 %v1479_v16  ;;  %v1661_v2 = vmul.f32 %v3987_v56, %v5174_v43 }
 0x23e   : > { %v3991_v4 = vpop.eup %3990  ;;  %v1662_v49 = vmul.f32 %v3989_v57, %v6031_v60  ;;  %4010 = vrcp.f32 %v1481_v22 }
 0x23f   : > { %v3993_v41 = vpop.eup %3992  ;;  %v1664_v25 = vmul.f32 %v3991_v4, %v6032_v37 }
 0x240   : > { %v3995_v31 = vpop.eup %3994  ;;  %v3472_v19 = vpack.c.bf16 %v1662_v49, %v1658_v33  ;;  %v1663_v36 = vmul.f32 %v3993_v41, %v6033_v45 }
 0x241   : > { %v3997_v58 = vpop.eup %3996  ;;  %v3504_v17 = vpack.c.bf16 %v1664_v25, %v1660_v34  ;;  %v1665_v0 = vmul.f32 %v3995_v31, %v5195_v13 }
 0x242   : > { %v3999_v61 = vpop.eup %3998  ;;  %v3470_v60 = vpack.c.bf16 %v1663_v36, %v1659_v51  ;;  %v1666_v28 = vmul.f32 %v3997_v58, %v5198_v24 }
 0x243   : > { %v4001_v14 = vpop.eup %4000  ;;  %v3502_v20 = vpack.c.bf16 %v1665_v0, %v1661_v2  ;;  %v1668_v43 = vmul.f32 %v3999_v61, %v5205_v8  ;;  %v6034_v8 = vmov 0.0  }
 0x244   : > { %v4003_v63 = vpop.eup %4002  ;;  %3471 = vmatprep.subr.bf16.mxu0 %v3470_v60  ;;  %v1667_v29 = vmul.f32 %v4001_v14, %v5201_v3  ;;  %v1675_v3 = vld [vmem:[#allocation6 + $0x8] sm:$0xff] }
 0x245   : > { %v4005_v39 = vpop.eup %4004  ;;  %3503 = vmatprep.subr.bf16.mxu1 %v3502_v20  ;;  %3473 = vmatpush1.bf16.msra.mxu0 %v3472_v19  ;;  %v1669_v1 = vmul.f32 %v4003_v63, %v5212_v32  ;;  %v1676_v32 = vld [vmem:[#allocation6 + $0x10] sm:$0xff] }
 0x246   : > { %v4007_v37 = vpop.eup %4006  ;;  %v1670_v45 = vmul.f32 %v4005_v39, %v5217_v44  ;;  %3505 = vmatpush1.bf16.msra.mxu1 %v3504_v17  ;;  %v1674_v44 = vld [vmem:[#allocation6] sm:$0xff] }
 0x247   : > { %v4009_v53 = vpop.eup %4008  ;;  %v1672_v13 = vmul.f32 %v4007_v37, %v5226_v27  ;;  %v1678_v27 = vld [vmem:[#allocation6 + $0x20] sm:$0xff] }
 0x248   : > { %v4011_v62 = vpop.eup %4010  ;;  %v3476_v46 = vpack.c.bf16 %v1670_v45, %v1666_v28  ;;  %v1671_v15 = vmul.f32 %v4009_v53, %v5222_v18  ;;  %v1677_v18 = vld [vmem:[#allocation6 + $0x18] sm:$0xff] }
 0x249   : > { %v3508_v11 = vpack.c.bf16 %v1672_v13, %v1668_v43  ;;  %v1673_v12 = vmul.f32 %v4011_v62, %v5232_v54  ;;  %v1679_v54 = vld [vmem:[#allocation6 + $0x28] sm:$0xff] }
 0x24a   : > { %v3474_v24 = vpack.c.bf16 %v1671_v15, %v1667_v29 }
 0x24b   : > { %v3506_v7 = vpack.c.bf16 %v1673_v12, %v1669_v1 }
 0x24c   : > { %3475 = vmatprep.subr.bf16.mxu0 %v3474_v24 }
 0x24d   : > { %3507 = vmatprep.subr.bf16.mxu1 %v3506_v7  ;;  %3477 = vmatpush1.bf16.msra.mxu0 %v3476_v46 }
 0x24e   : > { %3509 = vmatpush1.bf16.msra.mxu1 %v3508_v11 }
 0x250   : > { %1755 = vmatmul.mubr.f32.vlgmr.msra.gmra.mrb[32].mxu0 %v1674_v44 }
 0x251   : > { %1916 = vmatmul.mubr.f32.vlgmr.msra.gmra.mrb[32].mxu1 %v1674_v44  ;;  %1760 = vmatprep.mubr.f32.mxu0 %v6034_v8 }
 0x252   : > { %1921 = vmatprep.mubr.f32.mxu1 %v6034_v8 }
 0x254   : > { %1761 = vmatmul.mubr.f32.gmra.mrb[34].mxu0 %v1675_v3 }
 0x255   : > { %1922 = vmatmul.mubr.f32.gmra.mrb[34].mxu1 %v1675_v3  ;;  %1766 = vmatprep.mubr.f32.mxu0 %v6034_v8 }
 0x256   : > { %1927 = vmatprep.mubr.f32.mxu1 %v6034_v8 }
 0x258   : > { %1767 = vmatmul.mubr.f32.gmra.mrb[36].mxu0 %v1676_v32 }
 0x259   : > { %1928 = vmatmul.mubr.f32.gmra.mrb[36].mxu1 %v1676_v32  ;;  %1772 = vmatprep.mubr.f32.mxu0 %v6034_v8 }
 0x25a   : > { %1933 = vmatprep.mubr.f32.mxu1 %v6034_v8 }
 0x25c   : > { %1773 = vmatmul.mubr.f32.gmra.mrb[38].mxu0 %v1677_v18 }
 0x25d   : > { %1934 = vmatmul.mubr.f32.gmra.mrb[38].mxu1 %v1677_v18  ;;  %1778 = vmatprep.mubr.f32.mxu0 %v6034_v8 }
 0x25e   : > { %1939 = vmatprep.mubr.f32.mxu1 %v6034_v8 }
 0x260   : > { %1779 = vmatmul.mubr.f32.gmra.mrb[40].mxu0 %v1678_v27 }
 0x261   : > { %1940 = vmatmul.mubr.f32.gmra.mrb[40].mxu1 %v1678_v27  ;;  %1784 = vmatprep.mubr.f32.mxu0 %v6034_v8 }
 0x262   : > { %1945 = vmatprep.mubr.f32.mxu1 %v6034_v8 }
 0x264   : > { %1785 = vmatmul.mubr.f32.gmra.mrb[42].mxu0 %v1679_v54 }
 0x265   : > { %1946 = vmatmul.mubr.f32.gmra.mrb[42].mxu1 %v1679_v54  ;;  %1790 = vmatprep.mubr.f32.mxu0 %v6034_v8 }
 0x266   : > { %1951 = vmatprep.mubr.f32.mxu1 %v6034_v8 }
 0x268   : > { %1791 = vmatmul.mubr.f32.gmra.mrb[44].mxu0 %v1680_v40 }
 0x269   : > { %1952 = vmatmul.mubr.f32.gmra.mrb[44].mxu1 %v1680_v40  ;;  %1796 = vmatprep.mubr.f32.mxu0 %v6034_v8 }
 0x26a   : > { %1957 = vmatprep.mubr.f32.mxu1 %v6034_v8 }
 0x26c   : > { %1797 = vmatmul.mubr.f32.gmra.mrb[46].mxu0 %v1681_v6 }
 0x26d   : > { %1958 = vmatmul.mubr.f32.gmra.mrb[46].mxu1 %v1681_v6  ;;  %1802 = vmatprep.mubr.f32.mxu0 %v6034_v8 }
 0x26e   : > { %1963 = vmatprep.mubr.f32.mxu1 %v6034_v8 }
 0x270   : > { %1803 = vmatmul.mubr.f32.gmra.mrb[48].mxu0 %v1682_v23 }
 0x271   : > { %1964 = vmatmul.mubr.f32.gmra.mrb[48].mxu1 %v1682_v23  ;;  %1808 = vmatprep.mubr.f32.mxu0 %v6034_v8 }
 0x272   : > { %1969 = vmatprep.mubr.f32.mxu1 %v6034_v8 }
 0x274   : > { %1809 = vmatmul.mubr.f32.gmra.mrb[50].mxu0 %v1683_v50 }
 0x275   : > { %1970 = vmatmul.mubr.f32.gmra.mrb[50].mxu1 %v1683_v50  ;;  %1814 = vmatprep.mubr.f32.mxu0 %v6034_v8 }
 0x276   : > { %1975 = vmatprep.mubr.f32.mxu1 %v6034_v8 }
 0x278   : > { %1815 = vmatmul.mubr.f32.gmra.mrb[52].mxu0 %v1684_v55 }
 0x279   : > { %1976 = vmatmul.mubr.f32.gmra.mrb[52].mxu1 %v1684_v55  ;;  %1820 = vmatprep.mubr.f32.mxu0 %v6034_v8 }
 0x27a   : > { %1981 = vmatprep.mubr.f32.mxu1 %v6034_v8 }
 0x27c   : > { %1821 = vmatmul.mubr.f32.gmra.mrb[54].mxu0 %v1685_v21 }
 0x27d   : > { %1982 = vmatmul.mubr.f32.gmra.mrb[54].mxu1 %v1685_v21  ;;  %1826 = vmatprep.mubr.f32.mxu0 %v6034_v8 }
 0x27e   : > { %1987 = vmatprep.mubr.f32.mxu1 %v6034_v8 }
 0x280   : > { %1827 = vmatmul.mubr.f32.gmra.mrb[56].mxu0 %v1686_v9 }
 0x281   : > { %1988 = vmatmul.mubr.f32.gmra.mrb[56].mxu1 %v1686_v9  ;;  %1832 = vmatprep.mubr.f32.mxu0 %v6034_v8 }
 0x282   : > { %1993 = vmatprep.mubr.f32.mxu1 %v6034_v8 }
 0x284   : > { %1833 = vmatmul.mubr.f32.gmra.mrb[58].mxu0 %v1687_v42 }
 0x285   : > { %1994 = vmatmul.mubr.f32.gmra.mrb[58].mxu1 %v1687_v42  ;;  %1838 = vmatprep.mubr.f32.mxu0 %v6034_v8 }
 0x286   : > { %1999 = vmatprep.mubr.f32.mxu1 %v6034_v8 }
 0x288   : > { %1839 = vmatmul.mubr.f32.gmra.mrb[60].mxu0 %v1688_v10 }
 0x289   : > { %2000 = vmatmul.mubr.f32.gmra.mrb[60].mxu1 %v1688_v10  ;;  %1844 = vmatprep.mubr.f32.mxu0 %v6034_v8 }
 0x28a   : > { %2005 = vmatprep.mubr.f32.mxu1 %v6034_v8 }
 0x28c   : > { %1845 = vmatmul.mubr.f32.gmra.mrb[62].mxu0 %v1689_v52 }
 0x28d   : > { %2006 = vmatmul.mubr.f32.gmra.mrb[62].mxu1 %v1689_v52  ;;  %2529 = vmatprep.mubr.f32.mxu0 %v6034_v8 }
 0x28e   : > { %2624 = vmatprep.mubr.f32.mxu1 %v6034_v8 }
 0x323   : > { %v5347_v26 = vpop.f32.mrb[32].mxu0 }
 0x324   : > { %v3341_v30 = vmul.f32 -1.442695, %v5347_v26  ;;  %v5350_v48 = vpop.f32.mrb[32].mxu1  ;;  %v5352_v38 = vpop.f32.mrb[33].mxu0 }
 0x325   : > { %v3343_v59 = vmul.f32 -1.442695, %v5350_v48  ;;  %v3342_v35 = vmul.f32 -1.442695, %v5352_v38  ;;  %v5356_v47 = vpop.f32.mrb[33].mxu1 }
 0x326   : > { %4012 = vpow2.f32 %v3341_v30  ;;  %v3344_v5 = vmul.f32 -1.442695, %v5356_v47 }
 0x327   : > { %4014 = vpow2.f32 %v3343_v59  ;;  %v5359_v16 = vpop.f32.mrb[34].mxu0 }
 0x328   : > { %4016 = vpow2.f32 %v3342_v35  ;;  %v3345_v56 = vmul.f32 -1.442695, %v5359_v16  ;;  %v5362_v22 = vpop.f32.mrb[34].mxu1  ;;  %v5364_v57 = vpop.f32.mrb[35].mxu0 }
 0x329   : > { %4018 = vpow2.f32 %v3344_v5  ;;  %v3347_v4 = vmul.f32 -1.442695, %v5362_v22  ;;  %v3346_v33 = vmul.f32 -1.442695, %v5364_v57  ;;  %v5368_v49 = vpop.f32.mrb[35].mxu1 }
 0x32a   : > { %4020 = vpow2.f32 %v3345_v56  ;;  %v3348_v41 = vmul.f32 -1.442695, %v5368_v49 }
 0x32b   : > { %4022 = vpow2.f32 %v3347_v4  ;;  %v5371_v34 = vpop.f32.mrb[36].mxu0 }
 0x32c   : > { %4024 = vpow2.f32 %v3346_v33  ;;  %v3349_v25 = vmul.f32 -1.442695, %v5371_v34  ;;  %v5374_v31 = vpop.f32.mrb[36].mxu1  ;;  %v5376_v51 = vpop.f32.mrb[37].mxu0 }
 0x32d   : > { %4026 = vpow2.f32 %v3348_v41  ;;  %v3351_v19 = vmul.f32 -1.442695, %v5374_v31  ;;  %v3350_v36 = vmul.f32 -1.442695, %v5376_v51  ;;  %v5380_v58 = vpop.f32.mrb[37].mxu1 }
 0x32e   : > { %4028 = vpow2.f32 %v3349_v25  ;;  %v3352_v2 = vmul.f32 -1.442695, %v5380_v58 }
 0x32f   : > { %4030 = vpow2.f32 %v3351_v19  ;;  %v5383_v17 = vpop.f32.mrb[38].mxu0 }
 0x330   : > { %v4013_v0 = vpop.eup %4012  ;;  %4032 = vpow2.f32 %v3350_v36  ;;  %v3353_v61 = vmul.f32 -1.442695, %v5383_v17  ;;  %v5386_v60 = vpop.f32.mrb[38].mxu1 }
 0x331   : > { %v5388_v14 = vpop.f32.mrb[39].mxu0  ;;  %v4015_v20 = vpop.eup %4014  ;;  %v2204_v63 = vadd.f32 1.0, %v4013_v0  ;;  %4034 = vpow2.f32 %v3352_v2  ;;  %v3355_v30 = vmul.f32 -1.442695, %v5386_v60 }
 0x332   : > { %v5390_v39 = vpop.f32.mrb[39].mxu1  ;;  %v4017_v37 = vpop.eup %4016  ;;  %v2206_v28 = vadd.f32 1.0, %v4015_v20  ;;  %4036 = vpow2.f32 %v3353_v61  ;;  %v3354_v4 = vmul.f32 -1.442695, %v5388_v14 }
 0x333   : > { %v4019_v45 = vpop.eup %4018  ;;  %4038 = vrcp.f32 %v2204_v63  ;;  %v2205_v53 = vadd.f32 1.0, %v4017_v37  ;;  %v5392_v43 = vpop.f32.mrb[40].mxu0  ;;  %v3356_v25 = vmul.f32 -1.442695, %v5390_v39 }
 0x334   : > { %v4021_v13 = vpop.eup %4020  ;;  %4040 = vrcp.f32 %v2206_v28  ;;  %v2207_v62 = vadd.f32 1.0, %v4019_v45  ;;  %v5394_v29 = vpop.f32.mrb[40].mxu1  ;;  %v3357_v36 = vmul.f32 -1.442695, %v5392_v43 }
 0x335   : > { %v5396_v46 = vpop.f32.mrb[41].mxu0  ;;  %v4023_v15 = vpop.eup %4022  ;;  %4042 = vrcp.f32 %v2205_v53  ;;  %v2208_v1 = vadd.f32 1.0, %v4021_v13  ;;  %v3359_v61 = vmul.f32 -1.442695, %v5394_v29 }
 0x336   : > { %v5398_v11 = vpop.f32.mrb[41].mxu1  ;;  %v4025_v12 = vpop.eup %4024  ;;  %4044 = vrcp.f32 %v2207_v62  ;;  %v2210_v24 = vadd.f32 1.0, %v4023_v15  ;;  %v3358_v20 = vmul.f32 -1.442695, %v5396_v46 }
 0x337   : > { %v4027_v7 = vpop.eup %4026  ;;  %4046 = vrcp.f32 %v2208_v1  ;;  %v2209_v44 = vadd.f32 1.0, %v4025_v12  ;;  %v5400_v3 = vpop.f32.mrb[42].mxu0  ;;  %v3360_v45 = vmul.f32 -1.442695, %v5398_v11 }
 0x338   : > { %v4029_v32 = vpop.eup %4028  ;;  %4048 = vrcp.f32 %v2210_v24  ;;  %v2211_v18 = vadd.f32 1.0, %v4027_v7  ;;  %v5402_v27 = vpop.f32.mrb[42].mxu1  ;;  %v3361_v53 = vmul.f32 -1.442695, %v5400_v3 }
 0x339   : > { %v5404_v54 = vpop.f32.mrb[43].mxu0  ;;  %v4031_v40 = vpop.eup %4030  ;;  %4050 = vrcp.f32 %v2209_v44  ;;  %v2212_v6 = vadd.f32 1.0, %v4029_v32  ;;  %v3363_v12 = vmul.f32 -1.442695, %v5402_v27 }
 0x33a   : > { %v5406_v23 = vpop.f32.mrb[43].mxu1  ;;  %v4033_v50 = vpop.eup %4032  ;;  %4052 = vrcp.f32 %v2211_v18  ;;  %v2214_v55 = vadd.f32 1.0, %v4031_v40  ;;  %v3362_v32 = vmul.f32 -1.442695, %v5404_v54 }
 0x33b   : > { %v4035_v21 = vpop.eup %4034  ;;  %4054 = vrcp.f32 %v2212_v6  ;;  %v2213_v9 = vadd.f32 1.0, %v4033_v50  ;;  %v5408_v42 = vpop.f32.mrb[44].mxu0 }
 0x33c   : > { %v4037_v10 = vpop.eup %4036  ;;  %4056 = vrcp.f32 %v2214_v55  ;;  %v2215_v52 = vadd.f32 1.0, %v4035_v21  ;;  %v5411_v59 = vpop.f32.mrb[44].mxu1 }
 0x33d   : > { %v5413_v35 = vpop.f32.mrb[45].mxu0  ;;  %v4039_v5 = vpop.eup %4038  ;;  %4058 = vrcp.f32 %v2213_v9  ;;  %v2216_v56 = vadd.f32 1.0, %v4037_v10 }
 0x33e   : > { %v5416_v33 = vpop.f32.mrb[45].mxu1  ;;  %v4041_v41 = vpop.eup %4040  ;;  %4060 = vrcp.f32 %v2215_v52  ;;  %v2396_v15 = vmul.f32 %v4039_v5, %v5347_v26 }
 0x33f   : > { %v4043_v19 = vpop.eup %4042  ;;  %4062 = vrcp.f32 %v2216_v56  ;;  %v5420_v2 = vpop.f32.mrb[46].mxu0  ;;  %v2398_v7 = vmul.f32 %v4041_v41, %v5350_v48  ;;  %v3365_v56 = vmul.f32 -1.442695, %v5408_v42 }
 0x340   : > { %v4045_v0 = vpop.eup %4044  ;;  %4064 = vpow2.f32 %v3355_v30  ;;  %v5424_v63 = vpop.f32.mrb[46].mxu1  ;;  %v2397_v6 = vmul.f32 %v4043_v19, %v5352_v38 }
 0x341   : > { %v5426_v37 = vpop.f32.mrb[47].mxu0  ;;  %v4047_v28 = vpop.eup %4046  ;;  %4066 = vpow2.f32 %v3354_v4  ;;  %v2399_v48 = vmul.f32 %v4045_v0, %v5356_v47  ;;  %v5467_v0 = vld [vmem:[#allocation3] sm:$0xff] }
 0x342   : > { %v5430_v13 = vpop.f32.mrb[47].mxu1  ;;  %v4049_v62 = vpop.eup %4048  ;;  %v2400_v1 = vmul.f32 %v4047_v28, %v5359_v16  ;;  %4068 = vpow2.f32 %v3356_v25 }
 0x343   : > { %v4051_v24 = vpop.eup %4050  ;;  %v2402_v44 = vmul.f32 %v4049_v62, %v5362_v22  ;;  %4070 = vpow2.f32 %v3357_v36  ;;  %v5438_v18 = vpop.f32.mrb[48].mxu0 }
 0x344   : > { %v4053_v40 = vpop.eup %4052  ;;  %v3512_v50 = vpack.c.bf16 %v2400_v1, %v2396_v15  ;;  %v2401_v26 = vmul.f32 %v4051_v24, %v5364_v57  ;;  %4072 = vpow2.f32 %v3359_v61  ;;  %v5442_v16 = vpop.f32.mrb[48].mxu1  ;;  %v3364_v57 = vmul.f32 -1.442695, %v5406_v23 }
 0x345   : > { %v5444_v55 = vpop.f32.mrb[49].mxu0  ;;  %v4055_v21 = vpop.eup %4054  ;;  %v3544_v22 = vpack.c.bf16 %v2402_v44, %v2398_v7  ;;  %v2403_v9 = vmul.f32 %v4053_v40, %v5368_v49  ;;  %4074 = vpow2.f32 %v3358_v20  ;;  %v3367_v49 = vmul.f32 -1.442695, %v5411_v59 }
 0x346   : > { %v5448_v10 = vpop.f32.mrb[49].mxu1  ;;  %v5450_v52 = vpop.eup %4056  ;;  %v3510_v38 = vpack.c.bf16 %v2401_v26, %v2397_v6  ;;  %4076 = vpow2.f32 %v3360_v45  ;;  %v5470_v20 = vmul.f32 %v4055_v21, %v5371_v34  ;;  %v4483_v15 = vmov 12  }
 0x347   : > { %v5453_v30 = vpop.eup %4058  ;;  %v3542_v5 = vpack.c.bf16 %v2403_v9, %v2399_v48  ;;  %4078 = vpow2.f32 %v3361_v53  ;;  %v5456_v4 = vpop.f32.mrb[50].mxu0  ;;  %3669 = vset.pattern.permute.xlu1 %v4483_v15 }
 0x348   : > { %v5458_v47 = vpop.eup %4060  ;;  %4080 = vpow2.f32 %v3363_v12  ;;  %v5461_v41 = vpop.f32.mrb[50].mxu1  ;;  %3511 = vmatprep.subr.bf16.mxu0 %v3510_v38  ;;  %2677 = vperm.xlu1 %3669, %v5467_v0  }
 0x349   : > { %v5463_v25 = vpop.f32.mrb[51].mxu0  ;;  %v4063_v19 = vpop.eup %4062  ;;  %4082 = vpow2.f32 %v3362_v32  ;;  %3543 = vmatprep.subr.bf16.mxu1 %v3542_v5  ;;  %3513 = vmatpush1.bf16.msra.mxu0 %v3512_v50  ;;  %v4485_v5 = vmov 4  }
 0x34a   : > { %v5465_v36 = vpop.f32.mrb[51].mxu1  ;;  %v4065_v61 = vpop.eup %4064  ;;  %v5473_v28 = vmul.f32 %v4063_v19, %v5383_v17  ;;  %4084 = vpow2.f32 %v3364_v57  ;;  %3545 = vmatpush1.bf16.msra.mxu1 %v3544_v22  ;;  %v4484_v57 = vmov 5   ;;  %3667 = vset.pattern.permute.xlu0 %v4485_v5 }
 0x34b   : > { %v4067_v45 = vpop.eup %4066  ;;  %v2218_v53 = vadd.f32 1.0, %v4065_v61  ;;  %4086 = vpow2.f32 %v3365_v56  ;;  %v5475_v62 = vpop.f32.mrb[52].mxu0  ;;  %2657 = vperm.xlu0 %3667, %v5467_v0  }
 0x34c   : > { %v4069_v1 = vpop.eup %4068  ;;  %v2217_v24 = vadd.f32 1.0, %v4067_v45  ;;  %4088 = vpow2.f32 %v3367_v49  ;;  %v5479_v34 = vpop.f32.mrb[52].mxu1  ;;  %3670 = vset.pattern.permute.xlu1 %v4484_v57  ;;  %v4487_v57 = vmov 8  }
 0x34d   : > { %v5481_v7 = vpop.f32.mrb[53].mxu0  ;;  %v4071_v17 = vpop.eup %4070  ;;  %4090 = vrcp.f32 %v2218_v53  ;;  %v2219_v44 = vadd.f32 1.0, %v4069_v1  ;;  %2725 = vperm.xlu1 %3670, %v5467_v0  }
 0x34e   : > { %v5484_v32 = vpop.f32.mrb[53].mxu1  ;;  %v4073_v40 = vpop.eup %4072  ;;  %4092 = vrcp.f32 %v2217_v24  ;;  %v2220_v6 = vadd.f32 1.0, %v4071_v17 }
 0x34f   : > { %v4075_v50 = vpop.eup %4074  ;;  %4094 = vrcp.f32 %v2219_v44  ;;  %v2222_v26 = vadd.f32 1.0, %v4073_v40  ;;  %v5486_v21 = vpop.f32.mrb[54].mxu0  ;;  %3668 = vset.pattern.permute.xlu0 %v4487_v57 }
 0x350   : > { %v4077_v48 = vpop.eup %4076  ;;  %4096 = vrcp.f32 %v2220_v6  ;;  %v2221_v22 = vadd.f32 1.0, %v4075_v50  ;;  %v5488_v9 = vpop.f32.mrb[54].mxu1  ;;  %2665 = vperm.xlu0 %3668, %v5467_v0  }
 0x351   : > { %v5490_v38 = vpop.f32.mrb[55].mxu0  ;;  %v4079_v56 = vpop.eup %4078  ;;  %4098 = vrcp.f32 %v2222_v26  ;;  %v2223_v49 = vadd.f32 1.0, %v4077_v48  ;;  %v3366_v26 = vmul.f32 -1.442695, %v5413_v35 }
 0x352   : > { %v5492_v19 = vpop.f32.mrb[55].mxu1  ;;  %v4081_v61 = vpop.eup %4080  ;;  %4100 = vrcp.f32 %v2221_v22  ;;  %v2224_v45 = vadd.f32 1.0, %v4079_v56  ;;  %v4486_v22 = vmov 9  }
 0x353   : > { %v4083_v53 = vpop.eup %4082  ;;  %4102 = vrcp.f32 %v2223_v49  ;;  %v2226_v15 = vadd.f32 1.0, %v4081_v61  ;;  %v5496_v1 = vpop.f32.mrb[56].mxu0  ;;  %3671 = vset.pattern.permute.xlu1 %v4486_v22  ;;  %v3368_v49 = vmul.f32 -1.442695, %v5416_v33  ;;  %v3369_v61 = vmul.f32 -1.442695, %v5420_v2 }
 0x354   : > { %v4085_v24 = vpop.eup %4084  ;;  %4104 = vrcp.f32 %v2224_v45  ;;  %v2225_v17 = vadd.f32 1.0, %v4083_v53  ;;  %v5498_v44 = vpop.f32.mrb[56].mxu1  ;;  %2733 = vperm.xlu1 %3671, %v5467_v0   ;;  %v2406_v22 = vmul.f32 %v5450_v52, %v5374_v31 }
 0x355   : > { %v5500_v40 = vpop.f32.mrb[57].mxu0  ;;  %v4087_v6 = vpop.eup %4086  ;;  %4106 = vrcp.f32 %v2226_v15  ;;  %v2227_v50 = vadd.f32 1.0, %v4085_v24 }
 0x356   : > { %v5503_v48 = vpop.f32.mrb[57].mxu1  ;;  %v4089_v5 = vpop.eup %4088  ;;  %4108 = vrcp.f32 %v2225_v17  ;;  %v2228_v56 = vadd.f32 1.0, %v4087_v6  ;;  %v3371_v6 = vmul.f32 -1.442695, %v5424_v63 }
 0x357   : > { %6035 = vst [vmem:[#allocation29_spill] sm:$0xff] %v5503_v48  ;;  %v4091_v45 = vpop.eup %4090  ;;  %4110 = vrcp.f32 %v2227_v50  ;;  %v2230_v53 = vadd.f32 1.0, %v4089_v5  ;;  %v5509_v15 = vpop.f32.mrb[58].mxu0  ;;  %v2405_v50 = vmul.f32 %v5453_v30, %v5376_v51 }
 0x358   : > { %6036 = vst [vmem:[#allocation31_spill] sm:$0xff] %v5509_v15  ;;  %v4093_v24 = vpop.eup %4092  ;;  %v2410_v17 = vmul.f32 %v4091_v45, %v5386_v60  ;;  %4112 = vrcp.f32 %v2228_v56  ;;  %v5515_v57 = vpop.f32.mrb[58].mxu1  ;;  %v3370_v15 = vmul.f32 -1.442695, %v5426_v37  ;;  %v2407_v60 = vmul.f32 %v5458_v47, %v5380_v58 }
 0x359   : > { %v5517_v12 = vpop.f32.mrb[59].mxu0  ;;  %v4095_v8 = vpop.eup %4094  ;;  %v2409_v5 = vmul.f32 %v4093_v24, %v5388_v14  ;;  %4114 = vrcp.f32 %v2230_v53  ;;  %v4488_v45 = vmov 6   ;;  %v3372_v14 = vmul.f32 -1.442695, %v5430_v13 }
 0x35a   : > { %6037 = vst [vmem:[#allocation30_spill] sm:$0xff] %v5517_v12  ;;  %v5523_v48 = vpop.f32.mrb[59].mxu1  ;;  %v4097_v31 = vpop.eup %4096  ;;  %v3548_v52 = vpack.c.bf16 %v2410_v17, %v2406_v22  ;;  %v2411_v56 = vmul.f32 %v4095_v8, %v5390_v39  ;;  %4116 = vpow2.f32 %v3366_v26  ;;  %3673 = vset.pattern.permute.xlu1 %v4488_v45  ;;  %v4489_v12 = vmov 13  }
 0x35b   : > { %3672 = vset.pattern.permute.xlu0 %v4489_v12  ;;  %v4099_v51 = vpop.eup %4098  ;;  %v3514_v30 = vpack.c.bf16 %v2409_v5, %v2405_v50  ;;  %4118 = vpow2.f32 %v3368_v49  ;;  %v5529_v53 = vpop.f32.mrb[60].mxu0  ;;  %2793 = vperm.xlu1 %3673, %v5467_v0   ;;  %v3373_v8 = vmul.f32 -1.442695, %v5438_v18  ;;  %v3375_v49 = vmul.f32 -1.442695, %v5442_v16 }
 0x35c   : > { %2745 = vperm.xlu0 %3672, %v5467_v0   ;;  %v4101_v58 = vpop.eup %4100  ;;  %v3546_v47 = vpack.c.bf16 %v2411_v56, %v2407_v60  ;;  %4120 = vpow2.f32 %v3369_v61  ;;  %v5534_v39 = vpop.f32.mrb[60].mxu1  ;;  %v3374_v24 = vmul.f32 -1.442695, %v5444_v55  ;;  %v3376_v50 = vmul.f32 -1.442695, %v5448_v10 }
 0x35d   : > { %6038 = vst [vmem:[#allocation32_spill] sm:$0xff] %v5534_v39  ;;  %v5536_v26 = vpop.f32.mrb[61].mxu0  ;;  %v4103_v12 = vpop.eup %4102  ;;  %4122 = vpow2.f32 %v3371_v6  ;;  %3515 = vmatprep.subr.bf16.mxu0 %v3514_v30  ;;  %v3377_v61 = vmul.f32 -1.442695, %v5456_v4  ;;  %v3379_v5 = vmul.f32 -1.442695, %v5461_v41  ;;  %v6041_v60 = vpack.c.bf16 %v5473_v28, %v5470_v20 }
 0x35e   : > { %6039 = vst [vmem:[#allocation33_spill] sm:$0xff] %v5536_v26  ;;  %v5540_v22 = vpop.f32.mrb[61].mxu1  ;;  %v4105_v17 = vpop.eup %4104  ;;  %4124 = vpow2.f32 %v3370_v15  ;;  %3547 = vmatprep.subr.bf16.mxu1 %v3546_v47  ;;  %v2412_v56 = vmul.f32 %v4097_v31, %v5392_v43  ;;  %v3378_v30 = vmul.f32 -1.442695, %v5463_v25  ;;  %v2414_v47 = vmul.f32 %v4099_v51, %v5394_v29 }
 0x35f   : > { %6040 = vst [vmem:[#allocation34_spill] sm:$0xff] %v5540_v22  ;;  %3517 = vmatpush1.bf16.msra.mxu0 %v6041_v60  ;;  %v4107_v6 = vpop.eup %4106  ;;  %v2416_v45 = vmul.f32 %v4105_v17, %v5400_v3  ;;  %4126 = vpow2.f32 %v3372_v14  ;;  %3549 = vmatpush1.bf16.msra.mxu1 %v3548_v52  ;;  %v5551_v15 = vpop.f32.mrb[62].mxu0  ;;  %v4490_v22 = vmov 10   ;;  %v4491_v43 = vmov 14  }
 0x360   : > { %3674 = vset.pattern.permute.xlu1 %v4490_v22  ;;  %v4109_v26 = vpop.eup %4108  ;;  %v2418_v39 = vmul.f32 %v4107_v6, %v5402_v27  ;;  %4128 = vpow2.f32 %v3373_v8  ;;  %v5555_v20 = vpop.f32.mrb[62].mxu1  ;;  %3675 = vset.pattern.permute.xlu0 %v4491_v43  ;;  %v2413_v31 = vmul.f32 %v4101_v58, %v5396_v46  ;;  %v2415_v27 = vmul.f32 %v4103_v12, %v5398_v11 }
 0x361   : > { %v5557_v28 = vpop.f32.mrb[63].mxu0  ;;  %2801 = vperm.xlu1 %3674, %v5467_v0   ;;  %v4111_v3 = vpop.eup %4110  ;;  %v3520_v52 = vpack.c.bf16 %v2416_v45, %v2412_v56  ;;  %v2417_v14 = vmul.f32 %v4109_v26, %v5404_v54  ;;  %4130 = vpow2.f32 %v3375_v49  ;;  %2813 = vperm.xlu0 %3675, %v5467_v0   ;;  %v4492_v54 = vmov 7  }
 0x362   : > { %v5562_v22 = vpop.f32.mrb[63].mxu1  ;;  %v5565_v29 = vpop.eup %4112  ;;  %v3552_v51 = vpack.c.bf16 %v2418_v39, %v2414_v47  ;;  %v2419_v8 = vmul.f32 %v4111_v3, %v5406_v23  ;;  %4132 = vpow2.f32 %v3374_v24  ;;  %v4493_v24 = vmov 0  }
 0x363   : > { %v5569_v17 = vpop.eup %4114  ;;  %v3518_v60 = vpack.c.bf16 %v2417_v14, %v2413_v31  ;;  %4134 = vpow2.f32 %v3376_v50  ;;  %v4494_v56 = vmov 11  }
 0x364   : > { %v4117_v46 = vpop.eup %4116  ;;  %v3550_v58 = vpack.c.bf16 %v2419_v8, %v2415_v27  ;;  %4136 = vpow2.f32 %v3377_v61 }
 0x365   : > { %3676 = vset.pattern.permute.xlu1 %v4492_v54  ;;  %v4119_v26 = vpop.eup %4118  ;;  %v2229_v49 = vadd.f32 1.0, %v4117_v46  ;;  %4138 = vpow2.f32 %v3379_v5  ;;  %3519 = vmatprep.subr.bf16.mxu0 %v3518_v60  ;;  %v4496_v60 = vmov 1   ;;  %v3380_v54 = vmul.f32 -1.442695, %v5465_v36 }
 0x366   : > { %2861 = vperm.xlu1 %3676, %v5467_v0   ;;  %v4121_v11 = vpop.eup %4120  ;;  %v2231_v39 = vadd.f32 1.0, %v4119_v26  ;;  %4140 = vpow2.f32 %v3378_v30  ;;  %3551 = vmatprep.subr.bf16.mxu1 %v3550_v58 }
 0x367   : > { %3521 = vmatpush1.bf16.msra.mxu0 %v3520_v52  ;;  %v4123_v23 = vpop.eup %4122  ;;  %4142 = vrcp.f32 %v2229_v49  ;;  %v2232_v12 = vadd.f32 1.0, %v4121_v11  ;;  %3553 = vmatpush1.bf16.msra.mxu1 %v3552_v51  ;;  %v4495_v52 = vmov 2  }
 0x368   : > { %3678 = vset.pattern.permute.xlu0 %v4493_v24  ;;  %v4125_v50 = vpop.eup %4124  ;;  %4144 = vrcp.f32 %v2231_v39  ;;  %v2234_v61 = vadd.f32 1.0, %v4123_v23  ;;  %v3381_v23 = vmul.f32 -1.442695, %v5475_v62 }
 0x369   : > { %2701 = vperm.xlu0 %3678, %v5467_v0   ;;  %v4127_v5 = vpop.eup %4126  ;;  %4146 = vrcp.f32 %v2232_v12  ;;  %v2233_v6 = vadd.f32 1.0, %v4125_v50  ;;  %v4497_v12 = vmov 3   ;;  %v3383_v50 = vmul.f32 -1.442695, %v5479_v34 }
 0x36a   : > { %3677 = vset.pattern.permute.xlu1 %v4494_v56  ;;  %v4129_v45 = vpop.eup %4128  ;;  %4148 = vrcp.f32 %v2234_v61  ;;  %v2235_v30 = vadd.f32 1.0, %v4127_v5  ;;  %v3382_v5 = vmul.f32 -1.442695, %v5481_v7  ;;  %v3385_v56 = vmul.f32 -1.442695, %v5486_v21 }
 0x36b   : > { %2869 = vperm.xlu1 %3677, %v5467_v0   ;;  %v4131_v47 = vpop.eup %4130  ;;  %4150 = vrcp.f32 %v2233_v6  ;;  %v2236_v43 = vadd.f32 1.0, %v4129_v45  ;;  %v3384_v6 = vmul.f32 -1.442695, %v5484_v32  ;;  %v4498_v45 = vmov 15  }
 0x36c   : > { %v4133_v3 = vpop.eup %4132  ;;  %4152 = vrcp.f32 %v2235_v30  ;;  %v2238_v31 = vadd.f32 1.0, %v4131_v47  ;;  %v2420_v47 = vmul.f32 %v5565_v29, %v5408_v42 }
 0x36d   : > { %3681 = vset.pattern.permute.xlu0 %v4495_v52  ;;  %v4135_v14 = vpop.eup %4134  ;;  %4154 = vrcp.f32 %v2236_v43  ;;  %v2237_v27 = vadd.f32 1.0, %v4133_v3  ;;  %v3387_v3 = vmul.f32 -1.442695, %v5488_v9  ;;  %v2422_v52 = vmul.f32 %v5569_v17, %v5411_v59 }
 0x36e   : > { %2837 = vperm.xlu0 %3681, %v5467_v0   ;;  %v4137_v51 = vpop.eup %4136  ;;  %4156 = vrcp.f32 %v2238_v31  ;;  %v2239_v8 = vadd.f32 1.0, %v4135_v14 }
 0x36f   : > { %3679 = vset.pattern.permute.xlu1 %v4496_v60  ;;  %v4139_v46 = vpop.eup %4138  ;;  %4158 = vrcp.f32 %v2237_v27  ;;  %v2240_v58 = vadd.f32 1.0, %v4137_v51  ;;  %v3386_v27 = vmul.f32 -1.442695, %v5490_v38 }
 0x370   : > { %2769 = vperm.xlu1 %3679, %v5467_v0   ;;  %v4141_v26 = vpop.eup %4140  ;;  %4160 = vrcp.f32 %v2239_v8  ;;  %v2242_v49 = vadd.f32 1.0, %v4139_v46 }
 0x371   : > { %v4143_v11 = vpop.eup %4142  ;;  %4162 = vrcp.f32 %v2240_v58  ;;  %v2241_v39 = vadd.f32 1.0, %v4141_v26 }
 0x372   : > { %3683 = vset.pattern.permute.xlu0 %v4497_v12  ;;  %v4145_v24 = vpop.eup %4144  ;;  %4164 = vrcp.f32 %v2242_v49  ;;  %v2421_v8 = vmul.f32 %v4143_v11, %v5413_v35  ;;  %v3389_v35 = vmul.f32 -1.442695, %v5496_v1  ;;  %v3390_v49 = vmul.f32 -1.442695, %v5500_v40 }
 0x373   : > { %v4147_v61 = vpop.eup %4146  ;;  %4166 = vrcp.f32 %v2241_v39  ;;  %v2423_v60 = vmul.f32 %v4145_v24, %v5416_v33  ;;  %v3391_v33 = vmul.f32 -1.442695, %v5498_v44 }
 0x374   : > { %3680 = vset.pattern.permute.xlu1 %v4498_v45  ;;  %v4149_v30 = vpop.eup %4148  ;;  %v2424_v43 = vmul.f32 %v4147_v61, %v5420_v2  ;;  %4168 = vpow2.f32 %v3380_v54 }
 0x375   : > { %2881 = vperm.xlu1 %3680, %v5467_v0   ;;  %v4151_v31 = vpop.eup %4150  ;;  %v2426_v14 = vmul.f32 %v4149_v30, %v5424_v63  ;;  %4170 = vpow2.f32 %v3381_v23  ;;  %v3388_v63 = vmul.f32 -1.442695, %v5492_v19 }
 0x376   : > { %v4153_v51 = vpop.eup %4152  ;;  %v3524_v42 = vpack.c.bf16 %v2424_v43, %v2420_v47  ;;  %v2425_v2 = vmul.f32 %v4151_v31, %v5426_v37  ;;  %4172 = vpow2.f32 %v3383_v50 }
 0x377   : > { %v4155_v29 = vpop.eup %4154  ;;  %v3556_v46 = vpack.c.bf16 %v2426_v14, %v2422_v52  ;;  %v2427_v58 = vmul.f32 %v4153_v51, %v5430_v13  ;;  %4174 = vpow2.f32 %v3382_v5 }
 0x378   : > { %v4157_v59 = vpop.eup %4156  ;;  %v3522_v17 = vpack.c.bf16 %v2425_v2, %v2421_v8  ;;  %4176 = vpow2.f32 %v3384_v6  ;;  %v2428_v39 = vmul.f32 %v4155_v29, %v5438_v18 }
 0x379   : > { %3682 = vset.pattern.permute.xlu1 %v4497_v12  ;;  %v4159_v54 = vpop.eup %4158  ;;  %v3554_v26 = vpack.c.bf16 %v2427_v58, %v2423_v60  ;;  %4178 = vpow2.f32 %v3385_v56  ;;  %v6042_v12 = vld [vmem:[#allocation29_spill] sm:$0xff]  ;;  %v5606_v50 = vmul.f32 %v4157_v59, %v5442_v16 }
 0x37a   : > { %2905 = vperm.xlu1 %3682, %v5467_v0   ;;  %v5598_v37 = vpop.eup %4160  ;;  %4180 = vpow2.f32 %v3387_v3  ;;  %3523 = vmatprep.subr.bf16.mxu0 %v3522_v17  ;;  %v3392_v0 = vmul.f32 -1.442695, %v6042_v12  ;;  %v2429_v6 = vmul.f32 %v4159_v54, %v5444_v55 }
 0x37b   : > { %v4163_v13 = vpop.eup %4162  ;;  %4182 = vpow2.f32 %v3386_v27  ;;  %3555 = vmatprep.subr.bf16.mxu1 %v3554_v26  ;;  %3525 = vmatpush1.bf16.msra.mxu0 %v3524_v42  ;;  %v6043_v26 = vld [vmem:[#allocation31_spill] sm:$0xff] }
 0x37c   : > { %v4165_v11 = vpop.eup %4164  ;;  %v2432_v23 = vmul.f32 %v4163_v13, %v5456_v4  ;;  %4184 = vpow2.f32 %v3388_v63  ;;  %3557 = vmatpush1.bf16.msra.mxu1 %v3556_v46  ;;  %v3395_v13 = vmul.f32 -1.442695, %v5515_v57 }
 0x37d   : > { %v4167_v24 = vpop.eup %4166  ;;  %v5609_v61 = vmul.f32 %v4165_v11, %v5461_v41  ;;  %4186 = vpow2.f32 %v3389_v35  ;;  %v3393_v35 = vmul.f32 -1.442695, %v6043_v26  ;;  %v2431_v11 = vmul.f32 %v5598_v37, %v5448_v10  ;;  %v6046_v10 = vld [vmem:[#allocation33_spill] sm:$0xff]  ;;  %v6047_v37 = vld [vmem:[#allocation34_spill] sm:$0xff] }
 0x37e   : > { %v4169_v5 = vpop.eup %4168  ;;  %v3528_v56 = vpack.c.bf16 %v2432_v23, %v2428_v39  ;;  %v2433_v18 = vmul.f32 %v4167_v24, %v5463_v25  ;;  %4188 = vpow2.f32 %v3391_v33  ;;  %v6044_v23 = vld [vmem:[#allocation30_spill] sm:$0xff] }
 0x37f   : > { %v4171_v4 = vpop.eup %4170  ;;  %v3560_v45 = vpack.c.bf16 %v5609_v61, %v5606_v50  ;;  %v2243_v30 = vadd.f32 1.0, %v4169_v5  ;;  %4190 = vpow2.f32 %v3390_v49  ;;  %v3396_v5 = vmul.f32 -1.442695, %v5523_v48 }
 0x380   : > { %v4173_v47 = vpop.eup %4172  ;;  %v3526_v16 = vpack.c.bf16 %v2433_v18, %v2429_v6  ;;  %v2244_v43 = vadd.f32 1.0, %v4171_v4  ;;  %4192 = vpow2.f32 %v3392_v0  ;;  %v3394_v0 = vmul.f32 -1.442695, %v6044_v23 }
 0x381   : > { %v4175_v41 = vpop.eup %4174  ;;  %4194 = vrcp.f32 %v2243_v30  ;;  %v2246_v3 = vadd.f32 1.0, %v4173_v47  ;;  %v3397_v18 = vmul.f32 -1.442695, %v5529_v53  ;;  %v6045_v30 = vld [vmem:[#allocation32_spill] sm:$0xff] }
 0x382   : > { %v4177_v31 = vpop.eup %4176  ;;  %4196 = vrcp.f32 %v2244_v43  ;;  %v2245_v55 = vadd.f32 1.0, %v4175_v41  ;;  %3527 = vmatprep.subr.bf16.mxu0 %v3526_v16  ;;  %v3399_v47 = vmul.f32 -1.442695, %v6045_v30  ;;  %v3400_v43 = vmul.f32 -1.442695, %v6047_v37 }
 0x383   : > { %v4179_v52 = vpop.eup %4178  ;;  %4198 = vrcp.f32 %v2246_v3  ;;  %v2247_v25 = vadd.f32 1.0, %v4177_v31  ;;  %3529 = vmatpush1.bf16.msra.mxu0 %v3528_v56  ;;  %v3401_v41 = vmul.f32 -1.442695, %v5551_v15 }
 0x384   : > { %v4181_v14 = vpop.eup %4180  ;;  %4200 = vrcp.f32 %v2245_v55  ;;  %v2248_v27 = vadd.f32 1.0, %v4179_v52  ;;  %v3403_v52 = vmul.f32 -1.442695, %v5555_v20 }
 0x385   : > { %v4183_v51 = vpop.eup %4182  ;;  %4202 = vrcp.f32 %v2247_v25  ;;  %v2250_v8 = vadd.f32 1.0, %v4181_v14 }
 0x386   : > { %v4185_v42 = vpop.eup %4184  ;;  %4204 = vrcp.f32 %v2248_v27  ;;  %v2249_v2 = vadd.f32 1.0, %v4183_v51  ;;  %v3402_v51 = vmul.f32 -1.442695, %v5557_v28 }
 0x387   : > { %v4187_v29 = vpop.eup %4186  ;;  %4206 = vrcp.f32 %v2250_v8  ;;  %v2251_v60 = vadd.f32 1.0, %v4185_v42 }
 0x388   : > { %v4189_v46 = vpop.eup %4188  ;;  %4208 = vrcp.f32 %v2249_v2  ;;  %v2252_v58 = vadd.f32 1.0, %v4187_v29 }
 0x389   : > { %v4191_v59 = vpop.eup %4190  ;;  %4210 = vrcp.f32 %v2251_v60  ;;  %v2254_v17 = vadd.f32 1.0, %v4189_v46 }
 0x38a   : > { %v4193_v63 = vpop.eup %4192  ;;  %v2253_v54 = vadd.f32 1.0, %v4191_v59  ;;  %4212 = vrcp.f32 %v2252_v58 }
 0x38b   : > { %v4195_v33 = vpop.eup %4194  ;;  %4214 = vrcp.f32 %v2254_v17  ;;  %v2255_v46 = vadd.f32 1.0, %v4193_v63 }
 0x38c   : > { %v4197_v49 = vpop.eup %4196  ;;  %v2435_v39 = vmul.f32 %v4195_v33, %v5465_v36  ;;  %4216 = vrcp.f32 %v2253_v54  ;;  %v3398_v36 = vmul.f32 -1.442695, %v6046_v10 }
 0x38d   : > { %v4199_v24 = vpop.eup %4198  ;;  %4218 = vpow2.f32 %v3393_v35  ;;  %v2436_v31 = vmul.f32 %v4197_v49, %v5475_v62 }
 0x38e   : > { %v4201_v6 = vpop.eup %4200  ;;  %v3558_v56 = vpack.c.bf16 %v2435_v39, %v2431_v11  ;;  %4220 = vpow2.f32 %v3395_v13  ;;  %v2438_v14 = vmul.f32 %v4199_v24, %v5479_v34 }
 0x38f   : > { %v4203_v4 = vpop.eup %4202  ;;  %4222 = vpow2.f32 %v3394_v0  ;;  %v2437_v62 = vmul.f32 %v4201_v6, %v5481_v7 }
 0x390   : > { %v4205_v16 = vpop.eup %4204  ;;  %3559 = vmatprep.subr.bf16.mxu1 %v3558_v56  ;;  %4224 = vpow2.f32 %v3396_v5  ;;  %v2439_v2 = vmul.f32 %v4203_v4, %v5484_v32 }
 0x391   : > { %v4207_v3 = vpop.eup %4206  ;;  %v2440_v55 = vmul.f32 %v4205_v16, %v5486_v21  ;;  %3561 = vmatpush1.bf16.msra.mxu1 %v3560_v45  ;;  %4226 = vpow2.f32 %v3397_v18 }
 0x392   : > { %v4209_v25 = vpop.eup %4208  ;;  %v2442_v27 = vmul.f32 %v4207_v3, %v5488_v9  ;;  %4228 = vpow2.f32 %v3399_v47  ;;  %v3404_v9 = vmul.f32 -1.442695, %v5562_v22 }
 0x393   : > { %v4211_v8 = vpop.eup %4210  ;;  %v3532_v42 = vpack.c.bf16 %v2440_v55, %v2436_v31  ;;  %v2441_v21 = vmul.f32 %v4209_v25, %v5490_v38  ;;  %4230 = vpow2.f32 %v3398_v36 }
 0x394   : > { %v3564_v29 = vpack.c.bf16 %v2442_v27, %v2438_v14  ;;  %v2443_v50 = vmul.f32 %v4211_v8, %v5492_v19  ;;  %v4213_v61 = vpop.eup %4212  ;;  %4232 = vpow2.f32 %v3400_v43 }
 0x395   : > { %v3530_v34 = vpack.c.bf16 %v2441_v21, %v2437_v62  ;;  %v4215_v45 = vpop.eup %4214  ;;  %4234 = vpow2.f32 %v3401_v41  ;;  %v2444_v31 = vmul.f32 %v4213_v61, %v5496_v1 }
 0x396   : > { %v3562_v60 = vpack.c.bf16 %v2443_v50, %v2439_v2  ;;  %v4217_v7 = vpop.eup %4216  ;;  %4236 = vpow2.f32 %v3403_v52  ;;  %v2446_v25 = vmul.f32 %v4215_v45, %v5498_v44 }
 0x397   : > { %3531 = vmatprep.subr.bf16.mxu0 %v3530_v34  ;;  %v4219_v38 = vpop.eup %4218  ;;  %4238 = vpow2.f32 %v3402_v51  ;;  %v2445_v51 = vmul.f32 %v4217_v7, %v5500_v40 }
 0x398   : > { %3563 = vmatprep.subr.bf16.mxu1 %v3562_v60  ;;  %3533 = vmatpush1.bf16.msra.mxu0 %v3532_v42  ;;  %v4221_v32 = vpop.eup %4220  ;;  %v2256_v58 = vadd.f32 1.0, %v4219_v38  ;;  %4240 = vpow2.f32 %v3404_v9 }
 0x399   : > { %3565 = vmatpush1.bf16.msra.mxu1 %v3564_v29  ;;  %v4223_v19 = vpop.eup %4222  ;;  %4242 = vrcp.f32 %v2255_v46  ;;  %v2258_v59 = vadd.f32 1.0, %v4221_v32 }
 0x39a   : > { %v4225_v17 = vpop.eup %4224  ;;  %4244 = vrcp.f32 %v2256_v58  ;;  %v2257_v54 = vadd.f32 1.0, %v4223_v19 }
 0x39b   : > { %v4227_v35 = vpop.eup %4226  ;;  %4246 = vrcp.f32 %v2258_v59  ;;  %v2259_v63 = vadd.f32 1.0, %v4225_v17  ;;  %v6049_v59 = vld [vmem:[#allocation23_spill] sm:$0xff] }
 0x39c   : > { %v4229_v33 = vpop.eup %4228  ;;  %4248 = vrcp.f32 %v2257_v54  ;;  %v2260_v13 = vadd.f32 1.0, %v4227_v35  ;;  %v6050_v54 = vld [vmem:[#allocation25_spill] sm:$0xff]  ;;  %v6051_v35 = vld [vmem:[#allocation27_spill] sm:$0xff] }
 0x39d   : > { %v4231_v49 = vpop.eup %4230  ;;  %4250 = vrcp.f32 %v2259_v63  ;;  %v2262_v11 = vadd.f32 1.0, %v4229_v33  ;;  %v6052_v63 = vld [vmem:[#allocation28_spill] sm:$0xff] }
 0x39e   : > { %v4233_v39 = vpop.eup %4232  ;;  %4252 = vrcp.f32 %v2260_v13  ;;  %v2261_v0 = vadd.f32 1.0, %v4231_v49 }
 0x39f   : > { %v4235_v24 = vpop.eup %4234  ;;  %4254 = vrcp.f32 %v2262_v11  ;;  %v2263_v5 = vadd.f32 1.0, %v4233_v39 }
 0x3a0   : > { %v4237_v6 = vpop.eup %4236  ;;  %4256 = vrcp.f32 %v2261_v0  ;;  %v2264_v56 = vadd.f32 1.0, %v4235_v24 }
 0x3a1   : > { %v4239_v18 = vpop.eup %4238  ;;  %4258 = vrcp.f32 %v2263_v5  ;;  %v2266_v4 = vadd.f32 1.0, %v4237_v6  ;;  %v4308_v5 = vld [vmem:[%s4701_s19 + $0x20] sm:$0xff] }
 0x3a2   : > { %v4241_v47 = vpop.eup %4240  ;;  %4260 = vrcp.f32 %v2264_v56  ;;  %v2265_v16 = vadd.f32 1.0, %v4239_v18  ;;  %v4309_v56 = vld [vmem:[%s4701_s19 + $0x28] sm:$0xff] }
 0x3a3   : > { %v4243_v36 = vpop.eup %4242  ;;  %4262 = vrcp.f32 %v2266_v4  ;;  %v2267_v43 = vadd.f32 1.0, %v4241_v47  ;;  %v4310_v4 = vld [vmem:[%s4701_s19 + $0x30] sm:$0xff] }
 0x3a4   : > { %v4245_v41 = vpop.eup %4244  ;;  %4264 = vrcp.f32 %v2265_v16  ;;  %v2447_v21 = vmul.f32 %v4243_v36, %v6042_v12  ;;  %v4311_v16 = vld [vmem:[%s4701_s19 + $0x38] sm:$0xff] }
 0x3a5   : > { %v4247_v3 = vpop.eup %4246  ;;  %v2448_v55 = vmul.f32 %v4245_v41, %v6043_v26  ;;  %4266 = vrcp.f32 %v2267_v43  ;;  %v4312_v43 = vld [vmem:[%s4701_s19 + $0x40] sm:$0xff] }
 0x3a6   : > { %v4249_v52 = vpop.eup %4248  ;;  %v2450_v14 = vmul.f32 %v4247_v3, %v5515_v57  ;;  %4268 = vrcp.f32 %v6049_v59  ;;  %v4313_v3 = vld [vmem:[%s4701_s19 + $0x48] sm:$0xff]  ;;  %v4316_v59 = vld [vmem:[%s4701_s19] sm:$0xff] }
 0x3a7   : > { %v4251_v27 = vpop.eup %4250  ;;  %v3536_v8 = vpack.c.bf16 %v2448_v55, %v2444_v31  ;;  %v2449_v62 = vmul.f32 %v4249_v52, %v6044_v23  ;;  %4270 = vrcp.f32 %v6050_v54  ;;  %v4314_v55 = vld [vmem:[%s4701_s19 + $0x50] sm:$0xff]  ;;  %v6055_v54 = vld [vmem:[#allocation17_spill] sm:$0xff] }
 0x3a8   : > { %v4253_v42 = vpop.eup %4252  ;;  %v3568_v2 = vpack.c.bf16 %v2450_v14, %v2446_v25  ;;  %v2451_v1 = vmul.f32 %v4251_v27, %v5523_v48  ;;  %4272 = vrcp.f32 %v6051_v35  ;;  %v4315_v25 = vld [vmem:[%s4701_s19 + $0x58] sm:$0xff]  ;;  %v2689_v35 = vmul.f32 -0.5, %v6055_v54 }
 0x3a9   : > { %v4255_v29 = vpop.eup %4254  ;;  %v3534_v26 = vpack.c.bf16 %v2449_v62, %v2445_v51  ;;  %v2452_v40 = vmul.f32 %v4253_v42, %v5529_v53  ;;  %4274 = vrcp.f32 %v6052_v63  ;;  %v6056_v63 = vld [vmem:[#allocation19_spill] sm:$0xff] }
 0x3aa   : > { %v4257_v50 = vpop.eup %4256  ;;  %v3566_v61 = vpack.c.bf16 %v2451_v1, %v2447_v21  ;;  %v2454_v12 = vmul.f32 %v4255_v29, %v6045_v30  ;;  %v2461_v30 = vld [vmem:[#allocation8 + $0x8] sm:$0xff] }
 0x3ab   : > { %v4259_v34 = vpop.eup %4258  ;;  %3535 = vmatprep.subr.bf16.mxu0 %v3534_v26  ;;  %v2453_v60 = vmul.f32 %v4257_v50, %v6046_v10  ;;  %v2464_v10 = vld [vmem:[#allocation8 + $0x20] sm:$0xff] }
 0x3ac   : > { %v4261_v44 = vpop.eup %4260  ;;  %3567 = vmatprep.subr.bf16.mxu1 %v3566_v61  ;;  %3537 = vmatpush1.bf16.msra.mxu0 %v3536_v8  ;;  %v2455_v38 = vmul.f32 %v4259_v34, %v6047_v37  ;;  %v6053_v34 = vld [vmem:[#allocation16_spill] sm:$0xff] }
 0x3ad   : > { %v4263_v57 = vpop.eup %4262  ;;  %v2456_v23 = vmul.f32 %v4261_v44, %v5551_v15  ;;  %3569 = vmatpush1.bf16.msra.mxu1 %v3568_v2  ;;  %v2460_v15 = vld [vmem:[#allocation8] sm:$0xff]  ;;  %v2688_v44 = vmul.f32 -0.5, %v6053_v34 }
 0x3ae   : > { %v4265_v9 = vpop.eup %4264  ;;  %v2458_v48 = vmul.f32 %v4263_v57, %v5555_v20  ;;  %v6048_v20 = vmov 0.0  }
 0x3af   : > { %v4267_v45 = vpop.eup %4266  ;;  %v3540_v46 = vpack.c.bf16 %v2456_v23, %v2452_v40  ;;  %v2457_v7 = vmul.f32 %v4265_v9, %v5557_v28  ;;  %v2462_v28 = vld [vmem:[#allocation8 + $0x10] sm:$0xff] }
 0x3b0   : > { %v3572_v32 = vpack.c.bf16 %v2458_v48, %v2454_v12  ;;  %v2459_v58 = vmul.f32 %v4267_v45, %v5562_v22  ;;  %v2463_v22 = vld [vmem:[#allocation8 + $0x18] sm:$0xff]  ;;  %v4269_v13 = vpop.eup %4268 }
 0x3b1   : > { %v3538_v53 = vpack.c.bf16 %v2457_v7, %v2453_v60  ;;  %v5673_v49 = vpop.eup %4270  ;;  %v412_v6 = vmul.f32 %v4308_v5, %v4269_v13  ;;  %v5684_v41 = vmul.f32 %v4312_v43, %v4269_v13  ;;  %v6054_v60 = vld [vmem:[#allocation18_spill] sm:$0xff] }
 0x3b2   : > { %v3570_v19 = vpack.c.bf16 %v2459_v58, %v2455_v38  ;;  %v4273_v11 = vpop.eup %4272  ;;  %v413_v18 = vmul.f32 %v4309_v56, %v5673_v49  ;;  %v5688_v31 = vmul.f32 %v4313_v3, %v5673_v49  ;;  %v4319_v3 = vld [vmem:[%s4701_s19 + $0x18] sm:$0xff] }
 0x3b3   : > { %3539 = vmatprep.subr.bf16.mxu0 %v3538_v53  ;;  %v5675_v39 = vpop.eup %4274  ;;  %v414_v47 = vmul.f32 %v4310_v4, %v4273_v11  ;;  %v5691_v52 = vmul.f32 %v4314_v55, %v4273_v11  ;;  %v2756_v4 = vmul.f32 -2.0, %v6053_v34 }
 0x3b4   : > { %3571 = vmatprep.subr.bf16.mxu1 %v3570_v19  ;;  %3541 = vmatpush1.bf16.msra.mxu0 %v3540_v46  ;;  %v415_v36 = vmul.f32 %v4311_v16, %v5675_v39  ;;  %v5695_v14 = vmul.f32 %v4315_v25, %v5675_v39  ;;  %v2690_v46 = vmul.f32 -0.5, %v6054_v60  ;;  %v5766_v55 = vmul.f32 %v4319_v3, %v5675_v39 }
 0x3b5   : > { %3573 = vmatpush1.bf16.msra.mxu1 %v3572_v32  ;;  %v2759_v25 = vmul.f32 -2.0, %v6056_v63 }
 0x3b6   : > { %v2696_v56 = vmul.f32 1.442695, %v2690_v46  ;;  %v2760_v46 = vmul.f32 1.442695, %v2756_v4 }
 0x3b7   : > { %2530 = vmatmul.mubr.f32.vlgmr.msra.gmra.mrb[64].mxu0 %v2460_v15 }
 0x3b8   : > { %2625 = vmatmul.mubr.f32.vlgmr.msra.gmra.mrb[64].mxu1 %v2460_v15  ;;  %2535 = vmatprep.mubr.f32.mxu0 %v6048_v20 }
 0x3b9   : > { %2630 = vmatprep.mubr.f32.mxu1 %v6048_v20 }
 0x3bb   : > { %2536 = vmatmul.mubr.f32.gmra.mrb[66].mxu0 %v2461_v30 }
 0x3bc   : > { %2631 = vmatmul.mubr.f32.gmra.mrb[66].mxu1 %v2461_v30  ;;  %2541 = vmatprep.mubr.f32.mxu0 %v6048_v20 }
 0x3bd   : > { %2636 = vmatprep.mubr.f32.mxu1 %v6048_v20 }
 0x3bf   : > { %2542 = vmatmul.mubr.f32.gmra.mrb[68].mxu0 %v2462_v28 }
 0x3c0   : > { %2637 = vmatmul.mubr.f32.gmra.mrb[68].mxu1 %v2462_v28  ;;  %2547 = vmatprep.mubr.f32.mxu0 %v6048_v20 }
 0x3c1   : > { %2642 = vmatprep.mubr.f32.mxu1 %v6048_v20 }
 0x3c3   : > { %2548 = vmatmul.mubr.f32.gmra.mrb[70].mxu0 %v2463_v22 }
 0x3c4   : > { %2643 = vmatmul.mubr.f32.gmra.mrb[70].mxu1 %v2463_v22  ;;  %2553 = vmatprep.mubr.f32.mxu0 %v6048_v20  ;;  %v2692_v22 = vmul.f32 1.442695, %v2688_v44 }
 0x3c5   : > { %2648 = vmatprep.mubr.f32.mxu1 %v6048_v20 }
 0x3c6   : > { %4276 = vpow2.f32 %v2692_v22 }
 0x3c7   : > { %2554 = vmatmul.mubr.f32.gmra.mrb[72].mxu0 %v2464_v10  ;;  %v5667_v37 = vpop.permute.xlu1 %2677  ;;  %4278 = vpow2.f32 %v2696_v56 }
 0x3c8   : > { %2649 = vmatmul.mubr.f32.gmra.mrb[72].mxu1 %v2464_v10  ;;  %3012 = vmatprep.mubr.f32.mxu0 %v6048_v20 }
 0x3c9   : > { %3083 = vmatprep.mubr.f32.mxu1 %v6048_v20 }
 0x3ca   : > { %v2658_v24 = vpop.permute.xlu0 %2657 }
 0x3cb   : > { %v2660_v2 = vmul.f32 %v2658_v24, %v412_v6  ;;  %v2661_v1 = vmul.f32 %v2658_v24, %v413_v18  ;;  %v2662_v29 = vmul.f32 %v2658_v24, %v414_v47  ;;  %v2663_v61 = vmul.f32 %v2658_v24, %v415_v36  ;;  %v4317_v24 = vld [vmem:[%s4701_s19 + $0x10] sm:$0xff] }
 0x3cc   : > { %v2726_v17 = vpop.permute.xlu1 %2725  ;;  %v5753_v5 = vmul.f32 %v4317_v24, %v4273_v11  ;;  %v2757_v11 = vmul.f32 -2.0, %v6055_v54 }
 0x3cd   : > { %v5697_v27 = vmul.f32 %v2726_v17, %v412_v6  ;;  %v5699_v51 = vmul.f32 %v2726_v17, %v413_v18  ;;  %v5701_v8 = vmul.f32 %v2726_v17, %v414_v47  ;;  %v5703_v21 = vmul.f32 %v2726_v17, %v415_v36 }
 0x3ce   : > { %v5746_v17 = vmul.f32 %v4316_v59, %v4269_v13  ;;  %v2682_v39 = vmul.f32 %v5667_v37, %v5753_v5 }
 0x3cf   : > { %v2666_v42 = vpop.permute.xlu0 %2665 }
 0x3d0   : > { %v2668_v23 = vmul.f32 %v2666_v42, %v5684_v41  ;;  %v2669_v9 = vmul.f32 %v2666_v42, %v5688_v31  ;;  %v2670_v48 = vmul.f32 %v2666_v42, %v5691_v52  ;;  %v2671_v45 = vmul.f32 %v2666_v42, %v5695_v14 }
 0x3d2   : > { %v2673_v22 = vadd.f32 %v2669_v9, %v2661_v1  ;;  %v2675_v24 = vadd.f32 %v2671_v45, %v2663_v61  ;;  %v2766_v61 = vmul.f32 1.442695, %v2759_v25 }
 0x3d3   : > { %v2734_v33 = vpop.permute.xlu1 %2733 }
 0x3d4   : > { %v2736_v26 = vmul.f32 %v2734_v33, %v5684_v41  ;;  %v5707_v50 = vmul.f32 %v2734_v33, %v5688_v31  ;;  %v5711_v57 = vmul.f32 %v2734_v33, %v5691_v52  ;;  %v5714_v40 = vmul.f32 %v2734_v33, %v5695_v14 }
 0x3d5   : > { %v2691_v33 = vmul.f32 -0.5, %v6056_v63 }
 0x3d6   : > { %v2740_v1 = vadd.f32 %v2736_v26, %v5697_v27 }
 0x3d7   : > { %v2698_v42 = vmul.f32 1.442695, %v2691_v33 }
 0x3da   : > { %v2794_v0 = vpop.permute.xlu1 %2793 }
 0x3db   : > { %v5718_v12 = vmul.f32 %v2794_v0, %v412_v6  ;;  %v5723_v7 = vmul.f32 %v2794_v0, %v413_v18  ;;  %v5725_v38 = vmul.f32 %v2794_v0, %v414_v47  ;;  %v5727_v32 = vmul.f32 %v2794_v0, %v415_v36  ;;  %v5741_v28 = vpop.permute.xlu0 %2745 }
 0x3dc   : > { %v2748_v9 = vmul.f32 %v5741_v28, %v5746_v17  ;;  %v2750_v25 = vmul.f32 %v5741_v28, %v5753_v5 }
 0x3e0   : > { %v2802_v62 = vpop.permute.xlu1 %2801  ;;  %v5773_v44 = vpop.permute.xlu0 %2813 }
 0x3e1   : > { %v5730_v58 = vmul.f32 %v2802_v62, %v5684_v41  ;;  %v5733_v53 = vmul.f32 %v2802_v62, %v5688_v31  ;;  %v5736_v19 = vmul.f32 %v2802_v62, %v5691_v52  ;;  %v5739_v15 = vmul.f32 %v2802_v62, %v5695_v14 }
 0x3e2   : > { %v2672_v62 = vadd.f32 %v2668_v23, %v2660_v2  ;;  %v2683_v2 = vmul.f32 %v5667_v37, %v5766_v55 }
 0x3e4   : > { %v5798_v56 = vadd.f32 %v2683_v2, %v2675_v24 }
 0x3e5   : > { %v2862_v30 = vpop.permute.xlu1 %2861 }
 0x3e6   : > { %v5743_v10 = vmul.f32 %v2862_v30, %v412_v6  ;;  %v5750_v0 = vmul.f32 %v2862_v30, %v413_v18  ;;  %v5756_v16 = vmul.f32 %v2862_v30, %v414_v47  ;;  %v5758_v43 = vmul.f32 %v2862_v30, %v415_v36  ;;  %v4318_v6 = vld [vmem:[%s4701_s19 + $0x8] sm:$0xff] }
 0x3e7   : > { %v5762_v13 = vmul.f32 %v4318_v6, %v5673_v49  ;;  %v2758_v18 = vmul.f32 -2.0, %v6054_v60  ;;  %v2680_v47 = vmul.f32 %v5667_v37, %v5746_v17  ;;  %v2694_v36 = vmul.f32 1.442695, %v2689_v35 }
 0x3e8   : > { %v2674_v49 = vadd.f32 %v2670_v48, %v2662_v29  ;;  %v2762_v48 = vmul.f32 1.442695, %v2757_v11  ;;  %v2702_v26 = vpop.permute.xlu0 %2701  ;;  %v2825_v6 = vmul.f32 -3.5, %v6055_v54  ;;  %v2742_v11 = vadd.f32 %v5711_v57, %v5701_v8 }
 0x3e9   : > { %v2681_v59 = vmul.f32 %v5667_v37, %v5762_v13  ;;  %v2764_v29 = vmul.f32 1.442695, %v2758_v18  ;;  %v5787_v33 = vadd.f32 %v2680_v47, %v2672_v62  ;;  %4280 = vpow2.f32 %v2694_v36  ;;  %v4277_v62 = vpop.eup %4276 }
 0x3ea   : > { %v2870_v30 = vpop.permute.xlu1 %2869  ;;  %4282 = vpow2.f32 %v2760_v46  ;;  %v2824_v37 = vmul.f32 -3.5, %v6053_v34  ;;  %v5794_v45 = vadd.f32 %v2682_v39, %v2674_v49  ;;  %v5808_v18 = vadd.f32 %v2748_v9, %v2740_v1  ;;  %v4279_v39 = vpop.eup %4278 }
 0x3eb   : > { %v5782_v23 = vmul.f32 %v2870_v30, %v5684_v41  ;;  %v5785_v35 = vmul.f32 %v2870_v30, %v5688_v31  ;;  %v2826_v41 = vmul.f32 -3.5, %v6054_v60  ;;  %v5796_v31 = vadd.f32 %v2681_v59, %v2673_v22 }
 0x3ec   : > { %4284 = vpow2.f32 %v2698_v42  ;;  %v5801_v4 = vmul.f32 %v2870_v30, %v5691_v52  ;;  %v5804_v27 = vmul.f32 %v2870_v30, %v5695_v14  ;;  %v2704_v3 = vadd.f32 %v2702_v26, %v5787_v33 }
 0x3ed   : > { %4286 = vpow2.f32 %v2764_v29  ;;  %v2828_v52 = vmul.f32 1.442695, %v2824_v37  ;;  %v2832_v47 = vmul.f32 1.442695, %v2826_v41  ;;  %v2827_v14 = vmul.f32 -3.5, %v6056_v63 }
 0x3ee   : > { %4288 = vpow2.f32 %v2762_v48  ;;  %v2706_v36 = vadd.f32 %v2702_v26, %v5794_v45  ;;  %v2705_v42 = vadd.f32 %v2702_v26, %v5796_v31  ;;  %v2707_v49 = vadd.f32 %v2702_v26, %v5798_v56 }
 0x3ef   : > { %4290 = vpow2.f32 %v2766_v61  ;;  %v2770_v46 = vpop.permute.xlu1 %2769  ;;  %v2741_v8 = vadd.f32 %v5707_v50, %v5699_v51  ;;  %v2749_v57 = vmul.f32 %v5741_v28, %v5762_v13  ;;  %v2743_v30 = vadd.f32 %v5714_v40, %v5703_v21 }
 0x3f0   : > { %v2751_v22 = vmul.f32 %v5741_v28, %v5766_v55  ;;  %v2708_v59 = vmul.f32 %v4277_v62, %v2704_v3  ;;  %v2772_v24 = vadd.f32 %v2770_v46, %v5808_v18  ;;  %v5827_v2 = vadd.f32 %v2750_v25, %v2742_v11 }
 0x3f1   : > { %v2808_v29 = vadd.f32 %v5730_v58, %v5718_v12  ;;  %v2816_v51 = vmul.f32 %v5773_v44, %v5746_v17  ;;  %v2810_v50 = vadd.f32 %v5736_v19, %v5725_v38  ;;  %v2818_v21 = vmul.f32 %v5773_v44, %v5753_v5 }
 0x3f2   : > { %v2830_v40 = vmul.f32 1.442695, %v2825_v6  ;;  %v2710_v28 = vmul.f32 %v4279_v39, %v2706_v36  ;;  %v2809_v1 = vadd.f32 %v5733_v53, %v5723_v7  ;;  %v2817_v9 = vmul.f32 %v5773_v44, %v5762_v13 }
 0x3f3   : > { %v4281_v48 = vpop.eup %4280  ;;  %v2834_v61 = vmul.f32 1.442695, %v2827_v14  ;;  %v5841_v58 = vadd.f32 %v2749_v57, %v2741_v8  ;;  %v5843_v37 = vadd.f32 %v2751_v22, %v2743_v30  ;;  %4292 = vpow2.f32 %v2828_v52 }
 0x3f4   : > { %v4283_v12 = vpop.eup %4282  ;;  %v2892_v38 = vmul.f32 -5.0, %v6053_v34  ;;  %v2774_v41 = vadd.f32 %v2770_v46, %v5827_v2  ;;  %4294 = vpow2.f32 %v2832_v47  ;;  %v2811_v26 = vadd.f32 %v5739_v15, %v5727_v32  ;;  %v2882_v6 = vpop.permute.xlu1 %2881 }
 0x3f5   : > { %v2819_v7 = vmul.f32 %v5773_v44, %v5766_v55  ;;  %v5851_v3 = vadd.f32 %v2816_v51, %v2808_v29  ;;  %v5853_v11 = vadd.f32 %v2818_v21, %v2810_v50  ;;  %4296 = vpow2.f32 %v2830_v40  ;;  %v2838_v34 = vpop.permute.xlu0 %2837 }
 0x3f6   : > { %v4285_v19 = vpop.eup %4284  ;;  %v2893_v25 = vmul.f32 -5.0, %v6055_v54  ;;  %v2776_v62 = vmul.f32 %v4283_v12, %v2772_v24  ;;  %v5856_v52 = vadd.f32 %v2817_v9, %v2809_v1  ;;  %4298 = vpow2.f32 %v2834_v61 }
 0x3f7   : > { %v4287_v53 = vpop.eup %4286  ;;  %v2895_v47 = vmul.f32 -5.0, %v6056_v63  ;;  %v2773_v15 = vadd.f32 %v2770_v46, %v5841_v58  ;;  %v2775_v44 = vadd.f32 %v2770_v46, %v5843_v37  ;;  %v2876_v14 = vadd.f32 %v5782_v23, %v5743_v10 }
 0x3f8   : > { %v4289_v32 = vpop.eup %4288  ;;  %v2896_v36 = vmul.f32 1.442695, %v2892_v38  ;;  %v2778_v8 = vmul.f32 %v4287_v53, %v2774_v41  ;;  %v5863_v57 = vadd.f32 %v2819_v7, %v2811_v26  ;;  %v2884_v54 = vmul.f32 %v2882_v6, %v5746_v17 }
 0x3f9   : > { %v4291_v39 = vpop.eup %4290  ;;  %v2894_v30 = vmul.f32 -5.0, %v6054_v60  ;;  %v2709_v24 = vmul.f32 %v4281_v48, %v2705_v42  ;;  %v2711_v63 = vmul.f32 %v4285_v19, %v2707_v49  ;;  %v2840_v29 = vadd.f32 %v2838_v34, %v5851_v3 }
 0x3fa   : > { %v2898_v51 = vmul.f32 1.442695, %v2893_v25  ;;  %v2780_v21 = vadd.f32 %v2776_v62, %v2708_v59  ;;  %v2842_v10 = vadd.f32 %v2838_v34, %v5853_v11  ;;  %v2841_v23 = vadd.f32 %v2838_v34, %v5856_v52 }
 0x3fb   : > { %v2902_v40 = vmul.f32 1.442695, %v2895_v47  ;;  %v2777_v9 = vmul.f32 %v4289_v32, %v2773_v15  ;;  %v2779_v61 = vmul.f32 %v4291_v39, %v2775_v44  ;;  %4300 = vpow2.f32 %v2896_v36  ;;  %v2906_v15 = vpop.permute.xlu1 %2905 }
 0x3fc   : > { %v2878_v60 = vadd.f32 %v5801_v4, %v5756_v16  ;;  %v2782_v17 = vadd.f32 %v2778_v8, %v2710_v28  ;;  %v2843_v42 = vadd.f32 %v2838_v34, %v5863_v57  ;;  %v5873_v49 = vadd.f32 %v2884_v54, %v2876_v14 }
 0x3fd   : > { %v2900_v48 = vmul.f32 1.442695, %v2894_v30  ;;  %v4293_v12 = vpop.eup %4292  ;;  %v2886_v38 = vmul.f32 %v2882_v6, %v5753_v5  ;;  %v2877_v19 = vadd.f32 %v5785_v35, %v5750_v0  ;;  %v2885_v41 = vmul.f32 %v2882_v6, %v5762_v13 }
 0x3fe   : > { %4302 = vpow2.f32 %v2898_v51  ;;  %v4295_v26 = vpop.eup %4294  ;;  %v2879_v28 = vadd.f32 %v5804_v27, %v5758_v43  ;;  %v2887_v53 = vmul.f32 %v2882_v6, %v5766_v55  ;;  %v2781_v35 = vadd.f32 %v2777_v9, %v2709_v24 }
 0x3ff   : > { %4304 = vpow2.f32 %v2902_v40  ;;  %v4297_v25 = vpop.eup %4296  ;;  %v2783_v13 = vadd.f32 %v2779_v61, %v2711_v63  ;;  %v2844_v32 = vmul.f32 %v4293_v12, %v2840_v29  ;;  %v2846_v55 = vmul.f32 %v4295_v26, %v2842_v10 }
 0x400   : > { %v4299_v62 = vpop.eup %4298  ;;  %4306 = vpow2.f32 %v2900_v48  ;;  %v2890_v6 = vadd.f32 %v2886_v38, %v2878_v60  ;;  %v2889_v39 = vadd.f32 %v2885_v41, %v2877_v19  ;;  %v2891_v8 = vadd.f32 %v2887_v53, %v2879_v28  ;;  %v6058_v28 = vld [vmem:[#allocation24_spill] sm:$0xff]  ;;  %v6059_v53 = vld [vmem:[#allocation22_spill] sm:$0xff] }
 0x401   : > { %v2847_v24 = vmul.f32 %v4299_v62, %v2843_v42  ;;  %v2848_v51 = vadd.f32 %v2844_v32, %v2780_v21  ;;  %vm2930_vm10 = vcmp.le.f32.partialorder %v6058_v28, 3.0  ;;  %vm2929_vm11 = vcmp.le.f32.partialorder %v6059_v53, 3.0 }
 0x402   : > { %v2910_v9 = vadd.f32 %v2906_v15, %v2890_v6  ;;  %v2909_v48 = vadd.f32 %v2906_v15, %v2889_v39 }
 0x403   : > { %v2851_v38 = vadd.f32 %v2847_v24, %v2783_v13 }
 0x48a   : > { %v2531_v22 = vpop.f32.mrb[64].mxu0 }
 0x48b   : > { %v2626_v50 = vpop.f32.mrb[64].mxu1  ;;  %v2533_v46 = vpop.f32.mrb[65].mxu0 }
 0x48c   : > { %v2628_v1 = vpop.f32.mrb[65].mxu1 }
 0x48e   : > { %v2537_v59 = vpop.f32.mrb[66].mxu0 }
 0x48f   : > { %v2716_v7 = vmul.f32 %v5787_v33, %v2537_v59  ;;  %v2632_v16 = vpop.f32.mrb[66].mxu1  ;;  %v2539_v4 = vpop.f32.mrb[67].mxu0 }
 0x490   : > { %v2718_v5 = vmul.f32 %v5794_v45, %v2632_v16  ;;  %v2717_v34 = vmul.f32 %v5796_v31, %v2539_v4  ;;  %v2634_v0 = vpop.f32.mrb[67].mxu1 }
 0x491   : > { %v2720_v47 = vadd.f32 %v2716_v7, %v2531_v22  ;;  %v2719_v33 = vmul.f32 %v5798_v56, %v2634_v0  ;;  %v2845_v22 = vmul.f32 %v4297_v25, %v2841_v23  ;;  %v2911_v23 = vadd.f32 %v2906_v15, %v2891_v8  ;;  %v6057_v7 = vld [vmem:[#allocation21_spill] sm:$0xff] }
 0x492   : > { %v2722_v44 = vadd.f32 %v2718_v5, %v2626_v50  ;;  %v2721_v43 = vadd.f32 %v2717_v34, %v2533_v46  ;;  %v2543_v27 = vpop.f32.mrb[68].mxu0  ;;  %v2908_v50 = vadd.f32 %v2906_v15, %v5873_v49  ;;  %v4301_v46 = vpop.eup %4300  ;;  %vm2928_vm9 = vcmp.le.f32.partialorder %v6057_v7, 3.0 }
 0x493   : > { %v2723_v14 = vadd.f32 %v2719_v33, %v2628_v1  ;;  %v2784_v45 = vmul.f32 %v5808_v18, %v2543_v27  ;;  %v2638_v36 = vpop.f32.mrb[68].mxu1  ;;  %v2545_v31 = vpop.f32.mrb[69].mxu0  ;;  %v2850_v1 = vadd.f32 %v2846_v55, %v2782_v17  ;;  %v2849_v59 = vadd.f32 %v2845_v22, %v2781_v35  ;;  %v6060_v35 = vld [vmem:[#allocation26_spill] sm:$0xff] }
 0x494   : > { %v2786_v54 = vmul.f32 %v5827_v2, %v2638_v36  ;;  %v2785_v30 = vmul.f32 %v5841_v58, %v2545_v31  ;;  %v2640_v56 = vpop.f32.mrb[69].mxu1  ;;  %v4303_v42 = vpop.eup %4302  ;;  %v2912_v26 = vmul.f32 %v4301_v46, %v2908_v50  ;;  %vm2931_vm12 = vcmp.le.f32.partialorder %v6060_v35, 3.0 }
 0x495   : > { %v2788_v63 = vadd.f32 %v2784_v45, %v2720_v47  ;;  %v2787_v29 = vmul.f32 %v5843_v37, %v2640_v56  ;;  %v4305_v19 = vpop.eup %4304  ;;  %v2913_v0 = vmul.f32 %v4303_v42, %v2909_v48  ;;  %v2934_v15 = vsel %vm2930_vm10, 1.0, %v6048_v20 }
 0x496   : > { %v2790_v10 = vadd.f32 %v2786_v54, %v2722_v44  ;;  %v2789_v18 = vadd.f32 %v2785_v30, %v2721_v43  ;;  %v2549_v40 = vpop.f32.mrb[70].mxu0  ;;  %v2915_v33 = vmul.f32 %v4305_v19, %v2911_v23  ;;  %v2933_v44 = vsel %vm2929_vm11, 1.0, %v6048_v20 }
 0x497   : > { %v2791_v61 = vadd.f32 %v2787_v29, %v2723_v14  ;;  %v2852_v2 = vmul.f32 %v5851_v3, %v2549_v40  ;;  %v2644_v60 = vpop.f32.mrb[70].mxu1  ;;  %v2551_v58 = vpop.f32.mrb[71].mxu0  ;;  %v2935_v14 = vsel %vm2931_vm12, 1.0, %v6048_v20  ;;  %v2917_v30 = vadd.f32 %v2913_v0, %v2849_v59 }
 0x498   : > { %v2854_v12 = vmul.f32 %v5853_v11, %v2644_v60  ;;  %v2853_v37 = vmul.f32 %v5856_v52, %v2551_v58  ;;  %v2646_v21 = vpop.f32.mrb[71].mxu1  ;;  %v4307_v11 = vpop.eup %4306  ;;  %v2919_v56 = vadd.f32 %v2915_v33, %v2851_v38 }
 0x499   : > { %v2856_v41 = vadd.f32 %v2852_v2, %v2788_v63  ;;  %v2855_v17 = vmul.f32 %v5863_v57, %v2646_v21  ;;  %v2932_v57 = vsel %vm2928_vm9, 1.0, %v6048_v20  ;;  %v2914_v27 = vmul.f32 %v4307_v11, %v2910_v9 }
 0x49a   : > { %v2858_v3 = vadd.f32 %v2854_v12, %v2790_v10  ;;  %v2857_v16 = vadd.f32 %v2853_v37, %v2789_v18  ;;  %v2555_v4 = vpop.f32.mrb[72].mxu0  ;;  %v4499_v20 = vmov 1983009808   ;;  %v6061_v18 = vld [vmem:[#allocation20_spill] sm:$0xff] }
 0x49b   : > { %v2859_v25 = vadd.f32 %v2855_v17, %v2791_v61  ;;  %v2920_v52 = vmul.f32 %v5873_v49, %v2555_v4  ;;  %v2650_v5 = vpop.f32.mrb[72].mxu1  ;;  %v2557_v34 = vpop.f32.mrb[73].mxu0  ;;  %v2918_v22 = vadd.f32 %v2914_v27, %v2850_v1 }
 0x49c   : > { %v2922_v13 = vmul.f32 %v2890_v6, %v2650_v5  ;;  %v2921_v62 = vmul.f32 %v2889_v39, %v2557_v34  ;;  %v2652_v47 = vpop.f32.mrb[73].mxu1  ;;  %v2916_v6 = vadd.f32 %v2912_v26, %v2848_v51  ;;  %v3097_v51 = vunpack.c.l.s4 %v4499_v20 }
 0x49d   : > { %v2924_v32 = vadd.f32 %v2920_v52, %v2856_v41  ;;  %v2923_v43 = vmul.f32 %v2891_v8, %v2652_v47  ;;  %v351_v8 = vld [vmem:[%s5959_s2] sm:$0x3] }
 0x49e   : > { %v2926_v55 = vadd.f32 %v2922_v13, %v2858_v3  ;;  %v2925_v49 = vadd.f32 %v2921_v62, %v2857_v16  ;;  %v3098_v46 = vunpack.c.0.s8 %v3097_v51 }
 0x49f   : > { %v2936_v45 = vmul.f32 %v2932_v57, %v2924_v32  ;;  %v2927_v36 = vadd.f32 %v2923_v43, %v2859_v25 }
 0x4a0   : > { %v2938_v31 = vmul.f32 %v2934_v15, %v2926_v55  ;;  %v2937_v54 = vmul.f32 %v2933_v44, %v2925_v49  ;;  %v3101_v40 = vsub.s32 %v3098_v46, %v6061_v18 }
 0x4a1   : > { %v2939_v39 = vmul.f32 %v2935_v14, %v2927_v36  ;;  %v2940_v63 = vadd.f32 %v2936_v45, %v2916_v6 }
 0x4a2   : > { %v2941_v24 = vadd.f32 %v2937_v54, %v2917_v30  ;;  %v2942_v50 = vadd.f32 %v2938_v31, %v2918_v22 }
 0x4a3   : > { %v2943_v29 = vadd.f32 %v2939_v39, %v2919_v56 }
 0x4a4   : > { %2948 = vmatprep.subr.mxu0 %v2941_v24 }
 0x4a5   : > { %3019 = vmatprep.subr.mxu1 %v2943_v29  ;;  %2949 = vmatpush1.msra.mxu0 %v2940_v63 }
 0x4a6   : > { %3020 = vmatpush1.msra.mxu1 %v2942_v50  ;;  %3405 = vmatmul.mubr.msk.f32.vlgmr.msra.gmra.mrb[74].mxu0 %vm2944_vm13, %v351_v8 }
 0x4a7   : > { %3406 = vmatmul.mubr.msk.f32.vlgmr.msra.gmra.mrb[74].mxu1 %vm2944_vm13, %v351_v8 }
 0x579   : > { %v3014_v10 = vpop.f32.mrb[74].mxu0 }
 0x57a   : > { %v3085_v1 = vpop.f32.mrb[74].mxu1  ;;  %v3016_v9 = vpop.f32.mrb[75].mxu0 }
 0x57b   : > { %v3094_v61 = vcombine.low %v3014_v10, %v3016_v9  ;;  %v3087_v2 = vpop.f32.mrb[75].mxu1 }
 0x57c   : > { %v3095_v60 = vcombine.low %v3085_v1, %v3087_v2 }
 0x57d   : > { %v3102_v58 = vrot.slane %v3094_v61, %v3101_v40 }
 0x57e   : > { %v3109_v48 = vrot.slane %v3095_v60, %v3101_v40 }
 0x580   : > { %v3110_v23 = vcombine.low %v3102_v58, %v3109_v48 }
 0x582   : > { %3112 = vst [vmem:[%s333_s14] sm:$0xff] %v3110_v23 }
 0x583   : > { %4417 = shalt.err (!%p4414_p2)
}
 0x584   : > { %s4418_s7 = scalar_lea.hbm %s5913_s27, 128  ;;  %s4422_s17 = scalar_lea.hbm %s5963_s6, 256 }
 0x585   : > { %p4419_p5 = scmp.ne.s32.totalorder %s5913_s27, %s4418_s7  ;;  %p4423_p4 = scmp.lt.u32.totalorder %s5913_s27, %s5963_s6 }
 0x586   : > { %p4424_p7 = scmp.lt.u32.totalorder %s4422_s17, %s4418_s7  ;;  %p4426_p13 = scmp.lt.u32.totalorder %s4418_s7, %s5913_s27 }
 0x587   : > { %p4420_p12 = pnand %p4419_p5, %p6062_p9 }
 0x588   : > { %p4425_p8 = por %p4424_p7, %p4423_p4 }
 0x589   : > { %p4421_p0 = pneg %p4420_p12 }
 0x58a   : > { %p4427_p1 = por %p4426_p13, %p4425_p8 }
 0x58c   : > { %p4428_p3 = pnand %p4427_p1, %p4421_p0 }
 0x58e   : > { %4431 = shalt.err (!%p4428_p3)
}
 0x58f   : > { %3588 = dma.vmem_to_hbm [thread:$0]  (%p6062_p9), %s5915_s16, 128, %s5913_s27, %s3114_s29  }
 0x590 PF: > { %s6063_s10 = sld [smem:[#allocation15_spill]]  ;;  %s3140_s28 = sand.u32 1, %s4462_s21  }
 0x591   : > { %s3141_s11 = scalar_lea.sflag [#allocation5], %s3140_s28 }
 0x596   : > { %p6064_p6 = scmp.ne.s32.totalorder %s6063_s10, 0 }
 0x598   : > { %p3601_p10 = pnand %p3229_p11, %p6064_p6 }
 0x59a   : > { %4457 = dma.done.wait (!%p3601_p10), %s3141_s11, 128  }
 0x59b   : > { %4459 = vsyncadd (!%p3601_p10), %s3141_s11, 4294967168  ;;  %s6065_s24 = sld [smem:[#allocation13_spill]]  ;;  %s6066_s14 = sld [smem:[#allocation14_spill]] }
 0x59c   : > { %s6067_s21 = smov %s4466_s22  ;;  %s6068_s22 = smov %s4470_s23 }
 0x5a1   : > { %p18_p2 = scmp.ge.s32.totalorder %s6065_s24, 4   ;;  %s6069_s23 = smov %s6066_s14 }
 0x5a3   :  { %20 = sbr.rel (!%p18_p2) target bundleno = 5 (0x5), region = 122 }
 0x5aa   :  { %3146 = vsyncpa [#allocation4], 1 }
 0x5ab   :  { %3148 = vsyncpa [#allocation4 + $0x1], 1 }
 0x5ac   :  { %3149 = vsyncpa [#allocation7], 1 }
 0x5ad   :  { %3150 = vsyncpa [#allocation5], 1 }
 0x5ae   :  { %3152 = vsyncpa [#allocation5 + $0x1], 1 }

</bundles_post_ra>
